<compile_context>
chip_gen: v5e
topology: v5e:2x2
jax: 0.10.0
libtpu: 0.0.40
codegen_flags: <defaults>
</compile_context>

<pallas_src>
import functools

import jax
import jax.numpy as jnp
from jax.experimental import pallas as pl
from jax.experimental.pallas import tpu as pltpu  # noqa: F401  (not needed at these sizes)


# -----------------------------------------------------------------------------
# series_decomp folded to matrices: trend[t] = sum_s M[s, t] * x[s]
# -----------------------------------------------------------------------------
def _moving_avg_matrix(T, K):
    """M[s, t] = weight of x[s] in the moving-average (replicate-padded) output at t."""
    pad = (K - 1) // 2
    Tp = T + K - 1
    j = jnp.arange(Tp)
    src = jnp.clip(j - pad, 0, T - 1)                                       # padded -> source idx
    onehot = (src[None, :] == jnp.arange(T)[:, None]).astype(jnp.float32)   # (T, Tp)
    t = jnp.arange(T)
    in_win = ((j[None, :] >= t[:, None]) &
              (j[None, :] <= t[:, None] + K - 1)).astype(jnp.float32)       # (T, Tp)
    return (onehot @ in_win.T) / float(K)                                   # (T, T)


def _reorder_ifog(w):
    """Permute last-axis gate blocks from PyTorch (i,f,g,o) to kernel (i,f,o,g)."""
    H = w.shape[-1] // 4
    return jnp.concatenate([w[..., :2 * H], w[..., 3 * H:], w[..., 2 * H:3 * H]], axis=-1)


# -----------------------------------------------------------------------------
# Parameter init (deterministic, PyTorch-style uniform(-1/sqrt(H), 1/sqrt(H)))
# -----------------------------------------------------------------------------
def _uniform(key, shape, bound):
    return jax.random.uniform(key, shape, jnp.float32, minval=-bound, maxval=bound)


def _init_cell(key, din, H):
    bound = 1.0 / (H ** 0.5)
    key, k1, k2, k3, k4 = jax.random.split(key, 5)
    w_ih = _reorder_ifog(jnp.transpose(_uniform(k1, (4 * H, din), bound)))  # (din, 4H) i,f,o,g
    w_hh = _reorder_ifog(jnp.transpose(_uniform(k2, (4 * H, H), bound)))    # (H, 4H)
    b = _reorder_ifog(_uniform(k3, (4 * H,), bound) + _uniform(k4, (4 * H,), bound))
    return key, w_ih, w_hh, b


def init_encoder_params(key, input_size, hidden_size, num_layers, ndir=4):
    """Both bidirectional encoders (seasonal + trend) stacked: 4 directions per layer."""
    layers = []
    for layer in range(num_layers):
        din = input_size if layer == 0 else 2 * hidden_size
        wihs, whhs, bs = [], [], []
        for _ in range(ndir):
            key, w_ih, w_hh, b = _init_cell(key, din, hidden_size)
            wihs.append(w_ih)
            whhs.append(w_hh)
            bs.append(b)
        # wih_ext = [W_0; W_1; W_2; W_3; bias_nd] -> hoisted projection matmul includes bias
        layers.append({'wih_ext': jnp.concatenate(wihs + [jnp.stack(bs, axis=0)], axis=0),
                       'whh': jnp.concatenate(whhs, axis=0)})               # (ndir*H, 4H)
    return key, layers


def init_decoder_params(key, output_size, hidden_size, num_dec_layers):
    layers = []
    for l in range(num_dec_layers):
        din = output_size if l == 0 else hidden_size
        key, w_ih, w_hh, b = _init_cell(key, din, hidden_size)
        if l == 0:
            layers.append({'wih': w_ih, 'whh': w_hh, 'b': b[None, :]})
        else:
            layers.append({'wcat': jnp.concatenate([w_ih, w_hh], axis=0),   # (2H, 4H)
                           'b': b[None, :]})
    return key, layers


# -----------------------------------------------------------------------------
# Encoder: one fused kernel per bidirectional layer; layer 0 also fuses series_decomp.
# 4 directions stacked on the batch axis (NB = 4*B rows).
# -----------------------------------------------------------------------------
def _enc_recurrence(preg, whh, hmask, out_refs, *, T, B, NDIR, H, write_seq_out):
    NB = NDIR * B
    if write_seq_out:
        seq_ref, hN_ref, cN_ref = out_refs
    else:
        seq_ref = None
        hN_ref, cN_ref = out_refs
    H3 = 3 * H
    h = jnp.zeros((NB, H), jnp.float32)
    c = jnp.zeros((NB, H), jnp.float32)
    for t in range(T):  # static unroll: whole recurrence in ONE kernel invocation
        h_wide = jnp.concatenate([h] * NDIR, axis=1) * hmask                # block-diag (NB, NDIR*H)
        gates = preg[t * NB:(t + 1) * NB, :] + jnp.dot(
            h_wide, whh, preferred_element_type=jnp.float32)                # (NB, 4H), bias in preg
        sg = jax.nn.sigmoid(gates[:, :H3])                                  # i, f, o (3H lanes)
        g = jnp.tanh(gates[:, H3:])                                         # g (H lanes)
        c = sg[:, H:2 * H] * c + sg[:, :H] * g
        h = sg[:, 2 * H:H3] * jnp.tanh(c)
        if write_seq_out:                                                   # only non-final layers
            seq_ref[t * NB:(t + 1) * NB, :] = h
    hN_ref[...] = h                                                         # written once
    cN_ref[...] = c


def _encoder_layer0_kernel(x_ref, acomb_ref, dsel_ref, hmask_ref, wih_ext_ref, whh_ref,
                           *out_refs, T, B, NDIR, H, write_seq_out):
    # Prologue: fused series_decomp + time reversal + per-direction row placement.
    # acomb[d] is a precomputed (T*NB, B*T) matrix whose nonzero rows are direction d's;
    # X_d = acomb[d] @ x is that direction's (decomposed, possibly reversed) input.
    x = x_ref[...]                                                          # (B*T, C)
    xs = [jnp.dot(acomb_ref[d], x, preferred_element_type=jnp.float32) for d in range(NDIR)]
    # [X_0 | X_1 | X_2 | X_3 | dir-one-hot] @ [W_0; W_1; W_2; W_3; bias] -> pre-gates + bias
    xw_ext = jnp.concatenate(xs + [dsel_ref[...]], axis=1)                  # (T*NB, NDIR*C + NDIR)
    preg = jnp.dot(xw_ext, wih_ext_ref[...], preferred_element_type=jnp.float32)
    _enc_recurrence(preg, whh_ref[...], hmask_ref[...], out_refs,
                    T=T, B=B, NDIR=NDIR, H=H, write_seq_out=write_seq_out)


def _encoder_layer_kernel(xw_ref, dsel_ref, hmask_ref, wih_ext_ref, whh_ref,
                          *out_refs, T, B, NDIR, H, write_seq_out):
    # Layers > 0: input already direction-stacked/block-diagonal by the wrapper.
    xw_ext = jnp.concatenate([xw_ref[...], dsel_ref[...]], axis=1)
    preg = jnp.dot(xw_ext, wih_ext_ref[...], preferred_element_type=jnp.float32)
    _enc_recurrence(preg, whh_ref[...], hmask_ref[...], out_refs,
                    T=T, B=B, NDIR=NDIR, H=H, write_seq_out=write_seq_out)


def _enc_out_shapes(T, B, NDIR, H, write_seq_out):
    NB = NDIR * B
    outs = []
    if write_seq_out:
        outs.append(jax.ShapeDtypeStruct((T * NB, H), jnp.float32))
    outs += [jax.ShapeDtypeStruct((NB, H), jnp.float32),
             jax.ShapeDtypeStruct((NB, H), jnp.float32)]
    return tuple(outs)


def _enc_cost(in_arrays, T, B, NDIR, H, write_seq_out, extra_flops):
    NB = NDIR * B
    out_elems = (T * NB * H if write_seq_out else 0) + 2 * NB * H
    flops = int(extra_flops + T * (2 * NB * NDIR * H * 4 * H + 12 * NB * H))
    return pl.CostEstimate(
        flops=flops,
        transcendentals=int(T * NB * 5 * H),
        bytes_accessed=int(4 * (sum(a.size for a in in_arrays) + out_elems)))


def encoder_layer0(x_bt, acomb, dsel, hmask, wih_ext, whh, *, T, B, NDIR, H, write_seq_out):
    TNB = T * NDIR * B
    extra = 2 * NDIR * TNB * acomb.shape[-1] * x_bt.shape[1] + 2 * TNB * wih_ext.shape[0] * 4 * H
    args = (x_bt, acomb, dsel, hmask, wih_ext, whh)
    return pl.pallas_call(
        functools.partial(_encoder_layer0_kernel, T=T, B=B, NDIR=NDIR, H=H,
                          write_seq_out=write_seq_out),
        out_shape=_enc_out_shapes(T, B, NDIR, H, write_seq_out),
        cost_estimate=_enc_cost(args, T, B, NDIR, H, write_seq_out, extra),
    )(*args)


def encoder_layer(xw, dsel, hmask, wih_ext, whh, *, T, B, NDIR, H, write_seq_out):
    TNB = T * NDIR * B
    extra = 2 * TNB * wih_ext.shape[0] * 4 * H
    args = (xw, dsel, hmask, wih_ext, whh)
    return pl.pallas_call(
        functools.partial(_encoder_layer_kernel, T=T, B=B, NDIR=NDIR, H=H,
                          write_seq_out=write_seq_out),
        out_shape=_enc_out_shapes(T, B, NDIR, H, write_seq_out),
        cost_estimate=_enc_cost(args, T, B, NDIR, H, write_seq_out, extra),
    )(*args)


def _stack_dirs(seas_tm, trend_tm):
    """(T, B, D) time-major inputs -> block-diagonal direction-stacked (T*4B, 4D)."""
    dirs = jnp.stack([seas_tm, seas_tm[::-1], trend_tm, trend_tm[::-1]], axis=1)  # (T,4,B,D)
    T, NDIR, B, D = dirs.shape
    eye = jnp.eye(NDIR, dtype=dirs.dtype)
    return jnp.einsum('tdbc,de->tdbec', dirs, eye).reshape(T * NDIR * B, NDIR * D)


# -----------------------------------------------------------------------------
# Decoder: autoregressive loop + all stacked LSTM layers + output linear in ONE kernel.
# The sliding window lives as a ring buffer of pre-gate blocks (static indices).
# -----------------------------------------------------------------------------
def _decoder_kernel(*refs, B, H, O, S_dec, S_out, L_enc, teacher):
    L2 = 2 * L_enc
    NB = 4 * B
    trg_ref, tf_ref, hN_ref, cN_ref = refs[:4]
    wih0_ref, whh0_ref, b0_ref = refs[4:7]
    pos = 7
    upper = []
    for _ in range(L2 - 1):
        upper.append((refs[pos], refs[pos + 1]))
        pos += 2
    wout_ref, bout_ref, out_ref = refs[pos], refs[pos + 1], refs[pos + 2]

    wih0 = wih0_ref[...]
    whh0 = whh0_ref[...]
    b0 = b0_ref[...]
    wcats = [w[...] for (w, _) in upper]
    bups = [bb[...] for (_, bb) in upper]
    wout = wout_ref[...]
    bout = bout_ref[...]

    # Initial decoder state = seasonal h_n + trend h_n, PyTorch layout
    # ([layer fwd, layer rev] per encoder layer -> 2*num_layers decoder layers).
    hN = hN_ref[...]
    cN = cN_ref[...]
    hs, cs = [], []
    for li in range(L_enc):
        base = li * NB
        for r in range(2):  # 0 = fwd, 1 = rev
            hs.append(hN[base + r * B: base + (r + 1) * B, :]
                      + hN[base + (2 + r) * B: base + (3 + r) * B, :])
            cs.append(cN[base + r * B: base + (r + 1) * B, :]
                      + cN[base + (2 + r) * B: base + (3 + r) * B, :])

    tf_all = tf_ref[...]

    # Hoisted layer-0 input projection (bias folded in); ring buffer of per-slot blocks.
    preg_full = jnp.dot(trg_ref[...], wih0, preferred_element_type=jnp.float32) + b0
    ring = [preg_full[s * B:(s + 1) * B, :] for s in range(S_dec)]

    H3 = 3 * H
    ys = []
    y = None
    for i in range(S_out):                                # autoregressive output loop (static)
        if i > 0:
            nxt = tf_all[(i - 1) * B:i * B, :] if teacher else y            # (B, O)
            # Replace the oldest window slot: only the NEW item is projected (no shift copy).
            ring[(i - 1) % S_dec] = jnp.dot(nxt, wih0,
                                            preferred_element_type=jnp.float32) + b0
        for t in range(S_dec):                            # window time loop (static)
            gates = ring[(t + i) % S_dec] + jnp.dot(hs[0], whh0,
                                                    preferred_element_type=jnp.float32)
            sg = jax.nn.sigmoid(gates[:, :H3])
            g = jnp.tanh(gates[:, H3:])
            cs[0] = sg[:, H:2 * H] * cs[0] + sg[:, :H] * g
            hs[0] = sg[:, 2 * H:H3] * jnp.tanh(cs[0])
            x = hs[0]
            for l in range(1, L2):                        # upper layers: one fused [x;h] matmul
                xh = jnp.concatenate([x, hs[l]], axis=1)                    # (B, 2H)
                gates = jnp.dot(xh, wcats[l - 1],
                                preferred_element_type=jnp.float32) + bups[l - 1]
                sg = jax.nn.sigmoid(gates[:, :H3])
                g = jnp.tanh(gates[:, H3:])
                cs[l] = sg[:, H:2 * H] * cs[l] + sg[:, :H] * g
                hs[l] = sg[:, 2 * H:H3] * jnp.tanh(cs[l])
                x = hs[l]
        y = jnp.dot(hs[L2 - 1], wout, preferred_element_type=jnp.float32) + bout  # (B, O)
        ys.append(y)
    out_ref[...] = jnp.concatenate(ys, axis=0)            # single store at the end


def run_decoder(trg, trg_tf, hN_all, cN_all, dec_layers, w_out, b_out, *,
                n_enc_layers, seq_len_out, teacher):
    B, S_dec, O = trg.shape
    H = w_out.shape[0]
    L2 = len(dec_layers)
    S_out = seq_len_out
    trg2d = jnp.transpose(trg, (1, 0, 2)).reshape(S_dec * B, O)
    tf2d = jnp.transpose(trg_tf, (1, 0, 2)).reshape(trg_tf.shape[1] * B, O)
    args = [trg2d, tf2d, hN_all, cN_all,
            dec_layers[0]['wih'], dec_layers[0]['whh'], dec_layers[0]['b']]
    for lp in dec_layers[1:]:
        args += [lp['wcat'], lp['b']]
    args += [w_out, b_out]

    flops = int(2 * S_dec * B * O * 4 * H + S_out * 2 * B * O * 4 * H
                + S_out * S_dec * (2 * B * H * 4 * H + (L2 - 1) * 2 * B * 2 * H * 4 * H
                                   + L2 * 12 * B * H)
                + S_out * 2 * B * H * O)
    cost = pl.CostEstimate(flops=flops,
                           transcendentals=int(S_out * S_dec * L2 * B * 5 * H),
                           bytes_accessed=int(4 * (sum(a.size for a in args) + S_out * B * O)))

    out2d = pl.pallas_call(
        functools.partial(_decoder_kernel, B=B, H=H, O=O, S_dec=S_dec, S_out=S_out,
                          L_enc=n_enc_layers, teacher=bool(teacher)),
        out_shape=jax.ShapeDtypeStruct((S_out * B, O), jnp.float32),
        cost_estimate=cost,
    )(*args)
    return jnp.transpose(out2d.reshape(S_out, B, O), (1, 0, 2))


# -----------------------------------------------------------------------------
# Model
# -----------------------------------------------------------------------------
class DEncoderDecoderLSTM:
    NDIR = 4  # (seasonal, trend) x (forward, reverse)

    def __init__(self, input_size, hidden_size, output_size, num_layers,
                 seq_len_in, seq_len_out, seq_len_dec, teacher_forcing, key):
        self.hidden_size = hidden_size
        self.num_layers = num_layers
        self.input_size = input_size
        self.output_size = output_size
        self.seq_len_in = seq_len_in
        self.seq_len_out = seq_len_out
        self.seq_len_dec = seq_len_dec
        self.teacher_forcing = teacher_forcing
        # counter / epoch_portion are pure Python bookkeeping (no compute); the
        # teacher-forcing decision therefore stays a trace-time (static) bool.
        self.counter = 0
        self.epoch_portion = 0

        key, self.enc_layers = init_encoder_params(key, input_size, hidden_size,
                                                   num_layers, self.NDIR)
        key, self.dec_layers = init_decoder_params(key, output_size, hidden_size,
                                                   2 * num_layers)
        bound = 1.0 / (hidden_size ** 0.5)
        key, k1, k2 = jax.random.split(key, 3)
        self.w_out = jnp.transpose(_uniform(k1, (output_size, hidden_size), bound))  # (H, O)
        self.b_out = _uniform(k2, (output_size,), bound)[None, :]                    # (1, O)

        # B-independent time matrices: Atime[d][t, s] = weight of src time s in
        # direction d's (decomposed, possibly time-reversed) input at its own step t.
        M = _moving_avg_matrix(seq_len_in, 25)                    # M[s, t]
        trend_t = M.T
        seas_t = jnp.eye(seq_len_in, dtype=jnp.float32) - trend_t
        self._atime = jnp.stack([seas_t, seas_t[::-1], trend_t, trend_t[::-1]], axis=0)
        self._const_cache = {}                                    # per-batch-size constants

    def _enc_consts(self, B):
        if B in self._const_cache:
            return self._const_cache[B]
        T, NDIR, H = self.seq_len_in, self.NDIR, self.hidden_size
        NB = NDIR * B
        eye_b = jnp.eye(B, dtype=jnp.float32)
        blocks = []
        for d in range(NDIR):
            blk = jnp.einsum('ts,bc->tbcs', self._atime[d], eye_b)          # (T, B, B, T)
            full = jnp.zeros((T, NDIR, B, B, T), jnp.float32).at[:, d].set(blk)
            blocks.append(full.reshape(T * NB, B * T))
        acomb = jnp.stack(blocks, axis=0)                                    # (NDIR, T*NB, B*T)
        dsel = jax.nn.one_hot((jnp.arange(T * NB) // B) % NDIR, NDIR,
                              dtype=jnp.float32)                             # (T*NB, NDIR)
        hmask = ((jnp.arange(NB)[:, None] // B) ==
                 (jnp.arange(NDIR * H)[None, :] // H)).astype(jnp.float32)   # (NB, NDIR*H)
        consts = (acomb, dsel, hmask)
        self._const_cache[B] = consts
        return consts

    def is_teacher_forcing(self):
        return self.epoch_portion < self.teacher_forcing

    def forward(self, src, trg, trg_y, trg_teacher_forcing, epoch_portion=0):
        self.epoch_portion = epoch_portion
        self.counter += 1
        B, T, C = src.shape
        assert T == self.seq_len_in
        H, NDIR = self.hidden_size, self.NDIR
        acomb, dsel, hmask = self._enc_consts(B)

        # Encoders: decomp + all 4 directions fused into one kernel per layer.
        n_layers = len(self.enc_layers)
        hN_parts, cN_parts = [], []
        seas_in = trend_in = None
        for li, lp in enumerate(self.enc_layers):
            write_seq = li + 1 < n_layers              # last layer's seq output is unused
            if li == 0:
                res = encoder_layer0(src.reshape(B * T, C), acomb, dsel, hmask,
                                     lp['wih_ext'], lp['whh'],
                                     T=T, B=B, NDIR=NDIR, H=H, write_seq_out=write_seq)
            else:
                xw = _stack_dirs(seas_in, trend_in)
                res = encoder_layer(xw, dsel, hmask, lp['wih_ext'], lp['whh'],
                                    T=T, B=B, NDIR=NDIR, H=H, write_seq_out=write_seq)
            if write_seq:
                out2d, hN, cN = res
                out = out2d.reshape(T, NDIR, B, H)
                seas_in = jnp.concatenate([out[:, 0], out[::-1, 1]], axis=-1)   # (T, B, 2H)
                trend_in = jnp.concatenate([out[:, 2], out[::-1, 3]], axis=-1)
            else:
                hN, cN = res
            hN_parts.append(hN)
            cN_parts.append(cN)
        hN_all = hN_parts[0] if n_layers == 1 else jnp.concatenate(hN_parts, axis=0)
        cN_all = cN_parts[0] if n_layers == 1 else jnp.concatenate(cN_parts, axis=0)

        # Fused autoregressive decoder + output linear (one Pallas kernel total).
        out = run_decoder(trg, trg_teacher_forcing, hN_all, cN_all, self.dec_layers,
                          self.w_out, self.b_out, n_enc_layers=n_layers,
                          seq_len_out=self.seq_len_out,
                          teacher=self.is_teacher_forcing())
        return out, trg_y


# -----------------------------------------------------------------------------
if __name__ == "__main__":
    key = jax.random.PRNGKey(0)
    B = 2
    input_size, hidden_size, output_size = 4, 32, 4
    num_layers = 1
    seq_len_in, seq_len_out, seq_len_dec = 16, 4, 8
    teacher_forcing = 0.5

    key, kp, k1, k2, k3, k4 = jax.random.split(key, 6)
    model = DEncoderDecoderLSTM(input_size, hidden_size, output_size, num_layers,
                                seq_len_in, seq_len_out, seq_len_dec, teacher_forcing, kp)

    src = jax.random.normal(k1, (B, seq_len_in, input_size), jnp.float32)
    trg = jax.random.normal(k2, (B, seq_len_dec, output_size), jnp.float32)
    trg_y = jax.random.normal(k3, (B, seq_len_out, output_size), jnp.float32)
    trg_tf = jax.random.normal(k4, (B, seq_len_out, output_size), jnp.float32)

    out, trg_y_out = model.forward(src, trg, trg_y, trg_tf, epoch_portion=0.0)
    jax.block_until_ready(out)
    jax.block_until_ready(trg_y_out)
    assert out.shape == (B, seq_len_out, output_size)
    assert out.dtype == jnp.float32
    print("KERNEL_OK")
</pallas_src>

<mosaic_0001>
module attributes {stable_mosaic.version = 11 : i64} {
  func.func @_encoder_layer0_kernel(%arg0: memref<32x4xf32, #tpu.memory_space<vmem>>, %arg1: memref<4x128x32xf32, #tpu.memory_space<vmem>>, %arg2: memref<128x4xf32, #tpu.memory_space<vmem>>, %arg3: memref<8x128xf32, #tpu.memory_space<vmem>>, %arg4: memref<20x128xf32, #tpu.memory_space<vmem>>, %arg5: memref<128x128xf32, #tpu.memory_space<vmem>>, %arg6: memref<8x32xf32, #tpu.memory_space<vmem>>, %arg7: memref<8x32xf32, #tpu.memory_space<vmem>>) attributes {dimension_semantics = [], scalar_prefetch = 0 : i64, scratch_operands = 0 : i64, tpu.core_type = #tpu.core_type<tc>} {
    %c0 = arith.constant 0 : index
    %c0_0 = arith.constant 0 : index
    %0 = vector.load %arg0[%c0, %c0_0] : memref<32x4xf32, #tpu.memory_space<vmem>>, vector<32x4xf32>
    %c0_1 = arith.constant 0 : index
    %c0_2 = arith.constant 0 : index
    %c0_3 = arith.constant 0 : index
    %1 = vector.load %arg1[%c0_1, %c0_2, %c0_3] : memref<4x128x32xf32, #tpu.memory_space<vmem>>, vector<1x128x32xf32>
    %2 = vector.shape_cast %1 : vector<1x128x32xf32> to vector<128x32xf32>
    %cst = arith.constant dense<0.000000e+00> : vector<128x4xf32>
    %3 = tpu.matmul %2, %0, %cst {dimension_numbers = #tpu.dot_dimension_numbers<[1], [0], [0], [1], [0, 0, 1, 1], [], []>} : vector<128x32xf32>, vector<32x4xf32>, vector<128x4xf32> -> vector<128x4xf32>
    %c1 = arith.constant 1 : index
    %c0_4 = arith.constant 0 : index
    %c0_5 = arith.constant 0 : index
    %4 = vector.load %arg1[%c1, %c0_4, %c0_5] : memref<4x128x32xf32, #tpu.memory_space<vmem>>, vector<1x128x32xf32>
    %5 = vector.shape_cast %4 : vector<1x128x32xf32> to vector<128x32xf32>
    %cst_6 = arith.constant dense<0.000000e+00> : vector<128x4xf32>
    %6 = tpu.matmul %5, %0, %cst_6 {dimension_numbers = #tpu.dot_dimension_numbers<[1], [0], [0], [1], [0, 0, 1, 1], [], []>} : vector<128x32xf32>, vector<32x4xf32>, vector<128x4xf32> -> vector<128x4xf32>
    %c2 = arith.constant 2 : index
    %c0_7 = arith.constant 0 : index
    %c0_8 = arith.constant 0 : index
    %7 = vector.load %arg1[%c2, %c0_7, %c0_8] : memref<4x128x32xf32, #tpu.memory_space<vmem>>, vector<1x128x32xf32>
    %8 = vector.shape_cast %7 : vector<1x128x32xf32> to vector<128x32xf32>
    %cst_9 = arith.constant dense<0.000000e+00> : vector<128x4xf32>
    %9 = tpu.matmul %8, %0, %cst_9 {dimension_numbers = #tpu.dot_dimension_numbers<[1], [0], [0], [1], [0, 0, 1, 1], [], []>} : vector<128x32xf32>, vector<32x4xf32>, vector<128x4xf32> -> vector<128x4xf32>
    %c3 = arith.constant 3 : index
    %c0_10 = arith.constant 0 : index
    %c0_11 = arith.constant 0 : index
    %10 = vector.load %arg1[%c3, %c0_10, %c0_11] : memref<4x128x32xf32, #tpu.memory_space<vmem>>, vector<1x128x32xf32>
    %11 = vector.shape_cast %10 : vector<1x128x32xf32> to vector<128x32xf32>
    %cst_12 = arith.constant dense<0.000000e+00> : vector<128x4xf32>
    %12 = tpu.matmul %11, %0, %cst_12 {dimension_numbers = #tpu.dot_dimension_numbers<[1], [0], [0], [1], [0, 0, 1, 1], [], []>} : vector<128x32xf32>, vector<32x4xf32>, vector<128x4xf32> -> vector<128x4xf32>
    %c0_13 = arith.constant 0 : index
    %c0_14 = arith.constant 0 : index
    %13 = vector.load %arg2[%c0_13, %c0_14] : memref<128x4xf32, #tpu.memory_space<vmem>>, vector<128x4xf32>
    %14 = tpu.concatenate %3, %6, %9, %12, %13 in 1 : vector<128x4xf32>, vector<128x4xf32>, vector<128x4xf32>, vector<128x4xf32>, vector<128x4xf32> -> vector<128x20xf32>
    %c0_15 = arith.constant 0 : index
    %c0_16 = arith.constant 0 : index
    %15 = vector.load %arg4[%c0_15, %c0_16] : memref<20x128xf32, #tpu.memory_space<vmem>>, vector<20x128xf32>
    %cst_17 = arith.constant dense<0.000000e+00> : vector<128x128xf32>
    %16 = tpu.matmul %14, %15, %cst_17 {dimension_numbers = #tpu.dot_dimension_numbers<[1], [0], [0], [1], [0, 0, 1, 1], [], []>} : vector<128x20xf32>, vector<20x128xf32>, vector<128x128xf32> -> vector<128x128xf32>
    %c0_18 = arith.constant 0 : index
    %c0_19 = arith.constant 0 : index
    %17 = vector.load %arg5[%c0_18, %c0_19] : memref<128x128xf32, #tpu.memory_space<vmem>>, vector<128x128xf32>
    %c0_20 = arith.constant 0 : index
    %c0_21 = arith.constant 0 : index
    %18 = vector.load %arg3[%c0_20, %c0_21] : memref<8x128xf32, #tpu.memory_space<vmem>>, vector<8x128xf32>
    %cst_22 = arith.constant 0.000000e+00 : f32
    %19 = vector.broadcast %cst_22 : f32 to vector<8x32xf32>
    %cst_23 = arith.constant 0.000000e+00 : f32
    %20 = vector.broadcast %cst_23 : f32 to vector<8x32xf32>
    %21 = tpu.concatenate %19, %19, %19, %19 in 1 : vector<8x32xf32>, vector<8x32xf32>, vector<8x32xf32>, vector<8x32xf32> -> vector<8x128xf32>
    %22 = arith.mulf %21, %18 : vector<8x128xf32>
    %23 = vector.extract_strided_slice %16 {offsets = [0, 0], sizes = [8, 128], strides = [1, 1]} : vector<128x128xf32> to vector<8x128xf32>
    %cst_24 = arith.constant dense<0.000000e+00> : vector<8x128xf32>
    %24 = tpu.matmul %22, %17, %cst_24 {dimension_numbers = #tpu.dot_dimension_numbers<[1], [0], [0], [1], [0, 0, 1, 1], [], []>} : vector<8x128xf32>, vector<128x128xf32>, vector<8x128xf32> -> vector<8x128xf32>
    %25 = arith.addf %23, %24 : vector<8x128xf32>
    %26 = vector.extract_strided_slice %25 {offsets = [0, 0], sizes = [8, 96], strides = [1, 1]} : vector<8x128xf32> to vector<8x96xf32>
    %27 = arith.negf %26 : vector<8x96xf32>
    %28 = math.exp %27 : vector<8x96xf32>
    %cst_25 = arith.constant 1.000000e+00 : f32
    %29 = vector.broadcast %cst_25 : f32 to vector<8x96xf32>
    %30 = arith.addf %29, %28 : vector<8x96xf32>
    %31 = arith.divf %29, %30 : vector<8x96xf32>
    %32 = vector.extract_strided_slice %25 {offsets = [0, 96], sizes = [8, 32], strides = [1, 1]} : vector<8x128xf32> to vector<8x32xf32>
    %33 = math.tanh %32 : vector<8x32xf32>
    %34 = vector.extract_strided_slice %31 {offsets = [0, 32], sizes = [8, 32], strides = [1, 1]} : vector<8x96xf32> to vector<8x32xf32>
    %35 = arith.mulf %34, %20 : vector<8x32xf32>
    %36 = vector.extract_strided_slice %31 {offsets = [0, 0], sizes = [8, 32], strides = [1, 1]} : vector<8x96xf32> to vector<8x32xf32>
    %37 = arith.mulf %36, %33 : vector<8x32xf32>
    %38 = arith.addf %35, %37 : vector<8x32xf32>
    %39 = vector.extract_strided_slice %31 {offsets = [0, 64], sizes = [8, 32], strides = [1, 1]} : vector<8x96xf32> to vector<8x32xf32>
    %40 = math.tanh %38 : vector<8x32xf32>
    %41 = arith.mulf %39, %40 : vector<8x32xf32>
    %42 = tpu.concatenate %41, %41, %41, %41 in 1 : vector<8x32xf32>, vector<8x32xf32>, vector<8x32xf32>, vector<8x32xf32> -> vector<8x128xf32>
    %43 = arith.mulf %42, %18 : vector<8x128xf32>
    %44 = vector.extract_strided_slice %16 {offsets = [8, 0], sizes = [8, 128], strides = [1, 1]} : vector<128x128xf32> to vector<8x128xf32>
    %cst_26 = arith.constant dense<0.000000e+00> : vector<8x128xf32>
    %45 = tpu.matmul %43, %17, %cst_26 {dimension_numbers = #tpu.dot_dimension_numbers<[1], [0], [0], [1], [0, 0, 1, 1], [], []>} : vector<8x128xf32>, vector<128x128xf32>, vector<8x128xf32> -> vector<8x128xf32>
    %46 = arith.addf %44, %45 : vector<8x128xf32>
    %47 = vector.extract_strided_slice %46 {offsets = [0, 0], sizes = [8, 96], strides = [1, 1]} : vector<8x128xf32> to vector<8x96xf32>
    %48 = arith.negf %47 : vector<8x96xf32>
    %49 = math.exp %48 : vector<8x96xf32>
    %cst_27 = arith.constant 1.000000e+00 : f32
    %50 = vector.broadcast %cst_27 : f32 to vector<8x96xf32>
    %51 = arith.addf %50, %49 : vector<8x96xf32>
    %52 = arith.divf %50, %51 : vector<8x96xf32>
    %53 = vector.extract_strided_slice %46 {offsets = [0, 96], sizes = [8, 32], strides = [1, 1]} : vector<8x128xf32> to vector<8x32xf32>
    %54 = math.tanh %53 : vector<8x32xf32>
    %55 = vector.extract_strided_slice %52 {offsets = [0, 32], sizes = [8, 32], strides = [1, 1]} : vector<8x96xf32> to vector<8x32xf32>
    %56 = arith.mulf %55, %38 : vector<8x32xf32>
    %57 = vector.extract_strided_slice %52 {offsets = [0, 0], sizes = [8, 32], strides = [1, 1]} : vector<8x96xf32> to vector<8x32xf32>
    %58 = arith.mulf %57, %54 : vector<8x32xf32>
    %59 = arith.addf %56, %58 : vector<8x32xf32>
    %60 = vector.extract_strided_slice %52 {offsets = [0, 64], sizes = [8, 32], strides = [1, 1]} : vector<8x96xf32> to vector<8x32xf32>
    %61 = math.tanh %59 : vector<8x32xf32>
    %62 = arith.mulf %60, %61 : vector<8x32xf32>
    %63 = tpu.concatenate %62, %62, %62, %62 in 1 : vector<8x32xf32>, vector<8x32xf32>, vector<8x32xf32>, vector<8x32xf32> -> vector<8x128xf32>
    %64 = arith.mulf %63, %18 : vector<8x128xf32>
    %65 = vector.extract_strided_slice %16 {offsets = [16, 0], sizes = [8, 128], strides = [1, 1]} : vector<128x128xf32> to vector<8x128xf32>
    %cst_28 = arith.constant dense<0.000000e+00> : vector<8x128xf32>
    %66 = tpu.matmul %64, %17, %cst_28 {dimension_numbers = #tpu.dot_dimension_numbers<[1], [0], [0], [1], [0, 0, 1, 1], [], []>} : vector<8x128xf32>, vector<128x128xf32>, vector<8x128xf32> -> vector<8x128xf32>
    %67 = arith.addf %65, %66 : vector<8x128xf32>
    %68 = vector.extract_strided_slice %67 {offsets = [0, 0], sizes = [8, 96], strides = [1, 1]} : vector<8x128xf32> to vector<8x96xf32>
    %69 = arith.negf %68 : vector<8x96xf32>
    %70 = math.exp %69 : vector<8x96xf32>
    %cst_29 = arith.constant 1.000000e+00 : f32
    %71 = vector.broadcast %cst_29 : f32 to vector<8x96xf32>
    %72 = arith.addf %71, %70 : vector<8x96xf32>
    %73 = arith.divf %71, %72 : vector<8x96xf32>
    %74 = vector.extract_strided_slice %67 {offsets = [0, 96], sizes = [8, 32], strides = [1, 1]} : vector<8x128xf32> to vector<8x32xf32>
    %75 = math.tanh %74 : vector<8x32xf32>
    %76 = vector.extract_strided_slice %73 {offsets = [0, 32], sizes = [8, 32], strides = [1, 1]} : vector<8x96xf32> to vector<8x32xf32>
    %77 = arith.mulf %76, %59 : vector<8x32xf32>
    %78 = vector.extract_strided_slice %73 {offsets = [0, 0], sizes = [8, 32], strides = [1, 1]} : vector<8x96xf32> to vector<8x32xf32>
    %79 = arith.mulf %78, %75 : vector<8x32xf32>
    %80 = arith.addf %77, %79 : vector<8x32xf32>
    %81 = vector.extract_strided_slice %73 {offsets = [0, 64], sizes = [8, 32], strides = [1, 1]} : vector<8x96xf32> to vector<8x32xf32>
    %82 = math.tanh %80 : vector<8x32xf32>
    %83 = arith.mulf %81, %82 : vector<8x32xf32>
    %84 = tpu.concatenate %83, %83, %83, %83 in 1 : vector<8x32xf32>, vector<8x32xf32>, vector<8x32xf32>, vector<8x32xf32> -> vector<8x128xf32>
    %85 = arith.mulf %84, %18 : vector<8x128xf32>
    %86 = vector.extract_strided_slice %16 {offsets = [24, 0], sizes = [8, 128], strides = [1, 1]} : vector<128x128xf32> to vector<8x128xf32>
    %cst_30 = arith.constant dense<0.000000e+00> : vector<8x128xf32>
    %87 = tpu.matmul %85, %17, %cst_30 {dimension_numbers = #tpu.dot_dimension_numbers<[1], [0], [0], [1], [0, 0, 1, 1], [], []>} : vector<8x128xf32>, vector<128x128xf32>, vector<8x128xf32> -> vector<8x128xf32>
    %88 = arith.addf %86, %87 : vector<8x128xf32>
    %89 = vector.extract_strided_slice %88 {offsets = [0, 0], sizes = [8, 96], strides = [1, 1]} : vector<8x128xf32> to vector<8x96xf32>
    %90 = arith.negf %89 : vector<8x96xf32>
    %91 = math.exp %90 : vector<8x96xf32>
    %cst_31 = arith.constant 1.000000e+00 : f32
    %92 = vector.broadcast %cst_31 : f32 to vector<8x96xf32>
    %93 = arith.addf %92, %91 : vector<8x96xf32>
    %94 = arith.divf %92, %93 : vector<8x96xf32>
    %95 = vector.extract_strided_slice %88 {offsets = [0, 96], sizes = [8, 32], strides = [1, 1]} : vector<8x128xf32> to vector<8x32xf32>
    %96 = math.tanh %95 : vector<8x32xf32>
    %97 = vector.extract_strided_slice %94 {offsets = [0, 32], sizes = [8, 32], strides = [1, 1]} : vector<8x96xf32> to vector<8x32xf32>
    %98 = arith.mulf %97, %80 : vector<8x32xf32>
    %99 = vector.extract_strided_slice %94 {offsets = [0, 0], sizes = [8, 32], strides = [1, 1]} : vector<8x96xf32> to vector<8x32xf32>
    %100 = arith.mulf %99, %96 : vector<8x32xf32>
    %101 = arith.addf %98, %100 : vector<8x32xf32>
    %102 = vector.extract_strided_slice %94 {offsets = [0, 64], sizes = [8, 32], strides = [1, 1]} : vector<8x96xf32> to vector<8x32xf32>
    %103 = math.tanh %101 : vector<8x32xf32>
    %104 = arith.mulf %102, %103 : vector<8x32xf32>
    %105 = tpu.concatenate %104, %104, %104, %104 in 1 : vector<8x32xf32>, vector<8x32xf32>, vector<8x32xf32>, vector<8x32xf32> -> vector<8x128xf32>
    %106 = arith.mulf %105, %18 : vector<8x128xf32>
    %107 = vector.extract_strided_slice %16 {offsets = [32, 0], sizes = [8, 128], strides = [1, 1]} : vector<128x128xf32> to vector<8x128xf32>
    %cst_32 = arith.constant dense<0.000000e+00> : vector<8x128xf32>
    %108 = tpu.matmul %106, %17, %cst_32 {dimension_numbers = #tpu.dot_dimension_numbers<[1], [0], [0], [1], [0, 0, 1, 1], [], []>} : vector<8x128xf32>, vector<128x128xf32>, vector<8x128xf32> -> vector<8x128xf32>
    %109 = arith.addf %107, %108 : vector<8x128xf32>
    %110 = vector.extract_strided_slice %109 {offsets = [0, 0], sizes = [8, 96], strides = [1, 1]} : vector<8x128xf32> to vector<8x96xf32>
    %111 = arith.negf %110 : vector<8x96xf32>
    %112 = math.exp %111 : vector<8x96xf32>
    %cst_33 = arith.constant 1.000000e+00 : f32
    %113 = vector.broadcast %cst_33 : f32 to vector<8x96xf32>
    %114 = arith.addf %113, %112 : vector<8x96xf32>
    %115 = arith.divf %113, %114 : vector<8x96xf32>
    %116 = vector.extract_strided_slice %109 {offsets = [0, 96], sizes = [8, 32], strides = [1, 1]} : vector<8x128xf32> to vector<8x32xf32>
    %117 = math.tanh %116 : vector<8x32xf32>
    %118 = vector.extract_strided_slice %115 {offsets = [0, 32], sizes = [8, 32], strides = [1, 1]} : vector<8x96xf32> to vector<8x32xf32>
    %119 = arith.mulf %118, %101 : vector<8x32xf32>
    %120 = vector.extract_strided_slice %115 {offsets = [0, 0], sizes = [8, 32], strides = [1, 1]} : vector<8x96xf32> to vector<8x32xf32>
    %121 = arith.mulf %120, %117 : vector<8x32xf32>
    %122 = arith.addf %119, %121 : vector<8x32xf32>
    %123 = vector.extract_strided_slice %115 {offsets = [0, 64], sizes = [8, 32], strides = [1, 1]} : vector<8x96xf32> to vector<8x32xf32>
    %124 = math.tanh %122 : vector<8x32xf32>
    %125 = arith.mulf %123, %124 : vector<8x32xf32>
    %126 = tpu.concatenate %125, %125, %125, %125 in 1 : vector<8x32xf32>, vector<8x32xf32>, vector<8x32xf32>, vector<8x32xf32> -> vector<8x128xf32>
    %127 = arith.mulf %126, %18 : vector<8x128xf32>
    %128 = vector.extract_strided_slice %16 {offsets = [40, 0], sizes = [8, 128], strides = [1, 1]} : vector<128x128xf32> to vector<8x128xf32>
    %cst_34 = arith.constant dense<0.000000e+00> : vector<8x128xf32>
    %129 = tpu.matmul %127, %17, %cst_34 {dimension_numbers = #tpu.dot_dimension_numbers<[1], [0], [0], [1], [0, 0, 1, 1], [], []>} : vector<8x128xf32>, vector<128x128xf32>, vector<8x128xf32> -> vector<8x128xf32>
    %130 = arith.addf %128, %129 : vector<8x128xf32>
    %131 = vector.extract_strided_slice %130 {offsets = [0, 0], sizes = [8, 96], strides = [1, 1]} : vector<8x128xf32> to vector<8x96xf32>
    %132 = arith.negf %131 : vector<8x96xf32>
    %133 = math.exp %132 : vector<8x96xf32>
    %cst_35 = arith.constant 1.000000e+00 : f32
    %134 = vector.broadcast %cst_35 : f32 to vector<8x96xf32>
    %135 = arith.addf %134, %133 : vector<8x96xf32>
    %136 = arith.divf %134, %135 : vector<8x96xf32>
    %137 = vector.extract_strided_slice %130 {offsets = [0, 96], sizes = [8, 32], strides = [1, 1]} : vector<8x128xf32> to vector<8x32xf32>
    %138 = math.tanh %137 : vector<8x32xf32>
    %139 = vector.extract_strided_slice %136 {offsets = [0, 32], sizes = [8, 32], strides = [1, 1]} : vector<8x96xf32> to vector<8x32xf32>
    %140 = arith.mulf %139, %122 : vector<8x32xf32>
    %141 = vector.extract_strided_slice %136 {offsets = [0, 0], sizes = [8, 32], strides = [1, 1]} : vector<8x96xf32> to vector<8x32xf32>
    %142 = arith.mulf %141, %138 : vector<8x32xf32>
    %143 = arith.addf %140, %142 : vector<8x32xf32>
    %144 = vector.extract_strided_slice %136 {offsets = [0, 64], sizes = [8, 32], strides = [1, 1]} : vector<8x96xf32> to vector<8x32xf32>
    %145 = math.tanh %143 : vector<8x32xf32>
    %146 = arith.mulf %144, %145 : vector<8x32xf32>
    %147 = tpu.concatenate %146, %146, %146, %146 in 1 : vector<8x32xf32>, vector<8x32xf32>, vector<8x32xf32>, vector<8x32xf32> -> vector<8x128xf32>
    %148 = arith.mulf %147, %18 : vector<8x128xf32>
    %149 = vector.extract_strided_slice %16 {offsets = [48, 0], sizes = [8, 128], strides = [1, 1]} : vector<128x128xf32> to vector<8x128xf32>
    %cst_36 = arith.constant dense<0.000000e+00> : vector<8x128xf32>
    %150 = tpu.matmul %148, %17, %cst_36 {dimension_numbers = #tpu.dot_dimension_numbers<[1], [0], [0], [1], [0, 0, 1, 1], [], []>} : vector<8x128xf32>, vector<128x128xf32>, vector<8x128xf32> -> vector<8x128xf32>
    %151 = arith.addf %149, %150 : vector<8x128xf32>
    %152 = vector.extract_strided_slice %151 {offsets = [0, 0], sizes = [8, 96], strides = [1, 1]} : vector<8x128xf32> to vector<8x96xf32>
    %153 = arith.negf %152 : vector<8x96xf32>
    %154 = math.exp %153 : vector<8x96xf32>
    %cst_37 = arith.constant 1.000000e+00 : f32
    %155 = vector.broadcast %cst_37 : f32 to vector<8x96xf32>
    %156 = arith.addf %155, %154 : vector<8x96xf32>
    %157 = arith.divf %155, %156 : vector<8x96xf32>
    %158 = vector.extract_strided_slice %151 {offsets = [0, 96], sizes = [8, 32], strides = [1, 1]} : vector<8x128xf32> to vector<8x32xf32>
    %159 = math.tanh %158 : vector<8x32xf32>
    %160 = vector.extract_strided_slice %157 {offsets = [0, 32], sizes = [8, 32], strides = [1, 1]} : vector<8x96xf32> to vector<8x32xf32>
    %161 = arith.mulf %160, %143 : vector<8x32xf32>
    %162 = vector.extract_strided_slice %157 {offsets = [0, 0], sizes = [8, 32], strides = [1, 1]} : vector<8x96xf32> to vector<8x32xf32>
    %163 = arith.mulf %162, %159 : vector<8x32xf32>
    %164 = arith.addf %161, %163 : vector<8x32xf32>
    %165 = vector.extract_strided_slice %157 {offsets = [0, 64], sizes = [8, 32], strides = [1, 1]} : vector<8x96xf32> to vector<8x32xf32>
    %166 = math.tanh %164 : vector<8x32xf32>
    %167 = arith.mulf %165, %166 : vector<8x32xf32>
    %168 = tpu.concatenate %167, %167, %167, %167 in 1 : vector<8x32xf32>, vector<8x32xf32>, vector<8x32xf32>, vector<8x32xf32> -> vector<8x128xf32>
    %169 = arith.mulf %168, %18 : vector<8x128xf32>
    %170 = vector.extract_strided_slice %16 {offsets = [56, 0], sizes = [8, 128], strides = [1, 1]} : vector<128x128xf32> to vector<8x128xf32>
    %cst_38 = arith.constant dense<0.000000e+00> : vector<8x128xf32>
    %171 = tpu.matmul %169, %17, %cst_38 {dimension_numbers = #tpu.dot_dimension_numbers<[1], [0], [0], [1], [0, 0, 1, 1], [], []>} : vector<8x128xf32>, vector<128x128xf32>, vector<8x128xf32> -> vector<8x128xf32>
    %172 = arith.addf %170, %171 : vector<8x128xf32>
    %173 = vector.extract_strided_slice %172 {offsets = [0, 0], sizes = [8, 96], strides = [1, 1]} : vector<8x128xf32> to vector<8x96xf32>
    %174 = arith.negf %173 : vector<8x96xf32>
    %175 = math.exp %174 : vector<8x96xf32>
    %cst_39 = arith.constant 1.000000e+00 : f32
    %176 = vector.broadcast %cst_39 : f32 to vector<8x96xf32>
    %177 = arith.addf %176, %175 : vector<8x96xf32>
    %178 = arith.divf %176, %177 : vector<8x96xf32>
    %179 = vector.extract_strided_slice %172 {offsets = [0, 96], sizes = [8, 32], strides = [1, 1]} : vector<8x128xf32> to vector<8x32xf32>
    %180 = math.tanh %179 : vector<8x32xf32>
    %181 = vector.extract_strided_slice %178 {offsets = [0, 32], sizes = [8, 32], strides = [1, 1]} : vector<8x96xf32> to vector<8x32xf32>
    %182 = arith.mulf %181, %164 : vector<8x32xf32>
    %183 = vector.extract_strided_slice %178 {offsets = [0, 0], sizes = [8, 32], strides = [1, 1]} : vector<8x96xf32> to vector<8x32xf32>
    %184 = arith.mulf %183, %180 : vector<8x32xf32>
    %185 = arith.addf %182, %184 : vector<8x32xf32>
    %186 = vector.extract_strided_slice %178 {offsets = [0, 64], sizes = [8, 32], strides = [1, 1]} : vector<8x96xf32> to vector<8x32xf32>
    %187 = math.tanh %185 : vector<8x32xf32>
    %188 = arith.mulf %186, %187 : vector<8x32xf32>
    %189 = tpu.concatenate %188, %188, %188, %188 in 1 : vector<8x32xf32>, vector<8x32xf32>, vector<8x32xf32>, vector<8x32xf32> -> vector<8x128xf32>
    %190 = arith.mulf %189, %18 : vector<8x128xf32>
    %191 = vector.extract_strided_slice %16 {offsets = [64, 0], sizes = [8, 128], strides = [1, 1]} : vector<128x128xf32> to vector<8x128xf32>
    %cst_40 = arith.constant dense<0.000000e+00> : vector<8x128xf32>
    %192 = tpu.matmul %190, %17, %cst_40 {dimension_numbers = #tpu.dot_dimension_numbers<[1], [0], [0], [1], [0, 0, 1, 1], [], []>} : vector<8x128xf32>, vector<128x128xf32>, vector<8x128xf32> -> vector<8x128xf32>
    %193 = arith.addf %191, %192 : vector<8x128xf32>
    %194 = vector.extract_strided_slice %193 {offsets = [0, 0], sizes = [8, 96], strides = [1, 1]} : vector<8x128xf32> to vector<8x96xf32>
    %195 = arith.negf %194 : vector<8x96xf32>
    %196 = math.exp %195 : vector<8x96xf32>
    %cst_41 = arith.constant 1.000000e+00 : f32
    %197 = vector.broadcast %cst_41 : f32 to vector<8x96xf32>
    %198 = arith.addf %197, %196 : vector<8x96xf32>
    %199 = arith.divf %197, %198 : vector<8x96xf32>
    %200 = vector.extract_strided_slice %193 {offsets = [0, 96], sizes = [8, 32], strides = [1, 1]} : vector<8x128xf32> to vector<8x32xf32>
    %201 = math.tanh %200 : vector<8x32xf32>
    %202 = vector.extract_strided_slice %199 {offsets = [0, 32], sizes = [8, 32], strides = [1, 1]} : vector<8x96xf32> to vector<8x32xf32>
    %203 = arith.mulf %202, %185 : vector<8x32xf32>
    %204 = vector.extract_strided_slice %199 {offsets = [0, 0], sizes = [8, 32], strides = [1, 1]} : vector<8x96xf32> to vector<8x32xf32>
    %205 = arith.mulf %204, %201 : vector<8x32xf32>
    %206 = arith.addf %203, %205 : vector<8x32xf32>
    %207 = vector.extract_strided_slice %199 {offsets = [0, 64], sizes = [8, 32], strides = [1, 1]} : vector<8x96xf32> to vector<8x32xf32>
    %208 = math.tanh %206 : vector<8x32xf32>
    %209 = arith.mulf %207, %208 : vector<8x32xf32>
    %210 = tpu.concatenate %209, %209, %209, %209 in 1 : vector<8x32xf32>, vector<8x32xf32>, vector<8x32xf32>, vector<8x32xf32> -> vector<8x128xf32>
    %211 = arith.mulf %210, %18 : vector<8x128xf32>
    %212 = vector.extract_strided_slice %16 {offsets = [72, 0], sizes = [8, 128], strides = [1, 1]} : vector<128x128xf32> to vector<8x128xf32>
    %cst_42 = arith.constant dense<0.000000e+00> : vector<8x128xf32>
    %213 = tpu.matmul %211, %17, %cst_42 {dimension_numbers = #tpu.dot_dimension_numbers<[1], [0], [0], [1], [0, 0, 1, 1], [], []>} : vector<8x128xf32>, vector<128x128xf32>, vector<8x128xf32> -> vector<8x128xf32>
    %214 = arith.addf %212, %213 : vector<8x128xf32>
    %215 = vector.extract_strided_slice %214 {offsets = [0, 0], sizes = [8, 96], strides = [1, 1]} : vector<8x128xf32> to vector<8x96xf32>
    %216 = arith.negf %215 : vector<8x96xf32>
    %217 = math.exp %216 : vector<8x96xf32>
    %cst_43 = arith.constant 1.000000e+00 : f32
    %218 = vector.broadcast %cst_43 : f32 to vector<8x96xf32>
    %219 = arith.addf %218, %217 : vector<8x96xf32>
    %220 = arith.divf %218, %219 : vector<8x96xf32>
    %221 = vector.extract_strided_slice %214 {offsets = [0, 96], sizes = [8, 32], strides = [1, 1]} : vector<8x128xf32> to vector<8x32xf32>
    %222 = math.tanh %221 : vector<8x32xf32>
    %223 = vector.extract_strided_slice %220 {offsets = [0, 32], sizes = [8, 32], strides = [1, 1]} : vector<8x96xf32> to vector<8x32xf32>
    %224 = arith.mulf %223, %206 : vector<8x32xf32>
    %225 = vector.extract_strided_slice %220 {offsets = [0, 0], sizes = [8, 32], strides = [1, 1]} : vector<8x96xf32> to vector<8x32xf32>
    %226 = arith.mulf %225, %222 : vector<8x32xf32>
    %227 = arith.addf %224, %226 : vector<8x32xf32>
    %228 = vector.extract_strided_slice %220 {offsets = [0, 64], sizes = [8, 32], strides = [1, 1]} : vector<8x96xf32> to vector<8x32xf32>
    %229 = math.tanh %227 : vector<8x32xf32>
    %230 = arith.mulf %228, %229 : vector<8x32xf32>
    %231 = tpu.concatenate %230, %230, %230, %230 in 1 : vector<8x32xf32>, vector<8x32xf32>, vector<8x32xf32>, vector<8x32xf32> -> vector<8x128xf32>
    %232 = arith.mulf %231, %18 : vector<8x128xf32>
    %233 = vector.extract_strided_slice %16 {offsets = [80, 0], sizes = [8, 128], strides = [1, 1]} : vector<128x128xf32> to vector<8x128xf32>
    %cst_44 = arith.constant dense<0.000000e+00> : vector<8x128xf32>
    %234 = tpu.matmul %232, %17, %cst_44 {dimension_numbers = #tpu.dot_dimension_numbers<[1], [0], [0], [1], [0, 0, 1, 1], [], []>} : vector<8x128xf32>, vector<128x128xf32>, vector<8x128xf32> -> vector<8x128xf32>
    %235 = arith.addf %233, %234 : vector<8x128xf32>
    %236 = vector.extract_strided_slice %235 {offsets = [0, 0], sizes = [8, 96], strides = [1, 1]} : vector<8x128xf32> to vector<8x96xf32>
    %237 = arith.negf %236 : vector<8x96xf32>
    %238 = math.exp %237 : vector<8x96xf32>
    %cst_45 = arith.constant 1.000000e+00 : f32
    %239 = vector.broadcast %cst_45 : f32 to vector<8x96xf32>
    %240 = arith.addf %239, %238 : vector<8x96xf32>
    %241 = arith.divf %239, %240 : vector<8x96xf32>
    %242 = vector.extract_strided_slice %235 {offsets = [0, 96], sizes = [8, 32], strides = [1, 1]} : vector<8x128xf32> to vector<8x32xf32>
    %243 = math.tanh %242 : vector<8x32xf32>
    %244 = vector.extract_strided_slice %241 {offsets = [0, 32], sizes = [8, 32], strides = [1, 1]} : vector<8x96xf32> to vector<8x32xf32>
    %245 = arith.mulf %244, %227 : vector<8x32xf32>
    %246 = vector.extract_strided_slice %241 {offsets = [0, 0], sizes = [8, 32], strides = [1, 1]} : vector<8x96xf32> to vector<8x32xf32>
    %247 = arith.mulf %246, %243 : vector<8x32xf32>
    %248 = arith.addf %245, %247 : vector<8x32xf32>
    %249 = vector.extract_strided_slice %241 {offsets = [0, 64], sizes = [8, 32], strides = [1, 1]} : vector<8x96xf32> to vector<8x32xf32>
    %250 = math.tanh %248 : vector<8x32xf32>
    %251 = arith.mulf %249, %250 : vector<8x32xf32>
    %252 = tpu.concatenate %251, %251, %251, %251 in 1 : vector<8x32xf32>, vector<8x32xf32>, vector<8x32xf32>, vector<8x32xf32> -> vector<8x128xf32>
    %253 = arith.mulf %252, %18 : vector<8x128xf32>
    %254 = vector.extract_strided_slice %16 {offsets = [88, 0], sizes = [8, 128], strides = [1, 1]} : vector<128x128xf32> to vector<8x128xf32>
    %cst_46 = arith.constant dense<0.000000e+00> : vector<8x128xf32>
    %255 = tpu.matmul %253, %17, %cst_46 {dimension_numbers = #tpu.dot_dimension_numbers<[1], [0], [0], [1], [0, 0, 1, 1], [], []>} : vector<8x128xf32>, vector<128x128xf32>, vector<8x128xf32> -> vector<8x128xf32>
    %256 = arith.addf %254, %255 : vector<8x128xf32>
    %257 = vector.extract_strided_slice %256 {offsets = [0, 0], sizes = [8, 96], strides = [1, 1]} : vector<8x128xf32> to vector<8x96xf32>
    %258 = arith.negf %257 : vector<8x96xf32>
    %259 = math.exp %258 : vector<8x96xf32>
    %cst_47 = arith.constant 1.000000e+00 : f32
    %260 = vector.broadcast %cst_47 : f32 to vector<8x96xf32>
    %261 = arith.addf %260, %259 : vector<8x96xf32>
    %262 = arith.divf %260, %261 : vector<8x96xf32>
    %263 = vector.extract_strided_slice %256 {offsets = [0, 96], sizes = [8, 32], strides = [1, 1]} : vector<8x128xf32> to vector<8x32xf32>
    %264 = math.tanh %263 : vector<8x32xf32>
    %265 = vector.extract_strided_slice %262 {offsets = [0, 32], sizes = [8, 32], strides = [1, 1]} : vector<8x96xf32> to vector<8x32xf32>
    %266 = arith.mulf %265, %248 : vector<8x32xf32>
    %267 = vector.extract_strided_slice %262 {offsets = [0, 0], sizes = [8, 32], strides = [1, 1]} : vector<8x96xf32> to vector<8x32xf32>
    %268 = arith.mulf %267, %264 : vector<8x32xf32>
    %269 = arith.addf %266, %268 : vector<8x32xf32>
    %270 = vector.extract_strided_slice %262 {offsets = [0, 64], sizes = [8, 32], strides = [1, 1]} : vector<8x96xf32> to vector<8x32xf32>
    %271 = math.tanh %269 : vector<8x32xf32>
    %272 = arith.mulf %270, %271 : vector<8x32xf32>
    %273 = tpu.concatenate %272, %272, %272, %272 in 1 : vector<8x32xf32>, vector<8x32xf32>, vector<8x32xf32>, vector<8x32xf32> -> vector<8x128xf32>
    %274 = arith.mulf %273, %18 : vector<8x128xf32>
    %275 = vector.extract_strided_slice %16 {offsets = [96, 0], sizes = [8, 128], strides = [1, 1]} : vector<128x128xf32> to vector<8x128xf32>
    %cst_48 = arith.constant dense<0.000000e+00> : vector<8x128xf32>
    %276 = tpu.matmul %274, %17, %cst_48 {dimension_numbers = #tpu.dot_dimension_numbers<[1], [0], [0], [1], [0, 0, 1, 1], [], []>} : vector<8x128xf32>, vector<128x128xf32>, vector<8x128xf32> -> vector<8x128xf32>
    %277 = arith.addf %275, %276 : vector<8x128xf32>
    %278 = vector.extract_strided_slice %277 {offsets = [0, 0], sizes = [8, 96], strides = [1, 1]} : vector<8x128xf32> to vector<8x96xf32>
    %279 = arith.negf %278 : vector<8x96xf32>
    %280 = math.exp %279 : vector<8x96xf32>
    %cst_49 = arith.constant 1.000000e+00 : f32
    %281 = vector.broadcast %cst_49 : f32 to vector<8x96xf32>
    %282 = arith.addf %281, %280 : vector<8x96xf32>
    %283 = arith.divf %281, %282 : vector<8x96xf32>
    %284 = vector.extract_strided_slice %277 {offsets = [0, 96], sizes = [8, 32], strides = [1, 1]} : vector<8x128xf32> to vector<8x32xf32>
    %285 = math.tanh %284 : vector<8x32xf32>
    %286 = vector.extract_strided_slice %283 {offsets = [0, 32], sizes = [8, 32], strides = [1, 1]} : vector<8x96xf32> to vector<8x32xf32>
    %287 = arith.mulf %286, %269 : vector<8x32xf32>
    %288 = vector.extract_strided_slice %283 {offsets = [0, 0], sizes = [8, 32], strides = [1, 1]} : vector<8x96xf32> to vector<8x32xf32>
    %289 = arith.mulf %288, %285 : vector<8x32xf32>
    %290 = arith.addf %287, %289 : vector<8x32xf32>
    %291 = vector.extract_strided_slice %283 {offsets = [0, 64], sizes = [8, 32], strides = [1, 1]} : vector<8x96xf32> to vector<8x32xf32>
    %292 = math.tanh %290 : vector<8x32xf32>
    %293 = arith.mulf %291, %292 : vector<8x32xf32>
    %294 = tpu.concatenate %293, %293, %293, %293 in 1 : vector<8x32xf32>, vector<8x32xf32>, vector<8x32xf32>, vector<8x32xf32> -> vector<8x128xf32>
    %295 = arith.mulf %294, %18 : vector<8x128xf32>
    %296 = vector.extract_strided_slice %16 {offsets = [104, 0], sizes = [8, 128], strides = [1, 1]} : vector<128x128xf32> to vector<8x128xf32>
    %cst_50 = arith.constant dense<0.000000e+00> : vector<8x128xf32>
    %297 = tpu.matmul %295, %17, %cst_50 {dimension_numbers = #tpu.dot_dimension_numbers<[1], [0], [0], [1], [0, 0, 1, 1], [], []>} : vector<8x128xf32>, vector<128x128xf32>, vector<8x128xf32> -> vector<8x128xf32>
    %298 = arith.addf %296, %297 : vector<8x128xf32>
    %299 = vector.extract_strided_slice %298 {offsets = [0, 0], sizes = [8, 96], strides = [1, 1]} : vector<8x128xf32> to vector<8x96xf32>
    %300 = arith.negf %299 : vector<8x96xf32>
    %301 = math.exp %300 : vector<8x96xf32>
    %cst_51 = arith.constant 1.000000e+00 : f32
    %302 = vector.broadcast %cst_51 : f32 to vector<8x96xf32>
    %303 = arith.addf %302, %301 : vector<8x96xf32>
    %304 = arith.divf %302, %303 : vector<8x96xf32>
    %305 = vector.extract_strided_slice %298 {offsets = [0, 96], sizes = [8, 32], strides = [1, 1]} : vector<8x128xf32> to vector<8x32xf32>
    %306 = math.tanh %305 : vector<8x32xf32>
    %307 = vector.extract_strided_slice %304 {offsets = [0, 32], sizes = [8, 32], strides = [1, 1]} : vector<8x96xf32> to vector<8x32xf32>
    %308 = arith.mulf %307, %290 : vector<8x32xf32>
    %309 = vector.extract_strided_slice %304 {offsets = [0, 0], sizes = [8, 32], strides = [1, 1]} : vector<8x96xf32> to vector<8x32xf32>
    %310 = arith.mulf %309, %306 : vector<8x32xf32>
    %311 = arith.addf %308, %310 : vector<8x32xf32>
    %312 = vector.extract_strided_slice %304 {offsets = [0, 64], sizes = [8, 32], strides = [1, 1]} : vector<8x96xf32> to vector<8x32xf32>
    %313 = math.tanh %311 : vector<8x32xf32>
    %314 = arith.mulf %312, %313 : vector<8x32xf32>
    %315 = tpu.concatenate %314, %314, %314, %314 in 1 : vector<8x32xf32>, vector<8x32xf32>, vector<8x32xf32>, vector<8x32xf32> -> vector<8x128xf32>
    %316 = arith.mulf %315, %18 : vector<8x128xf32>
    %317 = vector.extract_strided_slice %16 {offsets = [112, 0], sizes = [8, 128], strides = [1, 1]} : vector<128x128xf32> to vector<8x128xf32>
    %cst_52 = arith.constant dense<0.000000e+00> : vector<8x128xf32>
    %318 = tpu.matmul %316, %17, %cst_52 {dimension_numbers = #tpu.dot_dimension_numbers<[1], [0], [0], [1], [0, 0, 1, 1], [], []>} : vector<8x128xf32>, vector<128x128xf32>, vector<8x128xf32> -> vector<8x128xf32>
    %319 = arith.addf %317, %318 : vector<8x128xf32>
    %320 = vector.extract_strided_slice %319 {offsets = [0, 0], sizes = [8, 96], strides = [1, 1]} : vector<8x128xf32> to vector<8x96xf32>
    %321 = arith.negf %320 : vector<8x96xf32>
    %322 = math.exp %321 : vector<8x96xf32>
    %cst_53 = arith.constant 1.000000e+00 : f32
    %323 = vector.broadcast %cst_53 : f32 to vector<8x96xf32>
    %324 = arith.addf %323, %322 : vector<8x96xf32>
    %325 = arith.divf %323, %324 : vector<8x96xf32>
    %326 = vector.extract_strided_slice %319 {offsets = [0, 96], sizes = [8, 32], strides = [1, 1]} : vector<8x128xf32> to vector<8x32xf32>
    %327 = math.tanh %326 : vector<8x32xf32>
    %328 = vector.extract_strided_slice %325 {offsets = [0, 32], sizes = [8, 32], strides = [1, 1]} : vector<8x96xf32> to vector<8x32xf32>
    %329 = arith.mulf %328, %311 : vector<8x32xf32>
    %330 = vector.extract_strided_slice %325 {offsets = [0, 0], sizes = [8, 32], strides = [1, 1]} : vector<8x96xf32> to vector<8x32xf32>
    %331 = arith.mulf %330, %327 : vector<8x32xf32>
    %332 = arith.addf %329, %331 : vector<8x32xf32>
    %333 = vector.extract_strided_slice %325 {offsets = [0, 64], sizes = [8, 32], strides = [1, 1]} : vector<8x96xf32> to vector<8x32xf32>
    %334 = math.tanh %332 : vector<8x32xf32>
    %335 = arith.mulf %333, %334 : vector<8x32xf32>
    %336 = tpu.concatenate %335, %335, %335, %335 in 1 : vector<8x32xf32>, vector<8x32xf32>, vector<8x32xf32>, vector<8x32xf32> -> vector<8x128xf32>
    %337 = arith.mulf %336, %18 : vector<8x128xf32>
    %338 = vector.extract_strided_slice %16 {offsets = [120, 0], sizes = [8, 128], strides = [1, 1]} : vector<128x128xf32> to vector<8x128xf32>
    %cst_54 = arith.constant dense<0.000000e+00> : vector<8x128xf32>
    %339 = tpu.matmul %337, %17, %cst_54 {dimension_numbers = #tpu.dot_dimension_numbers<[1], [0], [0], [1], [0, 0, 1, 1], [], []>} : vector<8x128xf32>, vector<128x128xf32>, vector<8x128xf32> -> vector<8x128xf32>
    %340 = arith.addf %338, %339 : vector<8x128xf32>
    %341 = vector.extract_strided_slice %340 {offsets = [0, 0], sizes = [8, 96], strides = [1, 1]} : vector<8x128xf32> to vector<8x96xf32>
    %342 = arith.negf %341 : vector<8x96xf32>
    %343 = math.exp %342 : vector<8x96xf32>
    %cst_55 = arith.constant 1.000000e+00 : f32
    %344 = vector.broadcast %cst_55 : f32 to vector<8x96xf32>
    %345 = arith.addf %344, %343 : vector<8x96xf32>
    %346 = arith.divf %344, %345 : vector<8x96xf32>
    %347 = vector.extract_strided_slice %340 {offsets = [0, 96], sizes = [8, 32], strides = [1, 1]} : vector<8x128xf32> to vector<8x32xf32>
    %348 = math.tanh %347 : vector<8x32xf32>
    %349 = vector.extract_strided_slice %346 {offsets = [0, 32], sizes = [8, 32], strides = [1, 1]} : vector<8x96xf32> to vector<8x32xf32>
    %350 = arith.mulf %349, %332 : vector<8x32xf32>
    %351 = vector.extract_strided_slice %346 {offsets = [0, 0], sizes = [8, 32], strides = [1, 1]} : vector<8x96xf32> to vector<8x32xf32>
    %352 = arith.mulf %351, %348 : vector<8x32xf32>
    %353 = arith.addf %350, %352 : vector<8x32xf32>
    %354 = vector.extract_strided_slice %346 {offsets = [0, 64], sizes = [8, 32], strides = [1, 1]} : vector<8x96xf32> to vector<8x32xf32>
    %355 = math.tanh %353 : vector<8x32xf32>
    %356 = arith.mulf %354, %355 : vector<8x32xf32>
    %c0_56 = arith.constant 0 : index
    %c0_57 = arith.constant 0 : index
    %357 = vector.load %arg6[%c0_56, %c0_57] : memref<8x32xf32, #tpu.memory_space<vmem>>, vector<8x32xf32>
    tpu.vector_store %arg6[%c0_56, %c0_57], %356 {strides = array<i32>} : memref<8x32xf32, #tpu.memory_space<vmem>>, vector<8x32xf32>,
    %c0_58 = arith.constant 0 : index
    %c0_59 = arith.constant 0 : index
    %358 = vector.load %arg7[%c0_58, %c0_59] : memref<8x32xf32, #tpu.memory_space<vmem>>, vector<8x32xf32>
    tpu.vector_store %arg7[%c0_58, %c0_59], %353 {strides = array<i32>} : memref<8x32xf32, #tpu.memory_space<vmem>>, vector<8x32xf32>,
    return
  }
}

</mosaic_0001>

<bundles_post_ra>
// kernel: tpu_custom_call.1
= control target key start
LH: loop header
LB: loop body
LE: loop exit
PB: predicated region body
PF: predicated region fallthrough
CT: control target
= control target key end

     0   :  { %13 = vsyncpa [#allocation3], 0  ;;  %s3894_s0 = inlined_call_operand.vmem [shape: f32[32,4], index: 0, kind: input, shape index: {}]   ;;  %s3895_s1 = inlined_call_operand.vmem [shape: f32[4,128,32], index: 1, kind: input, shape index: {}]   ;;  %s3896_s2 = inlined_call_operand.vmem [shape: f32[128,4], index: 2, kind: input, shape index: {}]   ;;  %s3897_s3 = inlined_call_operand.vmem [shape: f32[8,128], index: 3, kind: input, shape index: {}]   ;;  %s3898_s4 = inlined_call_operand.vmem [shape: f32[20,128], index: 4, kind: input, shape index: {}]   ;;  %s3899_s5 = inlined_call_operand.vmem [shape: f32[128,128], index: 5, kind: input, shape index: {}]   ;;  %s3900_s6 = inlined_call_operand.hbm [shape: f32[8,32], index: 6, kind: output, shape index: {0}]   ;;  %s3901_s7 = inlined_call_operand.hbm [shape: f32[8,32], index: 7, kind: output, shape index: {1}]  }
   0x1   :  { %v30_v0 = vld [vmem:[%s3894_s0 + $0x18] sm:$0xff]  ;;  %v29_v1 = vld [vmem:[%s3894_s0 + $0x10] sm:$0xff]  ;;  %v28_v2 = vld [vmem:[%s3894_s0 + $0x8] sm:$0xff] }
   0x2   :  { %238 = vmatpush.msra.mxu1 %v30_v0  ;;  %498 = vmatpush.msra.mxu3 %v30_v0 }
   0x3   :  { %368 = vmatpush.msra.mxu2 %v30_v0  ;;  %108 = vmatpush.msra.mxu0 %v30_v0 }
   0x4   :  { %14 = vsyncpa [#allocation5], 0  ;;  %239 = vmatpush.msra.mxu1 %v29_v1  ;;  %499 = vmatpush.msra.mxu3 %v29_v1  ;;  %v27_v3 = vld [vmem:[%s3894_s0] sm:$0xff]  ;;  %vm47_vm0 = vcmask 261120   ;;  %v893_v8 = vld [vmem:[%s3898_s4 + $0x10] sm:$0xf] }
   0x5   :  { %369 = vmatpush.msra.mxu2 %v29_v1  ;;  %109 = vmatpush.msra.mxu0 %v29_v1  ;;  %v2228_v4 = vld [vmem:[%s3895_s1 + $0x80] sm:$0xff]  ;;  %vm943_vm1 = vcmask 1043456   ;;  %v2647_v9 = vld [vmem:[%s3899_s5 + $0x78] sm:$0xff]  ;;  %v32_v10 = vld [vmem:[%s3895_s1 + $0x8] sm:$0xff]  ;;  %s2564_s28 = smov 4   ;;  %s2565_s8 = smov 12  }
   0x6   :  { %240 = vmatpush.msra.mxu1 %v28_v2  ;;  %500 = vmatpush.msra.mxu3 %v28_v2  ;;  %v2292_v5 = vld [vmem:[%s3895_s1 + $0x180] sm:$0xff]  ;;  %v2229_v11 = vld [vmem:[%s3895_s1 + $0x88] sm:$0xff]  ;;  %v2661_v12 = vld [vmem:[%s3899_s5 + $0x70] sm:$0xff]  ;;  %s2566_s13 = smov 8   ;;  %s2567_s17 = smov 16   ;;  %vm823_vm2 = vcmask 31744  }
   0x7   :  { %370 = vmatpush.msra.mxu2 %v28_v2  ;;  %110 = vmatpush.msra.mxu0 %v28_v2  ;;  %v2260_v6 = vld [vmem:[%s3895_s1 + $0x100] sm:$0xff]  ;;  %v33_v13 = vld [vmem:[%s3895_s1 + $0x10] sm:$0xff]  ;;  %v2677_v15 = vld [vmem:[%s3899_s5 + $0x68] sm:$0xff]  ;;  %vm840_vm3 = vcmask 64512   ;;  %vm857_vm4 = vcmask 97280   ;;  %vm874_vm5 = vcmask 130048  }
   0x8   :  { %241 = vmatpush.msra.mxu1 %v27_v3  ;;  %501 = vmatpush.msra.mxu3 %v27_v3  ;;  %v31_v7 = vld [vmem:[%s3895_s1] sm:$0xff]  ;;  %v2230_v14 = vld [vmem:[%s3895_s1 + $0x90] sm:$0xff]  ;;  %v2692_v17 = vld [vmem:[%s3899_s5 + $0x58] sm:$0xff]  ;;  %vm894_vm6 = vcmask 162816   ;;  %s2568_s10 = smov 32   ;;  %s2569_s26 = smov 96  }
   0x9   :  { %2244 = vmatmul.msk.f32.vlgmr.msra.gmra.mxu1 %vm47_vm0, %v2228_v4  ;;  %2308 = vmatmul.msk.f32.vlgmr.msra.gmra.mxu3 %vm47_vm0, %v2292_v5  ;;  %v2683_v16 = vld [vmem:[%s3899_s5 + $0x60] sm:$0xff]  ;;  %v892_v18 = vld [vmem:[%s3898_s4 + $0x8] sm:$0xff]  ;;  %v2702_v19 = vld [vmem:[%s3899_s5 + $0x50] sm:$0xff]  ;;  %s2570_s27 = smov 64   ;;  %vm1099_vm11 = vcmask 523264   ;;  %vm1101_vm12 = vcmask 785408  }
   0xa   :  { %371 = vmatpush.msra.mxu2 %v27_v3  ;;  %111 = vmatpush.msra.mxu0 %v27_v3  ;;  %v2710_v20 = vld [vmem:[%s3899_s5 + $0x48] sm:$0xff]  ;;  %v34_v21 = vld [vmem:[%s3895_s1 + $0x18] sm:$0xff]  ;;  %v2729_v23 = vld [vmem:[%s3899_s5 + $0x40] sm:$0xff]  ;;  %s2198_s22 = sshll.u32 %s3901_s7, 4  ;;  %s2187_s25 = sshll.u32 %s3900_s6, 4  ;;  %s2199_s22 = int_to_ptr.hbm [resolvable:$true] %s2198_s22  ;;  %s2188_s25 = int_to_ptr.hbm [resolvable:$true] %s2187_s25 }
   0xb   :  { %2276 = vmatmul.msk.f32.vlgmr.msra.gmra.mxu2 %vm47_vm0, %v2260_v6  ;;  %2212 = vmatmul.msk.f32.vlgmr.msra.gmra.mxu0 %vm47_vm0, %v31_v7  ;;  %v2231_v22 = vld [vmem:[%s3895_s1 + $0x98] sm:$0xff]  ;;  %v35_v24 = vld [vmem:[%s3895_s1 + $0x20] sm:$0xff]  ;;  %v36_v29 = vld [vmem:[%s3895_s1 + $0x28] sm:$0xff] }
   0xc   :  { %2324 = vmatpush.msk.msrb.mxu0 %vm943_vm1, %v893_v8  ;;  %1030 = vmatpush.msrb.mxu1 %v2647_v9  ;;  %v2232_v25 = vld [vmem:[%s3895_s1 + $0xa0] sm:$0xff]  ;;  %v2747_v27 = vld [vmem:[%s3899_s5 + $0x38] sm:$0xff]  ;;  %v2233_v30 = vld [vmem:[%s3895_s1 + $0xa8] sm:$0xff] }
   0xd   :  { %1104 = vmatpush.msrb.mxu2 %v2647_v9  ;;  %1176 = vmatpush.msrb.mxu3 %v2647_v9  ;;  %v2765_v32 = vld [vmem:[%s3899_s5 + $0x30] sm:$0xff]  ;;  %v551_v33 = vld [vmem:[%s3896_s2] sm:$0xff]  ;;  %v2785_v36 = vld [vmem:[%s3899_s5 + $0x28] sm:$0xff] }
   0xe   :  { %1031 = vmatpush.msrb.mxu1 %v2661_v12  ;;  %961 = vmatpush.msrb.mxu0 %v892_v18  ;;  %v37_v34 = vld [vmem:[%s3895_s1 + $0x30] sm:$0xff]  ;;  %v891_v37 = vld [vmem:[%s3898_s4] sm:$0xff]  ;;  %v38_v38 = vld [vmem:[%s3895_s1 + $0x38] sm:$0xff] }
   0xf   :  { %1105 = vmatpush.msrb.mxu2 %v2661_v12  ;;  %1177 = vmatpush.msrb.mxu3 %v2661_v12  ;;  %v2234_v35 = vld [vmem:[%s3895_s1 + $0xb0] sm:$0xff]  ;;  %v2235_v39 = vld [vmem:[%s3895_s1 + $0xb8] sm:$0xff]  ;;  %v2807_v40 = vld [vmem:[%s3899_s5 + $0x20] sm:$0xff] }
  0x10   :  { %1032 = vmatpush.msrb.mxu1 %v2677_v15  ;;  %962 = vmatpush.msrb.mxu0 %v891_v37  ;;  %v39_v41 = vld [vmem:[%s3895_s1 + $0x40] sm:$0xff]  ;;  %v2826_v43 = vld [vmem:[%s3899_s5 + $0x18] sm:$0xff]  ;;  %v40_v44 = vld [vmem:[%s3895_s1 + $0x48] sm:$0xff] }
  0x11   :  { %2245 = vmatmul.msk.f32.gmra.mxu1 %vm47_vm0, %v2229_v11  ;;  %1106 = vmatpush.msrb.mxu2 %v2677_v15  ;;  %v2236_v42 = vld [vmem:[%s3895_s1 + $0xc0] sm:$0xff]  ;;  %v2237_v45 = vld [vmem:[%s3895_s1 + $0xc8] sm:$0xff]  ;;  %v2845_v46 = vld [vmem:[%s3899_s5 + $0x10] sm:$0xff] }
  0x12   :  { %1178 = vmatpush.msrb.mxu3 %v2677_v15  ;;  %1033 = vmatpush.msrb.mxu1 %v2683_v16  ;;  %v41_v47 = vld [vmem:[%s3895_s1 + $0x50] sm:$0xff]  ;;  %v2864_v49 = vld [vmem:[%s3899_s5 + $0x8] sm:$0xff]  ;;  %v42_v50 = vld [vmem:[%s3895_s1 + $0x58] sm:$0xff] }
  0x13   :  { %2213 = vmatmul.msk.f32.gmra.mxu0 %vm47_vm0, %v32_v10  ;;  %1107 = vmatpush.msrb.mxu2 %v2683_v16  ;;  %v2238_v48 = vld [vmem:[%s3895_s1 + $0xd0] sm:$0xff]  ;;  %v2239_v51 = vld [vmem:[%s3895_s1 + $0xd8] sm:$0xff]  ;;  %v43_v52 = vld [vmem:[%s3895_s1 + $0x60] sm:$0xff] }
  0x14   :  { %1179 = vmatpush.msrb.mxu3 %v2683_v16  ;;  %1034 = vmatpush.msrb.mxu1 %v2692_v17  ;;  %v2240_v53 = vld [vmem:[%s3895_s1 + $0xe0] sm:$0xff]  ;;  %v44_v54 = vld [vmem:[%s3895_s1 + $0x68] sm:$0xff]  ;;  %v2242_v56 = vld [vmem:[%s3895_s1 + $0xf0] sm:$0xff] }
  0x15   :  { %1108 = vmatpush.msrb.mxu2 %v2692_v17  ;;  %1896 = vmatpush.msra.mxu0 %v2647_v9  ;;  %v2241_v55 = vld [vmem:[%s3895_s1 + $0xe8] sm:$0xff]  ;;  %v45_v57 = vld [vmem:[%s3895_s1 + $0x70] sm:$0xff]  ;;  %v2243_v58 = vld [vmem:[%s3895_s1 + $0xf8] sm:$0xff] }
  0x16   :  { %1180 = vmatpush.msrb.mxu3 %v2692_v17  ;;  %1035 = vmatpush.msrb.mxu1 %v2702_v19  ;;  %v2910_v59 = vld [vmem:[%s3899_s5] sm:$0xff]  ;;  %v46_v60 = vld [vmem:[%s3895_s1 + $0x78] sm:$0xff] }
  0x17   :  { %1109 = vmatpush.msrb.mxu2 %v2702_v19  ;;  %1897 = vmatpush.msra.mxu0 %v2661_v12  ;;  %v2930_v61 = vld [vmem:[%s3897_s3] sm:$0xff] }
  0x18   :  { %1181 = vmatpush.msrb.mxu3 %v2702_v19  ;;  %1036 = vmatpush.msrb.mxu1 %v2710_v20  ;;  %v1029_v62 = vmul.f32 0.0, %v2930_v61 }
  0x19   :  { %2246 = vmatmul.msk.f32.gmra.mxu1 %vm47_vm0, %v2230_v14  ;;  %1110 = vmatpush.msrb.mxu2 %v2710_v20 }
  0x1a   :  { %1037 = vmatpush.msrb.mxu1 %v2729_v23  ;;  %1182 = vmatpush.msrb.mxu3 %v2710_v20 }
  0x1b   :  { %2214 = vmatmul.msk.f32.gmra.mxu0 %vm47_vm0, %v33_v13  ;;  %1111 = vmatpush.msrb.mxu2 %v2729_v23 }
  0x1c   :  { %1183 = vmatpush.msrb.mxu3 %v2729_v23  ;;  %1038 = vmatpush.msrb.mxu1 %v2747_v27 }
  0x1d   :  { %1112 = vmatpush.msrb.mxu2 %v2747_v27  ;;  %1898 = vmatpush.msra.mxu0 %v2677_v15 }
  0x1e   :  { %1184 = vmatpush.msrb.mxu3 %v2747_v27  ;;  %1039 = vmatpush.msrb.mxu1 %v2765_v32 }
  0x1f   :  { %1113 = vmatpush.msrb.mxu2 %v2765_v32  ;;  %1899 = vmatpush.msra.mxu0 %v2683_v16 }
  0x20   :  { %1185 = vmatpush.msrb.mxu3 %v2765_v32  ;;  %1040 = vmatpush.msrb.mxu1 %v2785_v36 }
  0x21   :  { %2247 = vmatmul.msk.f32.gmra.mxu1 %vm47_vm0, %v2231_v22  ;;  %1114 = vmatpush.msrb.mxu2 %v2785_v36 }
  0x22   :  { %1186 = vmatpush.msrb.mxu3 %v2785_v36  ;;  %1041 = vmatpush.msrb.mxu1 %v2807_v40 }
  0x23   :  { %2215 = vmatmul.msk.f32.gmra.mxu0 %vm47_vm0, %v34_v21  ;;  %1115 = vmatpush.msrb.mxu2 %v2807_v40 }
  0x24   :  { %1187 = vmatpush.msrb.mxu3 %v2807_v40  ;;  %1900 = vmatpush.msra.mxu0 %v2692_v17 }
  0x25   :  { %1042 = vmatpush.msrb.mxu1 %v2826_v43  ;;  %1116 = vmatpush.msrb.mxu2 %v2826_v43 }
  0x26   :  { %1901 = vmatpush.msra.mxu0 %v2702_v19  ;;  %1188 = vmatpush.msrb.mxu3 %v2826_v43 }
  0x27   :  { %1043 = vmatpush.msrb.mxu1 %v2845_v46  ;;  %1117 = vmatpush.msrb.mxu2 %v2845_v46 }
  0x28   :  { %1902 = vmatpush.msra.mxu0 %v2710_v20  ;;  %1189 = vmatpush.msrb.mxu3 %v2845_v46 }
  0x29   :  { %2248 = vmatmul.msk.f32.gmra.mxu1 %vm47_vm0, %v2232_v25  ;;  %1118 = vmatpush.msrb.mxu2 %v2864_v49 }
  0x2a   :  { %1903 = vmatpush.msra.mxu0 %v2729_v23  ;;  %1044 = vmatpush.msrb.mxu1 %v2864_v49 }
  0x2b   :  { %2216 = vmatmul.msk.f32.gmra.mxu0 %vm47_vm0, %v35_v24  ;;  %1190 = vmatpush.msrb.mxu3 %v2864_v49 }
  0x2c   :  { %1904 = vmatpush.msra.mxu0 %v2747_v27  ;;  %1119 = vmatpush.msrb.mxu2 %v2910_v59 }
  0x2d   :  { %1045 = vmatpush.msrb.mxu1 %v2910_v59  ;;  %1191 = vmatpush.msrb.mxu3 %v2910_v59 }
  0x2e   :  { %1905 = vmatpush.msra.mxu0 %v2765_v32  ;;  %1320 = vmatpush.msra.mxu2 %v2647_v9 }
  0x2f   :  { %1248 = vmatpush.msra.mxu1 %v2647_v9  ;;  %1392 = vmatpush.msra.mxu3 %v2647_v9 }
  0x30   :  { %1906 = vmatpush.msra.mxu0 %v2785_v36  ;;  %1321 = vmatpush.msra.mxu2 %v2661_v12 }
  0x31   :  { %2249 = vmatmul.msk.f32.gmra.mxu1 %vm47_vm0, %v2233_v30  ;;  %1393 = vmatpush.msra.mxu3 %v2661_v12 }
  0x32   :  { %1907 = vmatpush.msra.mxu0 %v2807_v40  ;;  %1249 = vmatpush.msra.mxu1 %v2661_v12 }
  0x33   :  { %2217 = vmatmul.msk.f32.gmra.mxu0 %vm47_vm0, %v36_v29  ;;  %1322 = vmatpush.msra.mxu2 %v2677_v15 }
  0x34   :  { %1908 = vmatpush.msra.mxu0 %v2826_v43  ;;  %1250 = vmatpush.msra.mxu1 %v2677_v15 }
  0x35   :  { %1394 = vmatpush.msra.mxu3 %v2677_v15  ;;  %1323 = vmatpush.msra.mxu2 %v2683_v16 }
  0x36   :  { %1909 = vmatpush.msra.mxu0 %v2845_v46  ;;  %1251 = vmatpush.msra.mxu1 %v2683_v16 }
  0x37   :  { %1395 = vmatpush.msra.mxu3 %v2683_v16  ;;  %1324 = vmatpush.msra.mxu2 %v2692_v17 }
  0x38   :  { %1910 = vmatpush.msra.mxu0 %v2864_v49  ;;  %1252 = vmatpush.msra.mxu1 %v2692_v17 }
  0x39   :  { %2250 = vmatmul.msk.f32.gmra.mxu1 %vm47_vm0, %v2234_v35  ;;  %1396 = vmatpush.msra.mxu3 %v2692_v17 }
  0x3a   :  { %1911 = vmatpush.msra.mxu0 %v2910_v59  ;;  %1253 = vmatpush.msra.mxu1 %v2702_v19 }
  0x3b   :  { %2218 = vmatmul.msk.f32.gmra.mxu0 %vm47_vm0, %v37_v34  ;;  %1325 = vmatpush.msra.mxu2 %v2702_v19 }
  0x3c   :  { %1254 = vmatpush.msra.mxu1 %v2710_v20  ;;  %1397 = vmatpush.msra.mxu3 %v2702_v19 }
  0x3d   :  { %1326 = vmatpush.msra.mxu2 %v2710_v20 }
  0x3e   :  { %1255 = vmatpush.msra.mxu1 %v2729_v23  ;;  %1398 = vmatpush.msra.mxu3 %v2710_v20 }
  0x3f   :  { %1327 = vmatpush.msra.mxu2 %v2729_v23 }
  0x40   :  { %1256 = vmatpush.msra.mxu1 %v2747_v27  ;;  %1399 = vmatpush.msra.mxu3 %v2729_v23 }
  0x41   :  { %2251 = vmatmul.msk.f32.gmra.mxu1 %vm47_vm0, %v2235_v39  ;;  %1328 = vmatpush.msra.mxu2 %v2747_v27 }
  0x42   :  { %1257 = vmatpush.msra.mxu1 %v2765_v32  ;;  %1400 = vmatpush.msra.mxu3 %v2747_v27 }
  0x43   :  { %2219 = vmatmul.msk.f32.gmra.mxu0 %vm47_vm0, %v38_v38  ;;  %1329 = vmatpush.msra.mxu2 %v2765_v32 }
  0x44   :  { %1258 = vmatpush.msra.mxu1 %v2785_v36  ;;  %1401 = vmatpush.msra.mxu3 %v2765_v32 }
  0x45   :  { %1330 = vmatpush.msra.mxu2 %v2785_v36 }
  0x46   :  { %1259 = vmatpush.msra.mxu1 %v2807_v40  ;;  %1402 = vmatpush.msra.mxu3 %v2785_v36 }
  0x47   :  { %1331 = vmatpush.msra.mxu2 %v2807_v40 }
  0x48   :  { %1260 = vmatpush.msra.mxu1 %v2826_v43  ;;  %1403 = vmatpush.msra.mxu3 %v2807_v40 }
  0x49   :  { %2252 = vmatmul.msk.f32.gmra.mxu1 %vm47_vm0, %v2236_v42  ;;  %1332 = vmatpush.msra.mxu2 %v2826_v43 }
  0x4a   :  { %1261 = vmatpush.msra.mxu1 %v2845_v46  ;;  %1404 = vmatpush.msra.mxu3 %v2826_v43 }
  0x4b   :  { %2220 = vmatmul.msk.f32.gmra.mxu0 %vm47_vm0, %v39_v41  ;;  %1333 = vmatpush.msra.mxu2 %v2845_v46 }
  0x4c   :  { %1262 = vmatpush.msra.mxu1 %v2864_v49  ;;  %1405 = vmatpush.msra.mxu3 %v2845_v46 }
  0x4d   :  { %1334 = vmatpush.msra.mxu2 %v2864_v49 }
  0x4e   :  { %1263 = vmatpush.msra.mxu1 %v2910_v59  ;;  %1406 = vmatpush.msra.mxu3 %v2864_v49 }
  0x4f   :  { %1335 = vmatpush.msra.mxu2 %v2910_v59 }
  0x50   :  { %1407 = vmatpush.msra.mxu3 %v2910_v59 }
  0x51   :  { %2253 = vmatmul.msk.f32.gmra.mxu1 %vm47_vm0, %v2237_v45 }
  0x53   :  { %2221 = vmatmul.msk.f32.gmra.mxu0 %vm47_vm0, %v40_v44 }
  0x59   :  { %2254 = vmatmul.msk.f32.gmra.mxu1 %vm47_vm0, %v2238_v48 }
  0x5b   :  { %2222 = vmatmul.msk.f32.gmra.mxu0 %vm47_vm0, %v41_v47 }
  0x61   :  { %2255 = vmatmul.msk.f32.gmra.mxu1 %vm47_vm0, %v2239_v51 }
  0x63   :  { %2223 = vmatmul.msk.f32.gmra.mxu0 %vm47_vm0, %v42_v50 }
  0x69   :  { %2256 = vmatmul.msk.f32.gmra.mxu1 %vm47_vm0, %v2240_v53 }
  0x6b   :  { %2224 = vmatmul.msk.f32.gmra.mxu0 %vm47_vm0, %v43_v52 }
  0x71   :  { %2257 = vmatmul.msk.f32.gmra.mxu1 %vm47_vm0, %v2241_v55 }
  0x73   :  { %2225 = vmatmul.msk.f32.gmra.mxu0 %vm47_vm0, %v44_v54 }
  0x79   :  { %2258 = vmatmul.msk.f32.gmra.mxu1 %vm47_vm0, %v2242_v56 }
  0x7b   :  { %2226 = vmatmul.msk.f32.gmra.mxu0 %vm47_vm0, %v45_v57 }
  0x81   :  { %2259 = vmatmul.msk.f32.gmra.mxu1 %vm47_vm0, %v2243_v58 }
  0x83   :  { %2227 = vmatmul.msk.f32.gmra.mxu0 %vm47_vm0, %v46_v60 }
  0x86   :  { %v243_v26 = vpop.f32.mrf.mxu1 }
  0x87   :  { %583 = vrot.lane.b32.xlu0 %v243_v26, %s2564_s28 }
  0x88   :  { %v113_v63 = vpop.f32.mrf.mxu0 }
  0x89   :  { %1046 = vmatmul.f32.vlgmr.msrb.gmra.mxu1 %v1029_v62 }
  0x8a   :  { %1464 = vmatpush.msrb.mxu1 %v2647_v9 }
  0x8c   :  { %v503_v28 = vpop.f32.mrf.mxu3  ;;  %1465 = vmatpush.msrb.mxu1 %v2661_v12 }
  0x8d   :  { %711 = vrot.lane.b32.xlu1 %v503_v28, %s2565_s8 }
  0x8e   :  { %v373_v31 = vpop.f32.mrf.mxu2  ;;  %v2944_v0 = vpop.f32.mrf.mxu1  ;;  %1466 = vmatpush.msrb.mxu1 %v2677_v15 }
  0x8f   :  { %647 = vrot.lane.b32.xlu0 %v373_v31, %s2566_s13 }
  0x90   :  { %v2949_v1 = vpop.f32.mrf.mxu0  ;;  %1467 = vmatpush.msrb.mxu1 %v2683_v16 }
  0x92   :  { %1468 = vmatpush.msrb.mxu1 %v2692_v17 }
  0x94   :  { %1469 = vmatpush.msrb.mxu1 %v2702_v19 }
  0x95   :  { %775 = vrot.lane.b32.xlu1 %v551_v33, %s2567_s17 }
  0x96   :  { %v2963_v2 = vpop.f32.mrf.mxu1  ;;  %1470 = vmatpush.msrb.mxu1 %v2710_v20 }
  0x98   :  { %v2968_v4 = vpop.f32.mrf.mxu0  ;;  %1471 = vmatpush.msrb.mxu1 %v2729_v23 }
  0x9a   :  { %1472 = vmatpush.msrb.mxu1 %v2747_v27 }
  0x9c   :  { %1473 = vmatpush.msrb.mxu1 %v2765_v32 }
  0x9e   :  { %v2983_v7 = vpop.f32.mrf.mxu1  ;;  %1474 = vmatpush.msrb.mxu1 %v2785_v36 }
  0xa0   :  { %v2989_v11 = vpop.f32.mrf.mxu0  ;;  %1475 = vmatpush.msrb.mxu1 %v2807_v40 }
  0xa2   :  { %1476 = vmatpush.msrb.mxu1 %v2826_v43 }
  0xa4   :  { %1477 = vmatpush.msrb.mxu1 %v2845_v46 }
  0xa6   :  { %v2998_v21 = vpop.f32.mrf.mxu1  ;;  %1478 = vmatpush.msrb.mxu1 %v2864_v49 }
  0xa8   :  { %v3001_v22 = vpop.f32.mrf.mxu0  ;;  %1479 = vmatpush.msrb.mxu1 %v2910_v59 }
  0xae   :  { %v3007_v24 = vpop.f32.mrf.mxu1 }
  0xb0   :  { %v3010_v25 = vpop.f32.mrf.mxu0 }
  0xb6   :  { %v3016_v26 = vpop.f32.mrf.mxu1 }
  0xb8   :  { %v3018_v28 = vpop.f32.mrf.mxu0 }
  0xbe   :  { %v3020_v29 = vpop.f32.mrf.mxu1 }
  0xc0   :  { %v3022_v30 = vpop.f32.mrf.mxu0 }
  0xc6   :  { %v3024_v31 = vpop.f32.mrf.mxu1 }
  0xc8   :  { %v3026_v33 = vpop.f32.mrf.mxu0 }
  0xce   :  { %v3028_v34 = vpop.f32.mrf.mxu1 }
  0xd0   :  { %v3030_v35 = vpop.f32.mrf.mxu0 }
  0xd6   :  { %v3032_v37 = vpop.f32.mrf.mxu1 }
  0xd8   :  { %v3034_v38 = vpop.f32.mrf.mxu0 }
  0xde   :  { %v3036_v39 = vpop.f32.mrf.mxu1 }
  0xe0   :  { %v3038_v41 = vpop.f32.mrf.mxu0 }
  0xe6   :  { %v3040_v42 = vpop.f32.mrf.mxu1 }
  0xe8   :  { %v3042_v44 = vpop.f32.mrf.mxu0 }
  0xe9   :  { %3902 = vst [vmem:[#allocation8_spill] sm:$0xff] %v3042_v44 }
  0xee   :  { %v3044_v45 = vpop.f32.mrf.mxu1 }
  0xef   :  { %3903 = vst [vmem:[#allocation9_spill] sm:$0xff] %v3044_v45 }
  0xf0   :  { %v3046_v47 = vpop.f32.mrf.mxu0 }
  0xf1   :  { %3904 = vst [vmem:[#allocation10_spill] sm:$0xff] %v3046_v47 }
  0xf6   :  { %v3048_v48 = vpop.f32.mrf.mxu1 }
  0xf7   :  { %3905 = vst [vmem:[#allocation11_spill] sm:$0xff] %v3048_v48 }
  0xf8   :  { %v3050_v50 = vpop.f32.mrf.mxu0 }
  0xf9   :  { %v584_v3 = vpop.permute.xlu0 %583  ;;  %3906 = vst [vmem:[#allocation12_spill] sm:$0xff] %v3050_v50 }
  0xfa   :  { %v824_v8 = vsel %vm823_vm2, %v113_v63, %v584_v3 }
  0xfe   :  { %v3052_v51 = vpop.f32.mrf.mxu1 }
  0xff   :  { %v712_v5 = vpop.permute.xlu1 %711  ;;  %3907 = vst [vmem:[#allocation13_spill] sm:$0xff] %v3052_v51 }
 0x100   :  { %v3054_v52 = vpop.f32.mrf.mxu0 }
 0x101   :  { %v648_v6 = vpop.permute.xlu0 %647  ;;  %3908 = vst [vmem:[#allocation14_spill] sm:$0xff] %v3054_v52 }
 0x102   :  { %v841_v10 = vsel %vm840_vm3, %v824_v8, %v648_v6 }
 0x103   :  { %v858_v14 = vsel %vm857_vm4, %v841_v10, %v712_v5 }
 0x106   :  { %v1047_v53 = vpop.f32.mrf.mxu1 }
 0x107   :  { %v776_v13 = vpop.permute.xlu1 %775 }
 0x108   :  { %v875_v18 = vsel %vm874_vm5, %v858_v14, %v776_v13 }
 0x109   :  { %2325 = vmatmul.msk.f32.vlgmr.msrb.gmra.mxu0 %vm894_vm6, %v875_v18 }
 0x186   :  { %v964_v54 = vpop.f32.mrf.mxu0 }
 0x187   :  { %v1050_v55 = vadd.f32 %v1047_v53, %v964_v54 }
 0x189   :  { %2366 = vtanh.f32 %v1050_v55  ;;  %v2341_v57 = vmul.f32 -1.442695, %v1050_v55  ;;  %v2293_v55 = vld [vmem:[%s3895_s1 + $0x188] sm:$0xff] }
 0x18a   :  { %2309 = vmatmul.msk.f32.gmra.mxu3 %vm47_vm0, %v2293_v55  ;;  %v2268_v55 = vld [vmem:[%s3895_s1 + $0x140] sm:$0xff] }
 0x18b   :  { %2368 = vpow2.f32 %v2341_v57 }
 0x18f   :  { %v2367_v56 = vpop.eup %2366 }
 0x190   :  { %1073 = vrot.lane.b32.xlu2 %v2367_v56, %s2568_s10  ;;  %v2261_v56 = vld [vmem:[%s3895_s1 + $0x108] sm:$0xff] }
 0x191   :  { %v2369_v58 = vpop.eup %2368  ;;  %2277 = vmatmul.msk.f32.gmra.mxu2 %vm47_vm0, %v2261_v56  ;;  %v2269_v56 = vld [vmem:[%s3895_s1 + $0x148] sm:$0xff] }
 0x192   :  { %v1054_v60 = vadd.f32 1.0, %v2369_v58 }
 0x194   :  { %2370 = vrcp.f32 %v1054_v60  ;;  %v1066_v8 = vand.u32 2147483648, %v1054_v60  ;;  %vm1060_vm8 = vweird.f32 %v1054_v60  ;;  %v1064_v10 = vand.u32 2147483647, %v1054_v60 }
 0x196   :  { %v1067_v14 = vor.u32 1.1754944e-38, %v1066_v8  ;;  %vm1065_vm10 = vcmp.eq.f32.partialorder %v1064_v10, 8.507059e+37 }
 0x19a   :  { %v2371_v62 = vpop.eup %2370 }
 0x19b   :  { %v1056_v63 = vmul.f32 %v2371_v62, %v1054_v60  ;;  %vm1061_vm7 = vweird.f32 %v2371_v62 }
 0x19c   :  { %vm1062_vm9 = vmor %vm1060_vm8, %vm1061_vm7 }
 0x19d   :  { %v1057_v3 = vsub.f32 1.0, %v1056_v63  ;;  %v2262_v63 = vld [vmem:[%s3895_s1 + $0x110] sm:$0xff] }
 0x19e   :  { %2278 = vmatmul.msk.f32.gmra.mxu2 %vm47_vm0, %v2262_v63  ;;  %v2274_v63 = vld [vmem:[%s3895_s1 + $0x170] sm:$0xff] }
 0x19f   :  { %v1058_v5 = vmul.f32 %v2371_v62, %v1057_v3  ;;  %v2263_v3 = vld [vmem:[%s3895_s1 + $0x118] sm:$0xff] }
 0x1a1   :  { %v1059_v6 = vadd.f32 %v2371_v62, %v1058_v5  ;;  %v2264_v5 = vld [vmem:[%s3895_s1 + $0x120] sm:$0xff] }
 0x1a3   :  { %v1063_v13 = vsel %vm1062_vm9, %v2371_v62, %v1059_v6  ;;  %v2265_v6 = vld [vmem:[%s3895_s1 + $0x128] sm:$0xff] }
 0x1a4   :  { %v1068_v53 = vsel %vm1065_vm10, %v1067_v14, %v1063_v13  ;;  %v2266_v13 = vld [vmem:[%s3895_s1 + $0x130] sm:$0xff] }
 0x1a5   :  { %v1071_v57 = vmul.f32 0.0, %v1068_v53 }
 0x1a6   :  { %2279 = vmatmul.msk.f32.gmra.mxu2 %vm47_vm0, %v2263_v3  ;;  %v2275_v3 = vld [vmem:[%s3895_s1 + $0x178] sm:$0xff] }
 0x1ae   :  { %2280 = vmatmul.msk.f32.gmra.mxu2 %vm47_vm0, %v2264_v5 }
 0x1b6   :  { %2281 = vmatmul.msk.f32.gmra.mxu2 %vm47_vm0, %v2265_v6 }
 0x1be   :  { %2282 = vmatmul.msk.f32.gmra.mxu2 %vm47_vm0, %v2266_v13 }
 0x1ea   :  { %v1074_v18 = vpop.permute.xlu2 %1073 }
 0x1eb   :  { %v1076_v54 = vmul.f32 %v1074_v18, %v1068_v53 }
 0x1ed   :  { %1078 = vrot.lane.b32.xlu2 %v1076_v54, %s2568_s10  ;;  %v552_v54 = vld [vmem:[%s3896_s2 + $0x8] sm:$0xff] }
 0x20d   :  { %v506_v14 = vpop.f32.mrf.mxu3 }
 0x214   :  { %v376_v18 = vpop.f32.mrf.mxu2 }
 0x247   :  { %v1079_v58 = vpop.permute.xlu2 %1078 }
 0x248   :  { %v3066_v60 = vadd.f32 %v1079_v58, %v1071_v57  ;;  %v2271_v57 = vld [vmem:[%s3895_s1 + $0x158] sm:$0xff]  ;;  %v2272_v58 = vld [vmem:[%s3895_s1 + $0x160] sm:$0xff] }
 0x24a   :  { %2372 = vtanh.f32 %v3066_v60 }
 0x250   :  { %v2373_v62 = vpop.eup %2372 }
 0x251   :  { %1084 = vrot.lane.b32.xlu0 %v2373_v62, %s2568_s10  ;;  %v2273_v62 = vld [vmem:[%s3895_s1 + $0x168] sm:$0xff] }
 0x2c3   :  { %v1085_v8 = vpop.permute.xlu0 %1084 }
 0x2c4   :  { %v1087_v10 = vmul.f32 %v1085_v8, %v1068_v53  ;;  %v2267_v53 = vld [vmem:[%s3895_s1 + $0x138] sm:$0xff] }
 0x2c5   :  { %2283 = vmatmul.msk.f32.gmra.mxu2 %vm47_vm0, %v2267_v53  ;;  %v3140_v53 = vpop.f32.mrf.mxu2 }
 0x2c6   :  { %1095 = vrot.lane.b32.xlu0 %v1087_v10, %s2568_s10  ;;  %1092 = vrot.lane.b32.xlu2 %v1087_v10, %s2569_s26 }
 0x2c7   :  { %1089 = vrot.lane.b32.xlu1 %v1087_v10, %s2570_s27 }
 0x2cd   :  { %2284 = vmatmul.msk.f32.gmra.mxu2 %vm47_vm0, %v2268_v55 }
 0x2ce   :  { %713 = vrot.lane.b32.xlu0 %v506_v14, %s2565_s8  ;;  %649 = vrot.lane.b32.xlu2 %v376_v18, %s2566_s13 }
 0x2cf   :  { %585 = vrot.lane.b32.xlu1 %v2944_v0, %s2564_s28  ;;  %v2270_v0 = vld [vmem:[%s3895_s1 + $0x150] sm:$0xff] }
 0x2d5   :  { %2285 = vmatmul.msk.f32.gmra.mxu2 %vm47_vm0, %v2269_v56 }
 0x2d7   :  { %777 = vrot.lane.b32.xlu1 %v552_v54, %s2567_s17 }
 0x2dd   :  { %2286 = vmatmul.msk.f32.gmra.mxu2 %vm47_vm0, %v2270_v0 }
 0x2e5   :  { %2287 = vmatmul.msk.f32.gmra.mxu2 %vm47_vm0, %v2271_v57 }
 0x2ed   :  { %2288 = vmatmul.msk.f32.gmra.mxu2 %vm47_vm0, %v2272_v58  ;;  %v3149_v58 = vpop.f32.mrf.mxu2 }
 0x2f5   :  { %2289 = vmatmul.msk.f32.gmra.mxu2 %vm47_vm0, %v2273_v62 }
 0x2fd   :  { %2290 = vmatmul.msk.f32.gmra.mxu2 %vm47_vm0, %v2274_v63 }
 0x305   :  { %2291 = vmatmul.msk.f32.gmra.mxu2 %vm47_vm0, %v2275_v3 }
 0x320   :  { %v1093_v5 = vpop.permute.xlu2 %1092 }
 0x328   :  { %v650_v0 = vpop.permute.xlu2 %649 }
 0x338   :  { %v1096_v13 = vpop.permute.xlu0 %1095 }
 0x339   :  { %v1090_v6 = vpop.permute.xlu1 %1089 }
 0x33a   :  { %v1098_v8 = vsel %vm47_vm0, %v1090_v6, %v1093_v5 }
 0x33b   :  { %v1100_v14 = vsel %vm1099_vm11, %v1098_v8, %v1087_v10 }
 0x33c   :  { %v1102_v18 = vsel %vm1101_vm12, %v1100_v14, %v1096_v13 }
 0x33d   :  { %v1103_v54 = vmul.f32 %v1102_v18, %v2930_v61 }
 0x33f   :  { %1120 = vmatmul.f32.vlgmr.msrb.gmra.mxu2 %v1103_v54 }
 0x340   :  { %1536 = vmatpush.msrb.mxu2 %v2647_v9  ;;  %v714_v57 = vpop.permute.xlu0 %713 }
 0x341   :  { %v586_v55 = vpop.permute.xlu1 %585 }
 0x342   :  { %1537 = vmatpush.msrb.mxu2 %v2661_v12  ;;  %v825_v56 = vsel %vm823_vm2, %v2949_v1, %v586_v55  ;;  %v3159_v1 = vpop.f32.mrf.mxu2 }
 0x343   :  { %v842_v10 = vsel %vm840_vm3, %v825_v56, %v650_v0 }
 0x344   :  { %1538 = vmatpush.msrb.mxu2 %v2677_v15  ;;  %v859_v62 = vsel %vm857_vm4, %v842_v10, %v714_v57 }
 0x346   :  { %1539 = vmatpush.msrb.mxu2 %v2683_v16 }
 0x348   :  { %1540 = vmatpush.msrb.mxu2 %v2692_v17 }
 0x349   :  { %v778_v63 = vpop.permute.xlu1 %777 }
 0x34a   :  { %v876_v3 = vsel %vm874_vm5, %v859_v62, %v778_v63  ;;  %1541 = vmatpush.msrb.mxu2 %v2702_v19  ;;  %v3166_v5 = vpop.f32.mrf.mxu2 }
 0x34b   :  { %2326 = vmatmul.msk.f32.gmra.mxu0 %vm894_vm6, %v876_v3 }
 0x34c   :  { %1542 = vmatpush.msrb.mxu2 %v2710_v20 }
 0x34e   :  { %1543 = vmatpush.msrb.mxu2 %v2729_v23 }
 0x350   :  { %1544 = vmatpush.msrb.mxu2 %v2747_v27 }
 0x352   :  { %1545 = vmatpush.msrb.mxu2 %v2765_v32  ;;  %v3171_v6 = vpop.f32.mrf.mxu2 }
 0x354   :  { %1546 = vmatpush.msrb.mxu2 %v2785_v36 }
 0x356   :  { %1547 = vmatpush.msrb.mxu2 %v2807_v40 }
 0x358   :  { %1548 = vmatpush.msrb.mxu2 %v2826_v43 }
 0x35a   :  { %1549 = vmatpush.msrb.mxu2 %v2845_v46  ;;  %v3173_v8 = vpop.f32.mrf.mxu2 }
 0x35c   :  { %1550 = vmatpush.msrb.mxu2 %v2864_v49 }
 0x35e   :  { %1551 = vmatpush.msrb.mxu2 %v2910_v59 }
 0x362   :  { %v3175_v13 = vpop.f32.mrf.mxu2 }
 0x36a   :  { %v3177_v14 = vpop.f32.mrf.mxu2 }
 0x372   :  { %v3179_v18 = vpop.f32.mrf.mxu2 }
 0x37a   :  { %v3181_v54 = vpop.f32.mrf.mxu2 }
 0x382   :  { %v3183_v55 = vpop.f32.mrf.mxu2 }
 0x383   :  { %3909 = vst [vmem:[#allocation15_spill] sm:$0xff] %v3183_v55 }
 0x38a   :  { %v3185_v56 = vpop.f32.mrf.mxu2 }
 0x38b   :  { %3910 = vst [vmem:[#allocation16_spill] sm:$0xff] %v3185_v56 }
 0x392   :  { %v3187_v0 = vpop.f32.mrf.mxu2 }
 0x393   :  { %3911 = vst [vmem:[#allocation17_spill] sm:$0xff] %v3187_v0 }
 0x39a   :  { %v3189_v10 = vpop.f32.mrf.mxu2 }
 0x39b   :  { %3912 = vst [vmem:[#allocation18_spill] sm:$0xff] %v3189_v10 }
 0x3c2   :  { %v1121_v57 = vpop.f32.mrf.mxu2 }
 0x3c8   :  { %v967_v62 = vpop.f32.mrf.mxu0 }
 0x3c9   :  { %v1124_v63 = vadd.f32 %v1121_v57, %v967_v62 }
 0x3cb   :  { %2374 = vtanh.f32 %v1124_v63  ;;  %v2342_v52 = vmul.f32 -1.442695, %v1124_v63 }
 0x3cd   :  { %2376 = vpow2.f32 %v2342_v52 }
 0x3d1   :  { %v2375_v3 = vpop.eup %2374 }
 0x3d2   :  { %1147 = vrot.lane.b32.xlu2 %v2375_v3, %s2568_s10 }
 0x3d3   :  { %v2377_v50 = vpop.eup %2376 }
 0x3d4   :  { %v1128_v47 = vadd.f32 1.0, %v2377_v50  ;;  %v2294_v50 = vld [vmem:[%s3895_s1 + $0x190] sm:$0xff] }
 0x3d5   :  { %2310 = vmatmul.msk.f32.gmra.mxu3 %vm47_vm0, %v2294_v50  ;;  %v2304_v50 = vld [vmem:[%s3895_s1 + $0x1e0] sm:$0xff] }
 0x3d6   :  { %2378 = vrcp.f32 %v1128_v47  ;;  %v1140_v51 = vand.u32 2147483648, %v1128_v47  ;;  %vm1134_vm14 = vweird.f32 %v1128_v47  ;;  %v1138_v10 = vand.u32 2147483647, %v1128_v47 }
 0x3d8   :  { %v1141_v62 = vor.u32 1.1754944e-38, %v1140_v51  ;;  %vm1139_vm1 = vcmp.eq.f32.partialorder %v1138_v10, 8.507059e+37  ;;  %v2296_v51 = vld [vmem:[%s3895_s1 + $0x1a0] sm:$0xff] }
 0x3dc   :  { %v2379_v44 = vpop.eup %2378 }
 0x3dd   :  { %v1130_v48 = vmul.f32 %v2379_v44, %v1128_v47  ;;  %vm1135_vm13 = vweird.f32 %v2379_v44  ;;  %v2295_v47 = vld [vmem:[%s3895_s1 + $0x198] sm:$0xff] }
 0x3de   :  { %vm1136_vm15 = vmor %vm1134_vm14, %vm1135_vm13  ;;  %2311 = vmatmul.msk.f32.gmra.mxu3 %vm47_vm0, %v2295_v47 }
 0x3df   :  { %v1131_v45 = vsub.f32 1.0, %v1130_v48 }
 0x3e1   :  { %v1132_v56 = vmul.f32 %v2379_v44, %v1131_v45 }
 0x3e3   :  { %v1133_v55 = vadd.f32 %v2379_v44, %v1132_v56 }
 0x3e5   :  { %v1137_v57 = vsel %vm1136_vm15, %v2379_v44, %v1133_v55 }
 0x3e6   :  { %v1142_v3 = vsel %vm1139_vm1, %v1141_v62, %v1137_v57  ;;  %2312 = vmatmul.msk.f32.gmra.mxu3 %vm47_vm0, %v2296_v51  ;;  %v2299_v57 = vld [vmem:[%s3895_s1 + $0x1b8] sm:$0xff]  ;;  %v553_v62 = vld [vmem:[%s3896_s2 + $0x10] sm:$0xff] }
 0x3e7   :  { %v1145_v45 = vmul.f32 %v1142_v3, %v3066_v60  ;;  %v2297_v60 = vld [vmem:[%s3895_s1 + $0x1a8] sm:$0xff] }
 0x3ee   :  { %2313 = vmatmul.msk.f32.gmra.mxu3 %vm47_vm0, %v2297_v60 }
 0x42c   :  { %v1148_v0 = vpop.permute.xlu2 %1147 }
 0x42d   :  { %v1150_v63 = vmul.f32 %v1148_v0, %v1142_v3  ;;  %v2298_v0 = vld [vmem:[%s3895_s1 + $0x1b0] sm:$0xff] }
 0x42e   :  { %2314 = vmatmul.msk.f32.gmra.mxu3 %vm47_vm0, %v2298_v0 }
 0x42f   :  { %1152 = vrot.lane.b32.xlu0 %v1150_v63, %s2568_s10  ;;  %v2303_v63 = vld [vmem:[%s3895_s1 + $0x1d8] sm:$0xff] }
 0x436   :  { %2315 = vmatmul.msk.f32.gmra.mxu3 %vm47_vm0, %v2299_v57 }
 0x458   :  { %v509_v10 = vpop.f32.mrf.mxu3 }
 0x4a1   :  { %v1153_v48 = vpop.permute.xlu0 %1152 }
 0x4a2   :  { %v3198_v52 = vadd.f32 %v1153_v48, %v1145_v45  ;;  %v2305_v45 = vld [vmem:[%s3895_s1 + $0x1e8] sm:$0xff]  ;;  %v2306_v48 = vld [vmem:[%s3895_s1 + $0x1f0] sm:$0xff] }
 0x4a4   :  { %2380 = vtanh.f32 %v3198_v52 }
 0x4aa   :  { %v2381_v44 = vpop.eup %2380 }
 0x4ab   :  { %1158 = vrot.lane.b32.xlu1 %v2381_v44, %s2568_s10  ;;  %v2307_v44 = vld [vmem:[%s3895_s1 + $0x1f8] sm:$0xff] }
 0x51d   :  { %v1159_v55 = vpop.permute.xlu1 %1158 }
 0x51e   :  { %v1161_v56 = vmul.f32 %v1159_v55, %v1142_v3  ;;  %v2300_v3 = vld [vmem:[%s3895_s1 + $0x1c0] sm:$0xff] }
 0x51f   :  { %2316 = vmatmul.msk.f32.gmra.mxu3 %vm47_vm0, %v2300_v3 }
 0x520   :  { %1169 = vrot.lane.b32.xlu1 %v1161_v56, %s2568_s10  ;;  %1166 = vrot.lane.b32.xlu0 %v1161_v56, %s2569_s26 }
 0x521   :  { %1163 = vrot.lane.b32.xlu2 %v1161_v56, %s2570_s27 }
 0x528   :  { %651 = vrot.lane.b32.xlu0 %v3140_v53, %s2566_s13  ;;  %715 = vrot.lane.b32.xlu1 %v509_v10, %s2565_s8  ;;  %v2301_v53 = vld [vmem:[%s3895_s1 + $0x1c8] sm:$0xff] }
 0x529   :  { %587 = vrot.lane.b32.xlu2 %v2963_v2, %s2564_s28  ;;  %2317 = vmatmul.msk.f32.gmra.mxu3 %vm47_vm0, %v2301_v53  ;;  %v2302_v2 = vld [vmem:[%s3895_s1 + $0x1d0] sm:$0xff]  ;;  %v3270_v53 = vpop.f32.mrf.mxu3 }
 0x531   :  { %779 = vrot.lane.b32.xlu2 %v553_v62, %s2567_s17  ;;  %2318 = vmatmul.msk.f32.gmra.mxu3 %vm47_vm0, %v2302_v2 }
 0x539   :  { %2319 = vmatmul.msk.f32.gmra.mxu3 %vm47_vm0, %v2303_v63 }
 0x541   :  { %2320 = vmatmul.msk.f32.gmra.mxu3 %vm47_vm0, %v2304_v50 }
 0x549   :  { %2321 = vmatmul.msk.f32.gmra.mxu3 %vm47_vm0, %v2305_v45 }
 0x551   :  { %2322 = vmatmul.msk.f32.gmra.mxu3 %vm47_vm0, %v2306_v48 }
 0x559   :  { %2323 = vmatmul.msk.f32.gmra.mxu3 %vm47_vm0, %v2307_v44 }
 0x57b   :  { %v1164_v47 = vpop.permute.xlu2 %1163 }
 0x583   :  { %v588_v51 = vpop.permute.xlu2 %587 }
 0x584   :  { %v826_v2 = vsel %vm823_vm2, %v2968_v4, %v588_v51 }
 0x58b   :  { %v780_v3 = vpop.permute.xlu2 %779 }
 0x592   :  { %v1170_v60 = vpop.permute.xlu1 %1169  ;;  %v1167_v55 = vpop.permute.xlu0 %1166 }
 0x593   :  { %v1172_v0 = vsel %vm47_vm0, %v1164_v47, %v1167_v55 }
 0x594   :  { %v1173_v10 = vsel %vm1099_vm11, %v1172_v0, %v1161_v56 }
 0x595   :  { %v1174_v57 = vsel %vm1101_vm12, %v1173_v10, %v1170_v60 }
 0x596   :  { %v1175_v62 = vmul.f32 %v1174_v57, %v2930_v61 }
 0x598   :  { %1192 = vmatmul.f32.vlgmr.msrb.gmra.mxu3 %v1175_v62 }
 0x599   :  { %1608 = vmatpush.msrb.mxu3 %v2647_v9  ;;  %v3283_v9 = vpop.f32.mrf.mxu3 }
 0x59a   :  { %v652_v63 = vpop.permute.xlu0 %651  ;;  %v716_v50 = vpop.permute.xlu1 %715 }
 0x59b   :  { %v843_v45 = vsel %vm840_vm3, %v826_v2, %v652_v63  ;;  %1609 = vmatpush.msrb.mxu3 %v2661_v12 }
 0x59c   :  { %v860_v56 = vsel %vm857_vm4, %v843_v45, %v716_v50 }
 0x59d   :  { %v877_v48 = vsel %vm874_vm5, %v860_v56, %v780_v3  ;;  %1610 = vmatpush.msrb.mxu3 %v2677_v15 }
 0x59e   :  { %2327 = vmatmul.msk.f32.gmra.mxu0 %vm894_vm6, %v877_v48 }
 0x59f   :  { %1611 = vmatpush.msrb.mxu3 %v2683_v16 }
 0x5a1   :  { %1612 = vmatpush.msrb.mxu3 %v2692_v17  ;;  %v3290_v12 = vpop.f32.mrf.mxu3 }
 0x5a3   :  { %1613 = vmatpush.msrb.mxu3 %v2702_v19 }
 0x5a5   :  { %1614 = vmatpush.msrb.mxu3 %v2710_v20 }
 0x5a7   :  { %1615 = vmatpush.msrb.mxu3 %v2729_v23 }
 0x5a9   :  { %1616 = vmatpush.msrb.mxu3 %v2747_v27  ;;  %v3297_v15 = vpop.f32.mrf.mxu3 }
 0x5ab   :  { %1617 = vmatpush.msrb.mxu3 %v2765_v32 }
 0x5ad   :  { %1618 = vmatpush.msrb.mxu3 %v2785_v36 }
 0x5af   :  { %1619 = vmatpush.msrb.mxu3 %v2807_v40 }
 0x5b1   :  { %1620 = vmatpush.msrb.mxu3 %v2826_v43  ;;  %v3300_v16 = vpop.f32.mrf.mxu3 }
 0x5b3   :  { %1621 = vmatpush.msrb.mxu3 %v2845_v46 }
 0x5b5   :  { %1622 = vmatpush.msrb.mxu3 %v2864_v49 }
 0x5b7   :  { %1623 = vmatpush.msrb.mxu3 %v2910_v59 }
 0x5b9   :  { %v3302_v17 = vpop.f32.mrf.mxu3 }
 0x5c1   :  { %v3304_v19 = vpop.f32.mrf.mxu3 }
 0x5c9   :  { %v3306_v20 = vpop.f32.mrf.mxu3 }
 0x5d1   :  { %v3308_v23 = vpop.f32.mrf.mxu3 }
 0x5d9   :  { %v3310_v27 = vpop.f32.mrf.mxu3 }
 0x5da   :  { %3913 = vst [vmem:[#allocation19_spill] sm:$0xff] %v3310_v27 }
 0x5e1   :  { %v3312_v32 = vpop.f32.mrf.mxu3 }
 0x5e9   :  { %v3314_v4 = vpop.f32.mrf.mxu3 }
 0x5f1   :  { %v3316_v44 = vpop.f32.mrf.mxu3 }
 0x5f2   :  { %3914 = vst [vmem:[#allocation20_spill] sm:$0xff] %v3316_v44 }
 0x61b   :  { %v970_v47 = vpop.f32.mrf.mxu0  ;;  %v1193_v51 = vpop.f32.mrf.mxu3 }
 0x61c   :  { %v1196_v60 = vadd.f32 %v1193_v51, %v970_v47 }
 0x61e   :  { %2382 = vtanh.f32 %v1196_v60  ;;  %v2343_v0 = vmul.f32 -1.442695, %v1196_v60 }
 0x620   :  { %2384 = vpow2.f32 %v2343_v0 }
 0x624   :  { %v2383_v55 = vpop.eup %2382 }
 0x625   :  { %1219 = vrot.lane.b32.xlu0 %v2383_v55, %s2568_s10 }
 0x626   :  { %v2385_v10 = vpop.eup %2384 }
 0x627   :  { %v1200_v57 = vadd.f32 1.0, %v2385_v10 }
 0x629   :  { %2386 = vrcp.f32 %v1200_v57  ;;  %v1212_v45 = vand.u32 2147483648, %v1200_v57  ;;  %vm1206_vm8 = vweird.f32 %v1200_v57  ;;  %v1210_v56 = vand.u32 2147483647, %v1200_v57 }
 0x62b   :  { %v1213_v47 = vor.u32 1.1754944e-38, %v1212_v45  ;;  %vm1211_vm10 = vcmp.eq.f32.partialorder %v1210_v56, 8.507059e+37 }
 0x62d   :  { %653 = vrot.lane.b32.xlu0 %v3149_v58, %s2566_s13 }
 0x62f   :  { %v2387_v62 = vpop.eup %2386 }
 0x630   :  { %v1202_v3 = vmul.f32 %v2387_v62, %v1200_v57  ;;  %vm1207_vm7 = vweird.f32 %v2387_v62 }
 0x631   :  { %vm1208_vm9 = vmor %vm1206_vm8, %vm1207_vm7 }
 0x632   :  { %v1203_v2 = vsub.f32 1.0, %v1202_v3 }
 0x634   :  { %v1204_v63 = vmul.f32 %v2387_v62, %v1203_v2 }
 0x636   :  { %v1205_v50 = vadd.f32 %v2387_v62, %v1204_v63 }
 0x638   :  { %v1209_v48 = vsel %vm1208_vm9, %v2387_v62, %v1205_v50 }
 0x639   :  { %v1214_v58 = vsel %vm1211_vm10, %v1213_v47, %v1209_v48 }
 0x63a   :  { %v1217_v55 = vmul.f32 %v1214_v58, %v3198_v52  ;;  %v554_v52 = vld [vmem:[%s3896_s2 + $0x18] sm:$0xff] }
 0x697   :  { %v1220_v51 = vpop.permute.xlu0 %1219 }
 0x698   :  { %v1222_v60 = vmul.f32 %v1220_v51, %v1214_v58 }
 0x69a   :  { %1224 = vrot.lane.b32.xlu1 %v1222_v60, %s2568_s10 }
 0x69f   :  { %v654_v2 = vpop.permute.xlu0 %653 }
 0x70c   :  { %v1225_v0 = vpop.permute.xlu1 %1224 }
 0x70d   :  { %v3323_v10 = vadd.f32 %v1225_v0, %v1217_v55 }
 0x70f   :  { %2388 = vtanh.f32 %v3323_v10 }
 0x715   :  { %v2389_v3 = vpop.eup %2388 }
 0x716   :  { %1230 = vrot.lane.b32.xlu2 %v2389_v3, %s2568_s10 }
 0x71e   :  { %589 = vrot.lane.b32.xlu2 %v2983_v7, %s2564_s28 }
 0x726   :  { %717 = vrot.lane.b32.xlu2 %v3270_v53, %s2565_s8 }
 0x770   :  { %v1231_v57 = vpop.permute.xlu2 %1230 }
 0x771   :  { %v1233_v62 = vmul.f32 %v1231_v57, %v1214_v58  ;;  %v3357_v57 = vld [vmem:[%s3899_s5 + $0x70] sm:$0xff] }
 0x773   :  { %1238 = vrot.lane.b32.xlu1 %v1233_v62, %s2569_s26  ;;  %1235 = vrot.lane.b32.xlu0 %v1233_v62, %s2570_s27 }
 0x778   :  { %v590_v63 = vpop.permute.xlu2 %589 }
 0x779   :  { %v827_v53 = vsel %vm823_vm2, %v2989_v11, %v590_v63  ;;  %v3351_v11 = vld [vmem:[%s3899_s5 + $0x78] sm:$0xff]  ;;  %v3381_v63 = vld [vmem:[%s3899_s5 + $0x50] sm:$0xff] }
 0x77a   :  { %v844_v48 = vsel %vm840_vm3, %v827_v53, %v654_v2  ;;  %v3375_v2 = vld [vmem:[%s3899_s5 + $0x58] sm:$0xff] }
 0x77b   :  { %1241 = vrot.lane.b32.xlu1 %v1233_v62, %s2568_s10  ;;  %781 = vrot.lane.b32.xlu0 %v554_v52, %s2567_s17  ;;  %v3369_v52 = vld [vmem:[%s3899_s5 + $0x60] sm:$0xff]  ;;  %v3399_v53 = vld [vmem:[%s3899_s5 + $0x38] sm:$0xff] }
 0x780   :  { %v718_v45 = vpop.permute.xlu2 %717 }
 0x781   :  { %v861_v47 = vsel %vm857_vm4, %v844_v48, %v718_v45  ;;  %v3405_v45 = vld [vmem:[%s3899_s5 + $0x30] sm:$0xff] }
 0x7e5   :  { %v1239_v7 = vpop.permute.xlu1 %1238  ;;  %v1236_v50 = vpop.permute.xlu0 %1235 }
 0x7e6   :  { %v1244_v56 = vsel %vm47_vm0, %v1236_v50, %v1239_v7  ;;  %v3387_v7 = vld [vmem:[%s3899_s5 + $0x48] sm:$0xff]  ;;  %v3393_v50 = vld [vmem:[%s3899_s5 + $0x40] sm:$0xff] }
 0x7e7   :  { %v1245_v58 = vsel %vm1099_vm11, %v1244_v56, %v1233_v62  ;;  %v3363_v62 = vld [vmem:[%s3899_s5 + $0x68] sm:$0xff] }
 0x7ed   :  { %v1242_v51 = vpop.permute.xlu1 %1241  ;;  %v782_v60 = vpop.permute.xlu0 %781 }
 0x7ee   :  { %v1246_v55 = vsel %vm1101_vm12, %v1245_v58, %v1242_v51  ;;  %v878_v0 = vsel %vm874_vm5, %v861_v47, %v782_v60 }
 0x7ef   :  { %v1247_v3 = vmul.f32 %v1246_v55, %v2930_v61  ;;  %2328 = vmatmul.msk.f32.gmra.mxu0 %vm894_vm6, %v878_v0 }
 0x7f1   :  { %1264 = vmatmul.f32.vlgmr.msra.gmra.mxu1 %v1247_v3 }
 0x7f2   :  { %1680 = vmatpush.msra.mxu1 %v3351_v11 }
 0x7f4   :  { %1681 = vmatpush.msra.mxu1 %v3357_v57 }
 0x7f6   :  { %1682 = vmatpush.msra.mxu1 %v3363_v62 }
 0x7f8   :  { %1683 = vmatpush.msra.mxu1 %v3369_v52 }
 0x7fa   :  { %1684 = vmatpush.msra.mxu1 %v3375_v2 }
 0x7fc   :  { %1685 = vmatpush.msra.mxu1 %v3381_v63 }
 0x7fe   :  { %1686 = vmatpush.msra.mxu1 %v3387_v7 }
 0x800   :  { %1687 = vmatpush.msra.mxu1 %v3393_v50 }
 0x802   :  { %1688 = vmatpush.msra.mxu1 %v3399_v53 }
 0x804   :  { %1689 = vmatpush.msra.mxu1 %v3405_v45 }
 0x806   :  { %1690 = vmatpush.msra.mxu1 %v2785_v36 }
 0x808   :  { %1691 = vmatpush.msra.mxu1 %v2807_v40 }
 0x80a   :  { %1692 = vmatpush.msra.mxu1 %v2826_v43 }
 0x80c   :  { %1693 = vmatpush.msra.mxu1 %v2845_v46 }
 0x80e   :  { %1694 = vmatpush.msra.mxu1 %v2864_v49 }
 0x810   :  { %1695 = vmatpush.msra.mxu1 %v2910_v59 }
 0x86c   :  { %v973_v56 = vpop.f32.mrf.mxu0 }
 0x86e   :  { %v1265_v48 = vpop.f32.mrf.mxu1 }
 0x86f   :  { %v1268_v47 = vadd.f32 %v1265_v48, %v973_v56 }
 0x871   :  { %2390 = vtanh.f32 %v1268_v47  ;;  %v2344_v58 = vmul.f32 -1.442695, %v1268_v47 }
 0x873   :  { %2392 = vpow2.f32 %v2344_v58 }
 0x877   :  { %v2391_v51 = vpop.eup %2390 }
 0x878   :  { %1291 = vrot.lane.b32.xlu1 %v2391_v51, %s2568_s10 }
 0x879   :  { %v2393_v36 = vpop.eup %2392 }
 0x87a   :  { %v1272_v60 = vadd.f32 1.0, %v2393_v36 }
 0x87c   :  { %2394 = vrcp.f32 %v1272_v60  ;;  %v1284_v49 = vand.u32 2147483648, %v1272_v60  ;;  %vm1278_vm14 = vweird.f32 %v1272_v60  ;;  %v1282_v59 = vand.u32 2147483647, %v1272_v60 }
 0x87e   :  { %v1285_v56 = vor.u32 1.1754944e-38, %v1284_v49  ;;  %vm1283_vm1 = vcmp.eq.f32.partialorder %v1282_v59, 8.507059e+37 }
 0x882   :  { %v2395_v40 = vpop.eup %2394 }
 0x883   :  { %v1274_v43 = vmul.f32 %v2395_v40, %v1272_v60  ;;  %vm1279_vm13 = vweird.f32 %v2395_v40 }
 0x884   :  { %vm1280_vm15 = vmor %vm1278_vm14, %vm1279_vm13 }
 0x885   :  { %v1275_v55 = vsub.f32 1.0, %v1274_v43 }
 0x887   :  { %v1276_v46 = vmul.f32 %v2395_v40, %v1275_v55 }
 0x889   :  { %v1277_v0 = vadd.f32 %v2395_v40, %v1276_v46 }
 0x88b   :  { %v1281_v3 = vsel %vm1280_vm15, %v2395_v40, %v1277_v0 }
 0x88c   :  { %v1286_v51 = vsel %vm1283_vm1, %v1285_v56, %v1281_v3 }
 0x88d   :  { %v1289_v58 = vmul.f32 %v1286_v51, %v3323_v10  ;;  %v555_v10 = vld [vmem:[%s3896_s2 + $0x20] sm:$0xff] }
 0x8ea   :  { %v1292_v48 = vpop.permute.xlu1 %1291 }
 0x8eb   :  { %v1294_v47 = vmul.f32 %v1292_v48, %v1286_v51 }
 0x8ed   :  { %1296 = vrot.lane.b32.xlu2 %v1294_v47, %s2568_s10 }
 0x947   :  { %v1297_v36 = vpop.permute.xlu2 %1296 }
 0x948   :  { %v3417_v44 = vadd.f32 %v1297_v36, %v1289_v58  ;;  %v3463_v36 = vld [vmem:[%s3899_s5 + $0x20] sm:$0xff] }
 0x94a   :  { %2396 = vtanh.f32 %v3417_v44 }
 0x950   :  { %v2397_v43 = vpop.eup %2396 }
 0x951   :  { %1302 = vrot.lane.b32.xlu0 %v2397_v43, %s2568_s10  ;;  %v3469_v43 = vld [vmem:[%s3899_s5 + $0x18] sm:$0xff] }
 0x9c3   :  { %v1303_v60 = vpop.permute.xlu0 %1302 }
 0x9c4   :  { %v1305_v55 = vmul.f32 %v1303_v60, %v1286_v51  ;;  %v3475_v60 = vld [vmem:[%s3899_s5 + $0x10] sm:$0xff] }
 0x9c6   :  { %1313 = vrot.lane.b32.xlu0 %v1305_v55, %s2568_s10  ;;  %1310 = vrot.lane.b32.xlu2 %v1305_v55, %s2569_s26 }
 0x9c7   :  { %1307 = vrot.lane.b32.xlu1 %v1305_v55, %s2570_s27 }
 0x9ce   :  { %719 = vrot.lane.b32.xlu0 %v3283_v9, %s2565_s8  ;;  %655 = vrot.lane.b32.xlu2 %v3159_v1, %s2566_s13 }
 0x9cf   :  { %591 = vrot.lane.b32.xlu1 %v2998_v21, %s2564_s28 }
 0x9d7   :  { %783 = vrot.lane.b32.xlu1 %v555_v10, %s2567_s17  ;;  %v3487_v10 = vld [vmem:[%s3899_s5] sm:$0xff] }
 0xa20   :  { %v1311_v40 = vpop.permute.xlu2 %1310 }
 0xa28   :  { %v656_v56 = vpop.permute.xlu2 %655 }
 0xa38   :  { %v1314_v49 = vpop.permute.xlu0 %1313 }
 0xa39   :  { %v1308_v46 = vpop.permute.xlu1 %1307 }
 0xa3a   :  { %v1316_v0 = vsel %vm47_vm0, %v1308_v46, %v1311_v40 }
 0xa3b   :  { %v1317_v59 = vsel %vm1099_vm11, %v1316_v0, %v1305_v55  ;;  %v3481_v55 = vld [vmem:[%s3899_s5 + $0x8] sm:$0xff] }
 0xa3c   :  { %v1318_v9 = vsel %vm1101_vm12, %v1317_v59, %v1314_v49 }
 0xa3d   :  { %v1319_v1 = vmul.f32 %v1318_v9, %v2930_v61 }
 0xa3f   :  { %1336 = vmatmul.f32.vlgmr.msra.gmra.mxu2 %v1319_v1 }
 0xa40   :  { %1752 = vmatpush.msra.mxu2 %v3351_v11  ;;  %v720_v51 = vpop.permute.xlu0 %719 }
 0xa41   :  { %v592_v21 = vpop.permute.xlu1 %591 }
 0xa42   :  { %1753 = vmatpush.msra.mxu2 %v3357_v57  ;;  %v828_v3 = vsel %vm823_vm2, %v3001_v22, %v592_v21  ;;  %v3457_v22 = vld [vmem:[%s3899_s5 + $0x28] sm:$0xff] }
 0xa43   :  { %v845_v48 = vsel %vm840_vm3, %v828_v3, %v656_v56 }
 0xa44   :  { %1754 = vmatpush.msra.mxu2 %v3363_v62  ;;  %v862_v47 = vsel %vm857_vm4, %v845_v48, %v720_v51 }
 0xa46   :  { %1755 = vmatpush.msra.mxu2 %v3369_v52 }
 0xa48   :  { %1756 = vmatpush.msra.mxu2 %v3375_v2 }
 0xa49   :  { %v784_v61 = vpop.permute.xlu1 %783 }
 0xa4a   :  { %v879_v58 = vsel %vm874_vm5, %v862_v47, %v784_v61  ;;  %1757 = vmatpush.msra.mxu2 %v3381_v63 }
 0xa4b   :  { %2329 = vmatmul.msk.f32.gmra.mxu0 %vm894_vm6, %v879_v58 }
 0xa4c   :  { %1758 = vmatpush.msra.mxu2 %v3387_v7 }
 0xa4e   :  { %1759 = vmatpush.msra.mxu2 %v3393_v50 }
 0xa50   :  { %1760 = vmatpush.msra.mxu2 %v3399_v53 }
 0xa52   :  { %1761 = vmatpush.msra.mxu2 %v3405_v45 }
 0xa54   :  { %1762 = vmatpush.msra.mxu2 %v3457_v22 }
 0xa56   :  { %1763 = vmatpush.msra.mxu2 %v3463_v36 }
 0xa58   :  { %1764 = vmatpush.msra.mxu2 %v3469_v43 }
 0xa5a   :  { %1765 = vmatpush.msra.mxu2 %v3475_v60 }
 0xa5c   :  { %1766 = vmatpush.msra.mxu2 %v3481_v55 }
 0xa5e   :  { %1767 = vmatpush.msra.mxu2 %v3487_v10 }
 0xac2   :  { %v1337_v40 = vpop.f32.mrf.mxu2 }
 0xac8   :  { %v976_v46 = vpop.f32.mrf.mxu0 }
 0xac9   :  { %v1340_v0 = vadd.f32 %v1337_v40, %v976_v46 }
 0xacb   :  { %2398 = vtanh.f32 %v1340_v0  ;;  %v2345_v59 = vmul.f32 -1.442695, %v1340_v0 }
 0xacd   :  { %2400 = vpow2.f32 %v2345_v59 }
 0xad1   :  { %v2399_v49 = vpop.eup %2398 }
 0xad2   :  { %1363 = vrot.lane.b32.xlu2 %v2399_v49, %s2568_s10 }
 0xad3   :  { %v2401_v9 = vpop.eup %2400 }
 0xad4   :  { %v1344_v1 = vadd.f32 1.0, %v2401_v9 }
 0xad6   :  { %2402 = vrcp.f32 %v1344_v1  ;;  %v1356_v61 = vand.u32 2147483648, %v1344_v1  ;;  %vm1350_vm8 = vweird.f32 %v1344_v1  ;;  %v1354_v47 = vand.u32 2147483647, %v1344_v1 }
 0xad8   :  { %v1357_v40 = vor.u32 1.1754944e-38, %v1356_v61  ;;  %vm1355_vm10 = vcmp.eq.f32.partialorder %v1354_v47, 8.507059e+37 }
 0xadc   :  { %v2403_v21 = vpop.eup %2402 }
 0xadd   :  { %v1346_v3 = vmul.f32 %v2403_v21, %v1344_v1  ;;  %vm1351_vm7 = vweird.f32 %v2403_v21 }
 0xade   :  { %vm1352_vm9 = vmor %vm1350_vm8, %vm1351_vm7 }
 0xadf   :  { %v1347_v56 = vsub.f32 1.0, %v1346_v3 }
 0xae1   :  { %v1348_v48 = vmul.f32 %v2403_v21, %v1347_v56 }
 0xae3   :  { %v1349_v51 = vadd.f32 %v2403_v21, %v1348_v48 }
 0xae5   :  { %v1353_v58 = vsel %vm1352_vm9, %v2403_v21, %v1349_v51 }
 0xae6   :  { %v1358_v49 = vsel %vm1355_vm10, %v1357_v40, %v1353_v58 }
 0xae7   :  { %v1361_v59 = vmul.f32 %v1358_v49, %v3417_v44  ;;  %v556_v44 = vld [vmem:[%s3896_s2 + $0x28] sm:$0xff] }
 0xb2c   :  { %v1364_v46 = vpop.permute.xlu2 %1363 }
 0xb2d   :  { %v1366_v0 = vmul.f32 %v1364_v46, %v1358_v49 }
 0xb2f   :  { %1368 = vrot.lane.b32.xlu0 %v1366_v0, %s2568_s10 }
 0xba1   :  { %v1369_v9 = vpop.permute.xlu0 %1368 }
 0xba2   :  { %v3493_v27 = vadd.f32 %v1369_v9, %v1361_v59 }
 0xba4   :  { %2404 = vtanh.f32 %v3493_v27 }
 0xbaa   :  { %v2405_v3 = vpop.eup %2404 }
 0xbab   :  { %1374 = vrot.lane.b32.xlu1 %v2405_v3, %s2568_s10 }
 0xc1d   :  { %v1375_v1 = vpop.permute.xlu1 %1374 }
 0xc1e   :  { %v1377_v56 = vmul.f32 %v1375_v1, %v1358_v49 }
 0xc20   :  { %1385 = vrot.lane.b32.xlu1 %v1377_v56, %s2568_s10  ;;  %1382 = vrot.lane.b32.xlu0 %v1377_v56, %s2569_s26 }
 0xc21   :  { %1379 = vrot.lane.b32.xlu2 %v1377_v56, %s2570_s27 }
 0xc28   :  { %721 = vrot.lane.b32.xlu1 %v3290_v12, %s2565_s8  ;;  %657 = vrot.lane.b32.xlu0 %v3166_v5, %s2566_s13 }
 0xc29   :  { %593 = vrot.lane.b32.xlu2 %v3007_v24, %s2564_s28  ;;  %v3516_v24 = vld [vmem:[%s3897_s3] sm:$0xff] }
 0xc31   :  { %785 = vrot.lane.b32.xlu2 %v556_v44, %s2567_s17 }
 0xc7b   :  { %v1380_v21 = vpop.permute.xlu2 %1379 }
 0xc83   :  { %v594_v48 = vpop.permute.xlu2 %593 }
 0xc84   :  { %v829_v46 = vsel %vm823_vm2, %v3010_v25, %v594_v48 }
 0xc8b   :  { %v786_v40 = vpop.permute.xlu2 %785 }
 0xc92   :  { %v1386_v51 = vpop.permute.xlu1 %1385  ;;  %v1383_v61 = vpop.permute.xlu0 %1382 }
 0xc93   :  { %v1388_v47 = vsel %vm47_vm0, %v1380_v21, %v1383_v61 }
 0xc94   :  { %v1389_v12 = vsel %vm1099_vm11, %v1388_v47, %v1377_v56 }
 0xc95   :  { %v1390_v58 = vsel %vm1101_vm12, %v1389_v12, %v1386_v51 }
 0xc96   :  { %v1391_v5 = vmul.f32 %v3516_v24, %v1390_v58 }
 0xc98   :  { %1408 = vmatmul.f32.vlgmr.msra.gmra.mxu3 %v1391_v5 }
 0xc99   :  { %1824 = vmatpush.msra.mxu3 %v3351_v11 }
 0xc9a   :  { %v722_v49 = vpop.permute.xlu1 %721  ;;  %v658_v0 = vpop.permute.xlu0 %657 }
 0xc9b   :  { %v846_v59 = vsel %vm840_vm3, %v829_v46, %v658_v0  ;;  %1825 = vmatpush.msra.mxu3 %v3357_v57 }
 0xc9c   :  { %v863_v9 = vsel %vm857_vm4, %v846_v59, %v722_v49 }
 0xc9d   :  { %v880_v3 = vsel %vm874_vm5, %v863_v9, %v786_v40  ;;  %1826 = vmatpush.msra.mxu3 %v3363_v62 }
 0xc9e   :  { %2330 = vmatmul.msk.f32.gmra.mxu0 %vm894_vm6, %v880_v3 }
 0xc9f   :  { %1827 = vmatpush.msra.mxu3 %v3369_v52 }
 0xca1   :  { %1828 = vmatpush.msra.mxu3 %v3375_v2 }
 0xca3   :  { %1829 = vmatpush.msra.mxu3 %v3381_v63 }
 0xca5   :  { %1830 = vmatpush.msra.mxu3 %v3387_v7 }
 0xca7   :  { %1831 = vmatpush.msra.mxu3 %v3393_v50 }
 0xca9   :  { %1832 = vmatpush.msra.mxu3 %v3399_v53 }
 0xcab   :  { %1833 = vmatpush.msra.mxu3 %v3405_v45 }
 0xcad   :  { %1834 = vmatpush.msra.mxu3 %v3457_v22 }
 0xcaf   :  { %1835 = vmatpush.msra.mxu3 %v3463_v36 }
 0xcb1   :  { %1836 = vmatpush.msra.mxu3 %v3469_v43 }
 0xcb3   :  { %1837 = vmatpush.msra.mxu3 %v3475_v60 }
 0xcb5   :  { %1838 = vmatpush.msra.mxu3 %v3481_v55 }
 0xcb7   :  { %1839 = vmatpush.msra.mxu3 %v3487_v10 }
 0xd1b   :  { %v979_v25 = vpop.f32.mrf.mxu0  ;;  %v1409_v1 = vpop.f32.mrf.mxu3 }
 0xd1c   :  { %v1412_v56 = vadd.f32 %v1409_v1, %v979_v25 }
 0xd1e   :  { %2406 = vtanh.f32 %v1412_v56  ;;  %v2346_v21 = vmul.f32 -1.442695, %v1412_v56 }
 0xd20   :  { %2408 = vpow2.f32 %v2346_v21 }
 0xd24   :  { %v2407_v44 = vpop.eup %2406 }
 0xd25   :  { %1435 = vrot.lane.b32.xlu0 %v2407_v44, %s2568_s10 }
 0xd26   :  { %v2409_v48 = vpop.eup %2408 }
 0xd27   :  { %v1416_v51 = vadd.f32 1.0, %v2409_v48 }
 0xd29   :  { %2410 = vrcp.f32 %v1416_v51  ;;  %v1428_v40 = vand.u32 2147483648, %v1416_v51  ;;  %vm1422_vm14 = vweird.f32 %v1416_v51  ;;  %v1426_v46 = vand.u32 2147483647, %v1416_v51 }
 0xd2b   :  { %v1429_v0 = vor.u32 1.1754944e-38, %v1428_v40  ;;  %vm1427_vm1 = vcmp.eq.f32.partialorder %v1426_v46, 8.507059e+37 }
 0xd2d   :  { %659 = vrot.lane.b32.xlu0 %v3171_v6, %s2566_s13 }
 0xd2f   :  { %v2411_v61 = vpop.eup %2410 }
 0xd30   :  { %v1418_v47 = vmul.f32 %v2411_v61, %v1416_v51  ;;  %vm1423_vm13 = vweird.f32 %v2411_v61 }
 0xd31   :  { %vm1424_vm15 = vmor %vm1422_vm14, %vm1423_vm13 }
 0xd32   :  { %v1419_v12 = vsub.f32 1.0, %v1418_v47 }
 0xd34   :  { %v1420_v58 = vmul.f32 %v2411_v61, %v1419_v12 }
 0xd36   :  { %v1421_v5 = vadd.f32 %v2411_v61, %v1420_v58 }
 0xd38   :  { %v1425_v49 = vsel %vm1424_vm15, %v2411_v61, %v1421_v5 }
 0xd39   :  { %v1430_v6 = vsel %vm1427_vm1, %v1429_v0, %v1425_v49 }
 0xd3a   :  { %v1433_v3 = vmul.f32 %v1430_v6, %v3493_v27  ;;  %v557_v27 = vld [vmem:[%s3896_s2 + $0x30] sm:$0xff] }
 0xd97   :  { %v1436_v59 = vpop.permute.xlu0 %1435 }
 0xd98   :  { %v1438_v9 = vmul.f32 %v1436_v59, %v1430_v6 }
 0xd9a   :  { %1440 = vrot.lane.b32.xlu1 %v1438_v9, %s2568_s10 }
 0xd9f   :  { %v660_v48 = vpop.permute.xlu0 %659 }
 0xe0c   :  { %v1441_v25 = vpop.permute.xlu1 %1440 }
 0xe0d   :  { %v3546_v1 = vadd.f32 %v1441_v25, %v1433_v3 }
 0xe0f   :  { %2412 = vtanh.f32 %v3546_v1 }
 0xe15   :  { %v2413_v56 = vpop.eup %2412 }
 0xe16   :  { %1446 = vrot.lane.b32.xlu2 %v2413_v56, %s2568_s10 }
 0xe1e   :  { %595 = vrot.lane.b32.xlu2 %v3016_v26, %s2564_s28 }
 0xe26   :  { %723 = vrot.lane.b32.xlu2 %v3297_v15, %s2565_s8 }
 0xe70   :  { %v1447_v44 = vpop.permute.xlu2 %1446 }
 0xe71   :  { %v1449_v21 = vmul.f32 %v1447_v44, %v1430_v6 }
 0xe73   :  { %1454 = vrot.lane.b32.xlu1 %v1449_v21, %s2569_s26  ;;  %1451 = vrot.lane.b32.xlu0 %v1449_v21, %s2570_s27 }
 0xe78   :  { %v596_v51 = vpop.permute.xlu2 %595 }
 0xe79   :  { %v830_v15 = vsel %vm823_vm2, %v3018_v28, %v596_v51 }
 0xe7a   :  { %v847_v58 = vsel %vm840_vm3, %v830_v15, %v660_v48 }
 0xe7b   :  { %1457 = vrot.lane.b32.xlu1 %v1449_v21, %s2568_s10  ;;  %787 = vrot.lane.b32.xlu0 %v557_v27, %s2567_s17 }
 0xe80   :  { %v724_v47 = vpop.permute.xlu2 %723 }
 0xe81   :  { %v864_v5 = vsel %vm857_vm4, %v847_v58, %v724_v47 }
 0xee5   :  { %v1455_v26 = vpop.permute.xlu1 %1454  ;;  %v1452_v61 = vpop.permute.xlu0 %1451 }
 0xee6   :  { %v1460_v12 = vsel %vm47_vm0, %v1452_v61, %v1455_v26 }
 0xee7   :  { %v1461_v46 = vsel %vm1099_vm11, %v1460_v12, %v1449_v21 }
 0xeed   :  { %v1458_v40 = vpop.permute.xlu1 %1457  ;;  %v788_v49 = vpop.permute.xlu0 %787 }
 0xeee   :  { %v1462_v0 = vsel %vm1101_vm12, %v1461_v46, %v1458_v40  ;;  %v881_v59 = vsel %vm874_vm5, %v864_v5, %v788_v49 }
 0xeef   :  { %v1463_v6 = vmul.f32 %v3516_v24, %v1462_v0  ;;  %2331 = vmatmul.msk.f32.gmra.mxu0 %vm894_vm6, %v881_v59 }
 0xef1   :  { %1480 = vmatmul.f32.vlgmr.msrb.gmra.mxu1 %v1463_v6 }
 0xef2   :  { %1968 = vmatpush.msrb.mxu1 %v3351_v11 }
 0xef4   :  { %1969 = vmatpush.msrb.mxu1 %v3357_v57 }
 0xef6   :  { %1970 = vmatpush.msrb.mxu1 %v3363_v62 }
 0xef8   :  { %1971 = vmatpush.msrb.mxu1 %v3369_v52 }
 0xefa   :  { %1972 = vmatpush.msrb.mxu1 %v3375_v2 }
 0xefc   :  { %1973 = vmatpush.msrb.mxu1 %v3381_v63 }
 0xefe   :  { %1974 = vmatpush.msrb.mxu1 %v3387_v7 }
 0xf00   :  { %1975 = vmatpush.msrb.mxu1 %v3393_v50 }
 0xf02   :  { %1976 = vmatpush.msrb.mxu1 %v3399_v53 }
 0xf04   :  { %1977 = vmatpush.msrb.mxu1 %v3405_v45 }
 0xf06   :  { %1978 = vmatpush.msrb.mxu1 %v3457_v22 }
 0xf08   :  { %1979 = vmatpush.msrb.mxu1 %v3463_v36 }
 0xf0a   :  { %1980 = vmatpush.msrb.mxu1 %v3469_v43 }
 0xf0c   :  { %1981 = vmatpush.msrb.mxu1 %v3475_v60 }
 0xf0e   :  { %1982 = vmatpush.msrb.mxu1 %v3481_v55 }
 0xf10   :  { %1983 = vmatpush.msrb.mxu1 %v3487_v10 }
 0xf6c   :  { %v982_v28 = vpop.f32.mrf.mxu0 }
 0xf6e   :  { %v1481_v9 = vpop.f32.mrf.mxu1 }
 0xf6f   :  { %v1484_v3 = vadd.f32 %v1481_v9, %v982_v28 }
 0xf71   :  { %2414 = vtanh.f32 %v1484_v3  ;;  %v2347_v56 = vmul.f32 -1.442695, %v1484_v3 }
 0xf73   :  { %2416 = vpow2.f32 %v2347_v56 }
 0xf77   :  { %v2415_v25 = vpop.eup %2414 }
 0xf78   :  { %1507 = vrot.lane.b32.xlu1 %v2415_v25, %s2568_s10 }
 0xf79   :  { %v2417_v44 = vpop.eup %2416 }
 0xf7a   :  { %v1488_v21 = vadd.f32 1.0, %v2417_v44 }
 0xf7c   :  { %2418 = vrcp.f32 %v1488_v21  ;;  %v1500_v15 = vand.u32 2147483648, %v1488_v21  ;;  %vm1494_vm8 = vweird.f32 %v1488_v21  ;;  %v1498_v47 = vand.u32 2147483647, %v1488_v21 }
 0xf7e   :  { %v1501_v58 = vor.u32 1.1754944e-38, %v1500_v15  ;;  %vm1499_vm10 = vcmp.eq.f32.partialorder %v1498_v47, 8.507059e+37 }
 0xf82   :  { %v2419_v27 = vpop.eup %2418 }
 0xf83   :  { %v1490_v48 = vmul.f32 %v2419_v27, %v1488_v21  ;;  %vm1495_vm7 = vweird.f32 %v2419_v27 }
 0xf84   :  { %vm1496_vm9 = vmor %vm1494_vm8, %vm1495_vm7 }
 0xf85   :  { %v1491_v51 = vsub.f32 1.0, %v1490_v48 }
 0xf87   :  { %v1492_v26 = vmul.f32 %v2419_v27, %v1491_v51 }
 0xf89   :  { %v1493_v61 = vadd.f32 %v2419_v27, %v1492_v26 }
 0xf8b   :  { %v1497_v12 = vsel %vm1496_vm9, %v2419_v27, %v1493_v61 }
 0xf8c   :  { %v1502_v40 = vsel %vm1499_vm10, %v1501_v58, %v1497_v12 }
 0xf8d   :  { %v1505_v49 = vmul.f32 %v1502_v40, %v3546_v1  ;;  %v558_v1 = vld [vmem:[%s3896_s2 + $0x38] sm:$0xff] }
 0xfea   :  { %v1508_v5 = vpop.permute.xlu1 %1507 }
 0xfeb   :  { %v1510_v46 = vmul.f32 %v1508_v5, %v1502_v40 }
 0xfed   :  { %1512 = vrot.lane.b32.xlu2 %v1510_v46, %s2568_s10 }
0x1047   :  { %v1513_v0 = vpop.permute.xlu2 %1512 }
0x1048   :  { %v3590_v59 = vadd.f32 %v1513_v0, %v1505_v49 }
0x104a   :  { %2420 = vtanh.f32 %v3590_v59 }
0x1050   :  { %v2421_v6 = vpop.eup %2420 }
0x1051   :  { %1518 = vrot.lane.b32.xlu0 %v2421_v6, %s2568_s10 }
0x10c3   :  { %v1519_v28 = vpop.permute.xlu0 %1518 }
0x10c4   :  { %v1521_v9 = vmul.f32 %v1519_v28, %v1502_v40 }
0x10c6   :  { %1529 = vrot.lane.b32.xlu0 %v1521_v9, %s2568_s10  ;;  %1526 = vrot.lane.b32.xlu2 %v1521_v9, %s2569_s26 }
0x10c7   :  { %1523 = vrot.lane.b32.xlu1 %v1521_v9, %s2570_s27 }
0x10ce   :  { %725 = vrot.lane.b32.xlu0 %v3300_v16, %s2565_s8  ;;  %661 = vrot.lane.b32.xlu2 %v3173_v8, %s2566_s13 }
0x10cf   :  { %597 = vrot.lane.b32.xlu1 %v3020_v29, %s2564_s28 }
0x10d7   :  { %789 = vrot.lane.b32.xlu1 %v558_v1, %s2567_s17 }
0x1120   :  { %v1527_v3 = vpop.permute.xlu2 %1526 }
0x1128   :  { %v662_v48 = vpop.permute.xlu2 %661 }
0x1138   :  { %v1530_v44 = vpop.permute.xlu0 %1529 }
0x1139   :  { %v1524_v25 = vpop.permute.xlu1 %1523 }
0x113a   :  { %v1532_v56 = vsel %vm47_vm0, %v1524_v25, %v1527_v3 }
0x113b   :  { %v1533_v21 = vsel %vm1099_vm11, %v1532_v56, %v1521_v9 }
0x113c   :  { %v1534_v16 = vsel %vm1101_vm12, %v1533_v21, %v1530_v44 }
0x113d   :  { %v1535_v8 = vmul.f32 %v3516_v24, %v1534_v16 }
0x113f   :  { %1552 = vmatmul.f32.vlgmr.msrb.gmra.mxu2 %v1535_v8 }
0x1140   :  { %2040 = vmatpush.msrb.mxu2 %v3351_v11  ;;  %v726_v26 = vpop.permute.xlu0 %725 }
0x1141   :  { %v598_v29 = vpop.permute.xlu1 %597 }
0x1142   :  { %2041 = vmatpush.msrb.mxu2 %v3357_v57  ;;  %v831_v27 = vsel %vm823_vm2, %v3022_v30, %v598_v29 }
0x1143   :  { %v848_v51 = vsel %vm840_vm3, %v831_v27, %v662_v48 }
0x1144   :  { %2042 = vmatpush.msrb.mxu2 %v3363_v62  ;;  %v865_v15 = vsel %vm857_vm4, %v848_v51, %v726_v26 }
0x1146   :  { %2043 = vmatpush.msrb.mxu2 %v3369_v52 }
0x1148   :  { %2044 = vmatpush.msrb.mxu2 %v3375_v2 }
0x1149   :  { %v790_v61 = vpop.permute.xlu1 %789 }
0x114a   :  { %v882_v47 = vsel %vm874_vm5, %v865_v15, %v790_v61  ;;  %2045 = vmatpush.msrb.mxu2 %v3381_v63 }
0x114b   :  { %2332 = vmatmul.msk.f32.gmra.mxu0 %vm894_vm6, %v882_v47 }
0x114c   :  { %2046 = vmatpush.msrb.mxu2 %v3387_v7 }
0x114e   :  { %2047 = vmatpush.msrb.mxu2 %v3393_v50 }
0x1150   :  { %2048 = vmatpush.msrb.mxu2 %v3399_v53 }
0x1152   :  { %2049 = vmatpush.msrb.mxu2 %v3405_v45 }
0x1154   :  { %2050 = vmatpush.msrb.mxu2 %v3457_v22 }
0x1156   :  { %2051 = vmatpush.msrb.mxu2 %v3463_v36 }
0x1158   :  { %2052 = vmatpush.msrb.mxu2 %v3469_v43 }
0x115a   :  { %2053 = vmatpush.msrb.mxu2 %v3475_v60 }
0x115c   :  { %2054 = vmatpush.msrb.mxu2 %v3481_v55 }
0x115e   :  { %2055 = vmatpush.msrb.mxu2 %v3487_v10 }
0x11c2   :  { %v1553_v30 = vpop.f32.mrf.mxu2 }
0x11c8   :  { %v985_v12 = vpop.f32.mrf.mxu0 }
0x11c9   :  { %v1556_v58 = vadd.f32 %v1553_v30, %v985_v12 }
0x11cb   :  { %2422 = vtanh.f32 %v1556_v58  ;;  %v2348_v40 = vmul.f32 -1.442695, %v1556_v58 }
0x11cd   :  { %2424 = vpow2.f32 %v2348_v40 }
0x11d1   :  { %v2423_v5 = vpop.eup %2422 }
0x11d2   :  { %1579 = vrot.lane.b32.xlu2 %v2423_v5, %s2568_s10 }
0x11d3   :  { %v2425_v46 = vpop.eup %2424 }
0x11d4   :  { %v1560_v49 = vadd.f32 1.0, %v2425_v46 }
0x11d6   :  { %2426 = vrcp.f32 %v1560_v49  ;;  %v1572_v3 = vand.u32 2147483648, %v1560_v49  ;;  %vm1566_vm14 = vweird.f32 %v1560_v49  ;;  %v1570_v25 = vand.u32 2147483647, %v1560_v49 }
0x11d8   :  { %v1573_v44 = vor.u32 1.1754944e-38, %v1572_v3  ;;  %vm1571_vm1 = vcmp.eq.f32.partialorder %v1570_v25, 8.507059e+37 }
0x11dc   :  { %v2427_v0 = vpop.eup %2426 }
0x11dd   :  { %v1562_v6 = vmul.f32 %v2427_v0, %v1560_v49  ;;  %vm1567_vm13 = vweird.f32 %v2427_v0 }
0x11de   :  { %vm1568_vm15 = vmor %vm1566_vm14, %vm1567_vm13 }
0x11df   :  { %v1563_v28 = vsub.f32 1.0, %v1562_v6 }
0x11e1   :  { %v1564_v9 = vmul.f32 %v2427_v0, %v1563_v28 }
0x11e3   :  { %v1565_v1 = vadd.f32 %v2427_v0, %v1564_v9 }
0x11e5   :  { %v1569_v56 = vsel %vm1568_vm15, %v2427_v0, %v1565_v1 }
0x11e6   :  { %v1574_v16 = vsel %vm1571_vm1, %v1573_v44, %v1569_v56 }
0x11e7   :  { %v1577_v29 = vmul.f32 %v1574_v16, %v3590_v59  ;;  %v559_v59 = vld [vmem:[%s3896_s2 + $0x40] sm:$0xff] }
0x122c   :  { %v1580_v21 = vpop.permute.xlu2 %1579 }
0x122d   :  { %v1582_v8 = vmul.f32 %v1580_v21, %v1574_v16 }
0x122f   :  { %1584 = vrot.lane.b32.xlu0 %v1582_v8, %s2568_s10 }
0x12a1   :  { %v1585_v27 = vpop.permute.xlu0 %1584 }
0x12a2   :  { %v3636_v48 = vadd.f32 %v1585_v27, %v1577_v29 }
0x12a4   :  { %2428 = vtanh.f32 %v3636_v48 }
0x12aa   :  { %v2429_v51 = vpop.eup %2428 }
0x12ab   :  { %1590 = vrot.lane.b32.xlu1 %v2429_v51, %s2568_s10 }
0x131d   :  { %v1591_v26 = vpop.permute.xlu1 %1590 }
0x131e   :  { %v1593_v61 = vmul.f32 %v1591_v26, %v1574_v16  ;;  %v560_v16 = vld [vmem:[%s3896_s2 + $0x48] sm:$0xff] }
0x1320   :  { %1601 = vrot.lane.b32.xlu1 %v1593_v61, %s2568_s10  ;;  %1598 = vrot.lane.b32.xlu0 %v1593_v61, %s2569_s26 }
0x1321   :  { %1595 = vrot.lane.b32.xlu2 %v1593_v61, %s2570_s27 }
0x1328   :  { %727 = vrot.lane.b32.xlu1 %v3302_v17, %s2565_s8  ;;  %663 = vrot.lane.b32.xlu0 %v3175_v13, %s2566_s13 }
0x1329   :  { %599 = vrot.lane.b32.xlu2 %v3024_v31, %s2564_s28 }
0x1331   :  { %791 = vrot.lane.b32.xlu2 %v559_v59, %s2567_s17 }
0x137b   :  { %v1596_v15 = vpop.permute.xlu2 %1595 }
0x1383   :  { %v600_v47 = vpop.permute.xlu2 %599 }
0x1384   :  { %v832_v40 = vsel %vm823_vm2, %v3026_v33, %v600_v47 }
0x138b   :  { %v792_v31 = vpop.permute.xlu2 %791 }
0x1392   :  { %v1602_v30 = vpop.permute.xlu1 %1601  ;;  %v1599_v12 = vpop.permute.xlu0 %1598 }
0x1393   :  { %v1604_v58 = vsel %vm47_vm0, %v1596_v15, %v1599_v12 }
0x1394   :  { %v1605_v17 = vsel %vm1099_vm11, %v1604_v58, %v1593_v61 }
0x1395   :  { %v1606_v5 = vsel %vm1101_vm12, %v1605_v17, %v1602_v30 }
0x1396   :  { %v1607_v13 = vmul.f32 %v3516_v24, %v1606_v5 }
0x1398   :  { %1624 = vmatmul.f32.vlgmr.msrb.gmra.mxu3 %v1607_v13 }
0x1399   :  { %2112 = vmatpush.msrb.mxu3 %v3351_v11 }
0x139a   :  { %v728_v46 = vpop.permute.xlu1 %727  ;;  %v664_v49 = vpop.permute.xlu0 %663 }
0x139b   :  { %v849_v0 = vsel %vm840_vm3, %v832_v40, %v664_v49  ;;  %2113 = vmatpush.msrb.mxu3 %v3357_v57 }
0x139c   :  { %v866_v6 = vsel %vm857_vm4, %v849_v0, %v728_v46 }
0x139d   :  { %v883_v28 = vsel %vm874_vm5, %v866_v6, %v792_v31  ;;  %2114 = vmatpush.msrb.mxu3 %v3363_v62 }
0x139e   :  { %2333 = vmatmul.msk.f32.gmra.mxu0 %vm894_vm6, %v883_v28 }
0x139f   :  { %2115 = vmatpush.msrb.mxu3 %v3369_v52 }
0x13a1   :  { %2116 = vmatpush.msrb.mxu3 %v3375_v2 }
0x13a3   :  { %2117 = vmatpush.msrb.mxu3 %v3381_v63 }
0x13a5   :  { %2118 = vmatpush.msrb.mxu3 %v3387_v7 }
0x13a7   :  { %2119 = vmatpush.msrb.mxu3 %v3393_v50 }
0x13a9   :  { %2120 = vmatpush.msrb.mxu3 %v3399_v53 }
0x13ab   :  { %2121 = vmatpush.msrb.mxu3 %v3405_v45 }
0x13ad   :  { %2122 = vmatpush.msrb.mxu3 %v3457_v22 }
0x13af   :  { %2123 = vmatpush.msrb.mxu3 %v3463_v36 }
0x13b1   :  { %2124 = vmatpush.msrb.mxu3 %v3469_v43 }
0x13b3   :  { %2125 = vmatpush.msrb.mxu3 %v3475_v60 }
0x13b5   :  { %2126 = vmatpush.msrb.mxu3 %v3481_v55 }
0x13b7   :  { %2127 = vmatpush.msrb.mxu3 %v3487_v10 }
0x141b   :  { %v988_v33 = vpop.f32.mrf.mxu0  ;;  %v1625_v11 = vpop.f32.mrf.mxu3 }
0x141c   :  { %v1628_v57 = vadd.f32 %v1625_v11, %v988_v33 }
0x141e   :  { %2430 = vtanh.f32 %v1628_v57  ;;  %v2349_v52 = vmul.f32 -1.442695, %v1628_v57 }
0x1420   :  { %2432 = vpow2.f32 %v2349_v52 }
0x1424   :  { %v2431_v62 = vpop.eup %2430 }
0x1425   :  { %1651 = vrot.lane.b32.xlu0 %v2431_v62, %s2568_s10 }
0x1426   :  { %v2433_v2 = vpop.eup %2432 }
0x1427   :  { %v1632_v63 = vadd.f32 1.0, %v2433_v2 }
0x1429   :  { %2434 = vrcp.f32 %v1632_v63  ;;  %v1644_v36 = vand.u32 2147483648, %v1632_v63  ;;  %vm1638_vm8 = vweird.f32 %v1632_v63  ;;  %v1642_v43 = vand.u32 2147483647, %v1632_v63 }
0x142b   :  { %v1645_v55 = vor.u32 1.1754944e-38, %v1644_v36  ;;  %vm1643_vm10 = vcmp.eq.f32.partialorder %v1642_v43, 8.507059e+37 }
0x142d   :  { %665 = vrot.lane.b32.xlu0 %v3177_v14, %s2566_s13 }
0x142f   :  { %v2435_v7 = vpop.eup %2434 }
0x1430   :  { %v1634_v50 = vmul.f32 %v2435_v7, %v1632_v63  ;;  %vm1639_vm7 = vweird.f32 %v2435_v7 }
0x1431   :  { %vm1640_vm9 = vmor %vm1638_vm8, %vm1639_vm7 }
0x1432   :  { %v1635_v53 = vsub.f32 1.0, %v1634_v50 }
0x1434   :  { %v1636_v45 = vmul.f32 %v2435_v7, %v1635_v53 }
0x1436   :  { %v1637_v22 = vadd.f32 %v2435_v7, %v1636_v45 }
0x1438   :  { %v1641_v60 = vsel %vm1640_vm9, %v2435_v7, %v1637_v22 }
0x1439   :  { %v1646_v14 = vsel %vm1643_vm10, %v1645_v55, %v1641_v60  ;;  %v561_v60 = vld [vmem:[%s3896_s2 + $0x50] sm:$0xff] }
0x143a   :  { %v1649_v1 = vmul.f32 %v1646_v14, %v3636_v48 }
0x1497   :  { %v1652_v10 = vpop.permute.xlu0 %1651 }
0x1498   :  { %v1654_v9 = vmul.f32 %v1652_v10, %v1646_v14 }
0x149a   :  { %1656 = vrot.lane.b32.xlu1 %v1654_v9, %s2568_s10 }
0x149f   :  { %v666_v8 = vpop.permute.xlu0 %665 }
0x150c   :  { %v1657_v3 = vpop.permute.xlu1 %1656 }
0x150d   :  { %v1659_v25 = vadd.f32 %v1657_v3, %v1649_v1 }
0x150f   :  { %2436 = vtanh.f32 %v1659_v25 }
0x1515   :  { %v2437_v56 = vpop.eup %2436 }
0x1516   :  { %1662 = vrot.lane.b32.xlu2 %v2437_v56, %s2568_s10 }
0x151e   :  { %601 = vrot.lane.b32.xlu2 %v3028_v34, %s2564_s28 }
0x1526   :  { %729 = vrot.lane.b32.xlu2 %v3304_v19, %s2565_s8 }
0x1570   :  { %v1663_v44 = vpop.permute.xlu2 %1662 }
0x1571   :  { %v1665_v21 = vmul.f32 %v1663_v44, %v1646_v14 }
0x1573   :  { %1670 = vrot.lane.b32.xlu1 %v1665_v21, %s2569_s26  ;;  %1667 = vrot.lane.b32.xlu0 %v1665_v21, %s2570_s27 }
0x1578   :  { %v602_v29 = vpop.permute.xlu2 %601 }
0x1579   :  { %v833_v19 = vsel %vm823_vm2, %v3030_v35, %v602_v29 }
0x157a   :  { %v850_v26 = vsel %vm840_vm3, %v833_v19, %v666_v8 }
0x157b   :  { %1673 = vrot.lane.b32.xlu1 %v1665_v21, %s2568_s10  ;;  %793 = vrot.lane.b32.xlu0 %v560_v16, %s2567_s17 }
0x1580   :  { %v730_v48 = vpop.permute.xlu2 %729 }
0x1581   :  { %v867_v61 = vsel %vm857_vm4, %v850_v26, %v730_v48 }
0x15e5   :  { %v1671_v34 = vpop.permute.xlu1 %1670  ;;  %v1668_v27 = vpop.permute.xlu0 %1667 }
0x15e6   :  { %v1676_v51 = vsel %vm47_vm0, %v1668_v27, %v1671_v34 }
0x15e7   :  { %v1677_v15 = vsel %vm1099_vm11, %v1676_v51, %v1665_v21 }
0x15ed   :  { %v1674_v59 = vpop.permute.xlu1 %1673  ;;  %v794_v47 = vpop.permute.xlu0 %793 }
0x15ee   :  { %v1678_v30 = vsel %vm1101_vm12, %v1677_v15, %v1674_v59  ;;  %v884_v12 = vsel %vm874_vm5, %v867_v61, %v794_v47 }
0x15ef   :  { %v1679_v58 = vmul.f32 %v3516_v24, %v1678_v30  ;;  %2334 = vmatmul.msk.f32.gmra.mxu0 %vm894_vm6, %v884_v12 }
0x15f1   :  { %1696 = vmatmul.f32.vlgmr.msra.gmra.mxu1 %v1679_v58 }
0x166c   :  { %v991_v35 = vpop.f32.mrf.mxu0 }
0x166e   :  { %v1697_v17 = vpop.f32.mrf.mxu1 }
0x166f   :  { %v1700_v5 = vadd.f32 %v1697_v17, %v991_v35 }
0x1671   :  { %2438 = vtanh.f32 %v1700_v5  ;;  %v2350_v31 = vmul.f32 -1.442695, %v1700_v5 }
0x1673   :  { %2440 = vpow2.f32 %v2350_v31 }
0x1677   :  { %v2439_v13 = vpop.eup %2438 }
0x1678   :  { %1723 = vrot.lane.b32.xlu1 %v2439_v13, %s2568_s10 }
0x1679   :  { %v2441_v40 = vpop.eup %2440 }
0x167a   :  { %v1704_v46 = vadd.f32 1.0, %v2441_v40 }
0x167c   :  { %2442 = vrcp.f32 %v1704_v46  ;;  %v1716_v11 = vand.u32 2147483648, %v1704_v46  ;;  %vm1710_vm14 = vweird.f32 %v1704_v46  ;;  %v1714_v57 = vand.u32 2147483647, %v1704_v46 }
0x167e   :  { %v1717_v52 = vor.u32 1.1754944e-38, %v1716_v11  ;;  %vm1715_vm1 = vcmp.eq.f32.partialorder %v1714_v57, 8.507059e+37 }
0x1682   :  { %v2443_v49 = vpop.eup %2442 }
0x1683   :  { %v1706_v0 = vmul.f32 %v2443_v49, %v1704_v46  ;;  %vm1711_vm13 = vweird.f32 %v2443_v49 }
0x1684   :  { %vm1712_vm15 = vmor %vm1710_vm14, %vm1711_vm13 }
0x1685   :  { %v1707_v6 = vsub.f32 1.0, %v1706_v0 }
0x1687   :  { %v1708_v28 = vmul.f32 %v2443_v49, %v1707_v6 }
0x1689   :  { %v1709_v33 = vadd.f32 %v2443_v49, %v1708_v28  ;;  %v562_v28 = vld [vmem:[%s3896_s2 + $0x58] sm:$0xff] }
0x168b   :  { %v1713_v62 = vsel %vm1712_vm15, %v2443_v49, %v1709_v33 }
0x168c   :  { %v1718_v63 = vsel %vm1715_vm1, %v1717_v52, %v1713_v62 }
0x168d   :  { %v1721_v50 = vmul.f32 %v1718_v63, %v1659_v25 }
0x16ea   :  { %v1724_v2 = vpop.permute.xlu1 %1723 }
0x16eb   :  { %v1726_v7 = vmul.f32 %v1724_v2, %v1718_v63 }
0x16ed   :  { %1728 = vrot.lane.b32.xlu2 %v1726_v7, %s2568_s10 }
0x1747   :  { %v1729_v53 = vpop.permute.xlu2 %1728 }
0x1748   :  { %v1731_v45 = vadd.f32 %v1729_v53, %v1721_v50 }
0x174a   :  { %2444 = vtanh.f32 %v1731_v45 }
0x1750   :  { %v2445_v22 = vpop.eup %2444 }
0x1751   :  { %1734 = vrot.lane.b32.xlu0 %v2445_v22, %s2568_s10 }
0x17c3   :  { %v1735_v36 = vpop.permute.xlu0 %1734 }
0x17c4   :  { %v1737_v43 = vmul.f32 %v1735_v36, %v1718_v63 }
0x17c6   :  { %1745 = vrot.lane.b32.xlu0 %v1737_v43, %s2568_s10  ;;  %1742 = vrot.lane.b32.xlu2 %v1737_v43, %s2569_s26 }
0x17c7   :  { %1739 = vrot.lane.b32.xlu1 %v1737_v43, %s2570_s27 }
0x17ce   :  { %731 = vrot.lane.b32.xlu0 %v3306_v20, %s2565_s8  ;;  %667 = vrot.lane.b32.xlu2 %v3179_v18, %s2566_s13 }
0x17cf   :  { %603 = vrot.lane.b32.xlu1 %v3032_v37, %s2564_s28 }
0x17d7   :  { %795 = vrot.lane.b32.xlu1 %v561_v60, %s2567_s17 }
0x1820   :  { %v1743_v55 = vpop.permute.xlu2 %1742 }
0x1828   :  { %v668_v25 = vpop.permute.xlu2 %667 }
0x1838   :  { %v1746_v9 = vpop.permute.xlu0 %1745 }
0x1839   :  { %v1740_v10 = vpop.permute.xlu1 %1739 }
0x183a   :  { %v1748_v14 = vsel %vm47_vm0, %v1740_v10, %v1743_v55  ;;  %v3915_v55 = vld [vmem:[#allocation17_spill] sm:$0xff] }
0x183b   :  { %v1749_v1 = vsel %vm1099_vm11, %v1748_v14, %v1737_v43  ;;  %v3916_v10 = vld [vmem:[#allocation13_spill] sm:$0xff] }
0x183c   :  { %v1750_v20 = vsel %vm1101_vm12, %v1749_v1, %v1746_v9 }
0x183d   :  { %v1751_v18 = vmul.f32 %v3516_v24, %v1750_v20 }
0x183f   :  { %1768 = vmatmul.f32.vlgmr.msra.gmra.mxu2 %v1751_v18 }
0x1840   :  { %v732_v44 = vpop.permute.xlu0 %731 }
0x1841   :  { %v604_v3 = vpop.permute.xlu1 %603 }
0x1842   :  { %v834_v37 = vsel %vm823_vm2, %v3034_v38, %v604_v3 }
0x1843   :  { %v851_v56 = vsel %vm840_vm3, %v834_v37, %v668_v25 }
0x1844   :  { %v868_v21 = vsel %vm857_vm4, %v851_v56, %v732_v44 }
0x1849   :  { %v796_v16 = vpop.permute.xlu1 %795 }
0x184a   :  { %v885_v8 = vsel %vm874_vm5, %v868_v21, %v796_v16 }
0x184b   :  { %2335 = vmatmul.msk.f32.gmra.mxu0 %vm894_vm6, %v885_v8 }
0x18c2   :  { %v1769_v29 = vpop.f32.mrf.mxu2 }
0x18c8   :  { %v994_v34 = vpop.f32.mrf.mxu0 }
0x18c9   :  { %v1772_v27 = vadd.f32 %v1769_v29, %v994_v34  ;;  %v3917_v29 = vld [vmem:[#allocation15_spill] sm:$0xff]  ;;  %v3918_v34 = vld [vmem:[#allocation9_spill] sm:$0xff] }
0x18cb   :  { %2446 = vtanh.f32 %v1772_v27  ;;  %v2351_v48 = vmul.f32 -1.442695, %v1772_v27  ;;  %v564_v27 = vld [vmem:[%s3896_s2 + $0x68] sm:$0xff] }
0x18cd   :  { %2448 = vpow2.f32 %v2351_v48  ;;  %v566_v48 = vld [vmem:[%s3896_s2 + $0x78] sm:$0xff] }
0x18d1   :  { %v2447_v19 = vpop.eup %2446 }
0x18d2   :  { %1795 = vrot.lane.b32.xlu2 %v2447_v19, %s2568_s10  ;;  %v3919_v19 = vld [vmem:[#allocation18_spill] sm:$0xff] }
0x18d3   :  { %v2449_v38 = vpop.eup %2448 }
0x18d4   :  { %v1776_v51 = vadd.f32 1.0, %v2449_v38 }
0x18d6   :  { %2450 = vrcp.f32 %v1776_v51  ;;  %v1788_v30 = vand.u32 2147483648, %v1776_v51  ;;  %vm1782_vm8 = vweird.f32 %v1776_v51  ;;  %v1786_v12 = vand.u32 2147483647, %v1776_v51 }
0x18d8   :  { %v1789_v35 = vor.u32 1.1754944e-38, %v1788_v30  ;;  %vm1787_vm10 = vcmp.eq.f32.partialorder %v1786_v12, 8.507059e+37  ;;  %v3923_v30 = vld [vmem:[#allocation20_spill] sm:$0xff] }
0x18dc   :  { %v2451_v26 = vpop.eup %2450 }
0x18dd   :  { %v1778_v61 = vmul.f32 %v2451_v26, %v1776_v51  ;;  %vm1783_vm7 = vweird.f32 %v2451_v26 }
0x18de   :  { %vm1784_vm9 = vmor %vm1782_vm8, %vm1783_vm7 }
0x18df   :  { %v1779_v59 = vsub.f32 1.0, %v1778_v61 }
0x18e1   :  { %v1780_v15 = vmul.f32 %v2451_v26, %v1779_v59  ;;  %v3921_v59 = vld [vmem:[#allocation16_spill] sm:$0xff] }
0x18e3   :  { %v1781_v47 = vadd.f32 %v2451_v26, %v1780_v15  ;;  %v3922_v15 = vld [vmem:[#allocation11_spill] sm:$0xff] }
0x18e5   :  { %v1785_v58 = vsel %vm1784_vm9, %v2451_v26, %v1781_v47  ;;  %v565_v47 = vld [vmem:[%s3896_s2 + $0x70] sm:$0xff] }
0x18e6   :  { %v1790_v5 = vsel %vm1787_vm10, %v1789_v35, %v1785_v58 }
0x18e7   :  { %v1793_v31 = vmul.f32 %v1790_v5, %v1731_v45 }
0x192c   :  { %v1796_v17 = vpop.permute.xlu2 %1795 }
0x192d   :  { %v1798_v13 = vmul.f32 %v1796_v17, %v1790_v5 }
0x192f   :  { %1800 = vrot.lane.b32.xlu0 %v1798_v13, %s2568_s10  ;;  %v3924_v13 = vld [vmem:[#allocation8_spill] sm:$0xff] }
0x19a1   :  { %v1801_v40 = vpop.permute.xlu0 %1800 }
0x19a2   :  { %v3734_v46 = vadd.f32 %v1801_v40, %v1793_v31 }
0x19a4   :  { %2452 = vtanh.f32 %v3734_v46 }
0x19aa   :  { %v2453_v49 = vpop.eup %2452 }
0x19ab   :  { %1806 = vrot.lane.b32.xlu1 %v2453_v49, %s2568_s10 }
0x1a1d   :  { %v1807_v0 = vpop.permute.xlu1 %1806 }
0x1a1e   :  { %v1809_v6 = vmul.f32 %v1807_v0, %v1790_v5 }
0x1a20   :  { %1817 = vrot.lane.b32.xlu1 %v1809_v6, %s2568_s10  ;;  %1814 = vrot.lane.b32.xlu0 %v1809_v6, %s2569_s26 }
0x1a21   :  { %1811 = vrot.lane.b32.xlu2 %v1809_v6, %s2570_s27 }
0x1a28   :  { %733 = vrot.lane.b32.xlu1 %v3308_v23, %s2565_s8  ;;  %669 = vrot.lane.b32.xlu0 %v3181_v54, %s2566_s13 }
0x1a29   :  { %605 = vrot.lane.b32.xlu2 %v3036_v39, %s2564_s28 }
0x1a31   :  { %797 = vrot.lane.b32.xlu2 %v562_v28, %s2567_s17 }
0x1a7b   :  { %v1812_v33 = vpop.permute.xlu2 %1811 }
0x1a83   :  { %v606_v11 = vpop.permute.xlu2 %605 }
0x1a84   :  { %v835_v63 = vsel %vm823_vm2, %v3038_v41, %v606_v11  ;;  %v563_v41 = vld [vmem:[%s3896_s2 + $0x60] sm:$0xff] }
0x1a8b   :  { %v798_v39 = vpop.permute.xlu2 %797 }
0x1a92   :  { %v1818_v57 = vpop.permute.xlu1 %1817  ;;  %v1815_v62 = vpop.permute.xlu0 %1814 }
0x1a93   :  { %v1820_v52 = vsel %vm47_vm0, %v1812_v33, %v1815_v62  ;;  %v3925_v33 = vld [vmem:[#allocation10_spill] sm:$0xff] }
0x1a94   :  { %v1821_v23 = vsel %vm1099_vm11, %v1820_v52, %v1809_v6 }
0x1a95   :  { %v1822_v2 = vsel %vm1101_vm12, %v1821_v23, %v1818_v57 }
0x1a96   :  { %v1823_v54 = vmul.f32 %v3516_v24, %v1822_v2 }
0x1a98   :  { %1840 = vmatmul.f32.vlgmr.msra.gmra.mxu3 %v1823_v54 }
0x1a9a   :  { %v734_v7 = vpop.permute.xlu1 %733  ;;  %v670_v50 = vpop.permute.xlu0 %669 }
0x1a9b   :  { %v852_v53 = vsel %vm840_vm3, %v835_v63, %v670_v50  ;;  %v3926_v63 = vld [vmem:[#allocation12_spill] sm:$0xff] }
0x1a9c   :  { %v869_v45 = vsel %vm857_vm4, %v852_v53, %v734_v7 }
0x1a9d   :  { %v886_v22 = vsel %vm874_vm5, %v869_v45, %v798_v39 }
0x1a9e   :  { %2336 = vmatmul.msk.f32.gmra.mxu0 %vm894_vm6, %v886_v22 }
0x1b1b   :  { %v997_v36 = vpop.f32.mrf.mxu0  ;;  %v1841_v43 = vpop.f32.mrf.mxu3 }
0x1b1c   :  { %v1844_v60 = vadd.f32 %v1841_v43, %v997_v36 }
0x1b1e   :  { %2454 = vtanh.f32 %v1844_v60  ;;  %v2352_v14 = vmul.f32 -1.442695, %v1844_v60 }
0x1b20   :  { %2456 = vpow2.f32 %v2352_v14 }
0x1b24   :  { %v2455_v24 = vpop.eup %2454 }
0x1b25   :  { %1867 = vrot.lane.b32.xlu0 %v2455_v24, %s2568_s10  ;;  %v3927_v24 = vld [vmem:[#allocation14_spill] sm:$0xff] }
0x1b26   :  { %v2457_v9 = vpop.eup %2456 }
0x1b27   :  { %v1848_v1 = vadd.f32 1.0, %v2457_v9 }
0x1b29   :  { %2458 = vrcp.f32 %v1848_v1  ;;  %v1860_v25 = vand.u32 2147483648, %v1848_v1  ;;  %vm1854_vm14 = vweird.f32 %v1848_v1 }
0x1b2b   :  { %v1861_v44 = vor.u32 1.1754944e-38, %v1860_v25 }
0x1b2d   :  { %607 = vrot.lane.b32.xlu0 %v3040_v42, %s2564_s28 }
0x1b2f   :  { %v2459_v42 = vpop.eup %2458 }
0x1b30   :  { %v1850_v20 = vmul.f32 %v2459_v42, %v1848_v1  ;;  %vm1855_vm13 = vweird.f32 %v2459_v42 }
0x1b31   :  { %vm1856_vm15 = vmor %vm1854_vm14, %vm1855_vm13 }
0x1b32   :  { %v1851_v18 = vsub.f32 1.0, %v1850_v20 }
0x1b34   :  { %v1852_v3 = vmul.f32 %v2459_v42, %v1851_v18 }
0x1b35   :  { %799 = vrot.lane.b32.xlu0 %v563_v41, %s2567_s17 }
0x1b36   :  { %v1853_v37 = vadd.f32 %v2459_v42, %v1852_v3 }
0x1b38   :  { %v1857_v56 = vsel %vm1856_vm15, %v2459_v42, %v1853_v37 }
0x1b3d   :  { %737 = vrot.lane.b32.xlu0 %v3312_v32, %s2565_s8  ;;  %v1858_v32 = vand.u32 2147483647, %v1848_v1 }
0x1b3f   :  { %vm1859_vm1 = vcmp.eq.f32.partialorder %v1858_v32, 8.507059e+37  ;;  %v3841_v32 = vld [vmem:[%s3897_s3] sm:$0xff]  ;;  %s2571_s3 = smov [#allocation4]  }
0x1b40   :  { %v1862_v16 = vsel %vm1859_vm1, %v1861_v44, %v1857_v56 }
0x1b41   :  { %v1865_v38 = vmul.f32 %v1862_v16, %v3734_v46 }
0x1b45   :  { %675 = vrot.lane.b32.xlu0 %v3915_v55, %s2566_s13 }
0x1b4d   :  { %613 = vrot.lane.b32.xlu0 %v3916_v10, %s2564_s28 }
0x1b55   :  { %805 = vrot.lane.b32.xlu0 %v566_v48, %s2567_s17 }
0x1b97   :  { %v1868_v21 = vpop.permute.xlu0 %1867 }
0x1b98   :  { %v1870_v8 = vmul.f32 %v1868_v21, %v1862_v16 }
0x1b9a   :  { %1872 = vrot.lane.b32.xlu1 %v1870_v8, %s2568_s10 }
0x1b9f   :  { %v608_v12 = vpop.permute.xlu0 %607 }
0x1ba0   :  { %v836_v31 = vsel %vm823_vm2, %v3924_v13, %v608_v12 }
0x1ba2   :  { %671 = vrot.lane.b32.xlu1 %v3917_v29, %s2566_s13 }
0x1ba7   :  { %v800_v17 = vpop.permute.xlu0 %799 }
0x1baa   :  { %609 = vrot.lane.b32.xlu1 %v3918_v34, %s2564_s28 }
0x1baf   :  { %v738_v28 = vpop.permute.xlu0 %737 }
0x1bb2   :  { %801 = vrot.lane.b32.xlu1 %v564_v27, %s2567_s17 }
0x1bb7   :  { %v676_v54 = vpop.permute.xlu0 %675 }
0x1bba   :  { %739 = vrot.lane.b32.xlu1 %v3314_v4, %s2565_s8  ;;  %v3920_v4 = vld [vmem:[#allocation19_spill] sm:$0xff] }
0x1bbf   :  { %v614_v45 = vpop.permute.xlu0 %613 }
0x1bc0   :  { %v839_v41 = vsel %vm823_vm2, %v3927_v24, %v614_v45 }
0x1bc2   :  { %677 = vrot.lane.b32.xlu1 %v3919_v19, %s2566_s13 }
0x1bc7   :  { %v806_v55 = vpop.permute.xlu0 %805 }
0x1c0c   :  { %v1873_v51 = vpop.permute.xlu1 %1872 }
0x1c0d   :  { %v3792_v26 = vadd.f32 %v1873_v51, %v1865_v38 }
0x1c0f   :  { %2460 = vtanh.f32 %v3792_v26 }
0x1c14   :  { %v672_v58 = vpop.permute.xlu1 %671 }
0x1c15   :  { %v2461_v61 = vpop.eup %2460  ;;  %v853_v46 = vsel %vm840_vm3, %v836_v31, %v672_v58 }
0x1c16   :  { %1878 = vrot.lane.b32.xlu2 %v2461_v61, %s2568_s10 }
0x1c1c   :  { %v610_v40 = vpop.permute.xlu1 %609 }
0x1c1d   :  { %v837_v11 = vsel %vm823_vm2, %v3925_v33, %v610_v40 }
0x1c1e   :  { %735 = vrot.lane.b32.xlu2 %v3920_v4, %s2565_s8 }
0x1c24   :  { %v802_v62 = vpop.permute.xlu1 %801 }
0x1c26   :  { %673 = vrot.lane.b32.xlu2 %v3921_v59, %s2566_s13 }
0x1c2c   :  { %v740_v50 = vpop.permute.xlu1 %739 }
0x1c2e   :  { %611 = vrot.lane.b32.xlu2 %v3922_v15, %s2564_s28 }
0x1c34   :  { %v678_v60 = vpop.permute.xlu1 %677 }
0x1c35   :  { %v856_v10 = vsel %vm840_vm3, %v839_v41, %v678_v60 }
0x1c36   :  { %803 = vrot.lane.b32.xlu2 %v565_v47, %s2567_s17 }
0x1c3e   :  { %741 = vrot.lane.b32.xlu2 %v3923_v30, %s2565_s8  ;;  %s2196_s8 = sshll.u32 %s2571_s3, 4  ;;  %s2197_s8 = int_to_ptr.vmem [resolvable:$true] %s2196_s8 }
0x1c70   :  { %v1879_v35 = vpop.permute.xlu2 %1878 }
0x1c71   :  { %v1881_v5 = vmul.f32 %v1879_v35, %v1862_v16 }
0x1c73   :  { %1889 = vrot.lane.b32.xlu0 %v1881_v5, %s2568_s10  ;;  %1886 = vrot.lane.b32.xlu2 %v1881_v5, %s2569_s26 }
0x1c74   :  { %1883 = vrot.lane.b32.xlu1 %v1881_v5, %s2570_s27 }
0x1c78   :  { %v736_v49 = vpop.permute.xlu2 %735 }
0x1c79   :  { %v870_v0 = vsel %vm857_vm4, %v853_v46, %v736_v49 }
0x1c7a   :  { %v887_v6 = vsel %vm874_vm5, %v870_v0, %v800_v17 }
0x1c7b   :  { %2337 = vmatmul.msk.f32.gmra.mxu0 %vm894_vm6, %v887_v6 }
0x1c80   :  { %v674_v57 = vpop.permute.xlu2 %673 }
0x1c81   :  { %v854_v52 = vsel %vm840_vm3, %v837_v11, %v674_v57 }
0x1c82   :  { %v871_v23 = vsel %vm857_vm4, %v854_v52, %v738_v28 }
0x1c83   :  { %v888_v2 = vsel %vm874_vm5, %v871_v23, %v802_v62 }
0x1c84   :  { %2338 = vmatmul.msk.f32.gmra.mxu0 %vm894_vm6, %v888_v2 }
0x1c88   :  { %v612_v39 = vpop.permute.xlu2 %611 }
0x1c89   :  { %v838_v7 = vsel %vm823_vm2, %v3926_v63, %v612_v39 }
0x1c8a   :  { %v855_v53 = vsel %vm840_vm3, %v838_v7, %v676_v54 }
0x1c8b   :  { %v872_v22 = vsel %vm857_vm4, %v855_v53, %v740_v50 }
0x1c90   :  { %v804_v36 = vpop.permute.xlu2 %803 }
0x1c91   :  { %v889_v43 = vsel %vm874_vm5, %v872_v22, %v804_v36 }
0x1c92   :  { %2339 = vmatmul.msk.f32.gmra.mxu0 %vm894_vm6, %v889_v43 }
0x1c98   :  { %v742_v14 = vpop.permute.xlu2 %741 }
0x1c99   :  { %v873_v9 = vsel %vm857_vm4, %v856_v10, %v742_v14 }
0x1c9a   :  { %v890_v1 = vsel %vm874_vm5, %v873_v9, %v806_v55 }
0x1c9b   :  { %2340 = vmatmul.msk.f32.gmra.mxu0 %vm894_vm6, %v890_v1 }
0x1ccd   :  { %v1887_v42 = vpop.permute.xlu2 %1886 }
0x1ce5   :  { %v1890_v3 = vpop.permute.xlu0 %1889 }
0x1ce6   :  { %v1884_v20 = vpop.permute.xlu1 %1883 }
0x1ce7   :  { %v1892_v18 = vsel %vm47_vm0, %v1884_v20, %v1887_v42 }
0x1ce8   :  { %v1893_v37 = vsel %vm1099_vm11, %v1892_v18, %v1881_v5 }
0x1ce9   :  { %v1894_v25 = vsel %vm1101_vm12, %v1893_v37, %v1890_v3 }
0x1cea   :  { %v1895_v56 = vmul.f32 %v3841_v32, %v1894_v25 }
0x1cec   :  { %1912 = vmatmul.f32.vlgmr.msra.gmra.mxu0 %v1895_v56 }
0x1cf8   :  { %v1000_v44 = vpop.f32.mrf.mxu0 }
0x1d01   :  { %v1003_v21 = vpop.f32.mrf.mxu0 }
0x1d0f   :  { %v3844_v16 = vpop.f32.mrf.mxu0 }
0x1d18   :  { %v3846_v8 = vpop.f32.mrf.mxu0 }
0x1d69   :  { %v1913_v29 = vpop.f32.mrf.mxu0 }
0x1d6a   :  { %v1916_v34 = vadd.f32 %v1913_v29, %v1000_v44 }
0x1d6c   :  { %2462 = vtanh.f32 %v1916_v34  ;;  %v2353_v19 = vmul.f32 -1.442695, %v1916_v34 }
0x1d6e   :  { %2464 = vpow2.f32 %v2353_v19 }
0x1d72   :  { %v2463_v27 = vpop.eup %2462 }
0x1d73   :  { %1939 = vrot.lane.b32.xlu1 %v2463_v27, %s2568_s10 }
0x1d74   :  { %v2465_v48 = vpop.eup %2464 }
0x1d75   :  { %v1920_v38 = vadd.f32 1.0, %v2465_v48 }
0x1d77   :  { %2466 = vrcp.f32 %v1920_v38  ;;  %v1932_v47 = vand.u32 2147483648, %v1920_v38  ;;  %vm1926_vm3 = vweird.f32 %v1920_v38  ;;  %v1930_v30 = vand.u32 2147483647, %v1920_v38 }
0x1d79   :  { %v1933_v58 = vor.u32 1.1754944e-38, %v1932_v47  ;;  %vm1931_vm5 = vcmp.eq.f32.partialorder %v1930_v30, 8.507059e+37 }
0x1d7d   :  { %v2467_v51 = vpop.eup %2466 }
0x1d7e   :  { %v1922_v61 = vmul.f32 %v2467_v51, %v1920_v38  ;;  %vm1927_vm2 = vweird.f32 %v2467_v51 }
0x1d7f   :  { %vm1928_vm4 = vmor %vm1926_vm3, %vm1927_vm2 }
0x1d80   :  { %v1923_v4 = vsub.f32 1.0, %v1922_v61 }
0x1d82   :  { %v1924_v59 = vmul.f32 %v2467_v51, %v1923_v4 }
0x1d84   :  { %v1925_v15 = vadd.f32 %v2467_v51, %v1924_v59 }
0x1d86   :  { %v1929_v12 = vsel %vm1928_vm4, %v2467_v51, %v1925_v15 }
0x1d87   :  { %v1934_v17 = vsel %vm1931_vm5, %v1933_v58, %v1929_v12 }
0x1d88   :  { %v1937_v13 = vmul.f32 %v1934_v17, %v3792_v26 }
0x1de5   :  { %v1940_v35 = vpop.permute.xlu1 %1939 }
0x1de6   :  { %v1942_v5 = vmul.f32 %v1940_v35, %v1934_v17 }
0x1de8   :  { %1944 = vrot.lane.b32.xlu2 %v1942_v5, %s2568_s10 }
0x1e42   :  { %v1945_v31 = vpop.permute.xlu2 %1944 }
0x1e43   :  { %v1947_v40 = vadd.f32 %v1945_v31, %v1937_v13 }
0x1e45   :  { %2468 = vtanh.f32 %v1947_v40 }
0x1e4b   :  { %v2469_v46 = vpop.eup %2468 }
0x1e4c   :  { %1950 = vrot.lane.b32.xlu0 %v2469_v46, %s2568_s10 }
0x1ebe   :  { %v1951_v49 = vpop.permute.xlu0 %1950 }
0x1ebf   :  { %v1953_v0 = vmul.f32 %v1951_v49, %v1934_v17 }
0x1ec1   :  { %1961 = vrot.lane.b32.xlu0 %v1953_v0, %s2568_s10  ;;  %1958 = vrot.lane.b32.xlu2 %v1953_v0, %s2569_s26 }
0x1ec2   :  { %1955 = vrot.lane.b32.xlu1 %v1953_v0, %s2570_s27 }
0x1f1b   :  { %v1959_v6 = vpop.permute.xlu2 %1958 }
0x1f33   :  { %v1962_v11 = vpop.permute.xlu0 %1961 }
0x1f34   :  { %v1956_v28 = vpop.permute.xlu1 %1955 }
0x1f35   :  { %v1964_v33 = vsel %vm47_vm0, %v1956_v28, %v1959_v6 }
0x1f36   :  { %v1965_v26 = vsel %vm1099_vm11, %v1964_v33, %v1953_v0 }
0x1f37   :  { %v1966_v57 = vsel %vm1101_vm12, %v1965_v26, %v1962_v11 }
0x1f38   :  { %v1967_v62 = vmul.f32 %v3841_v32, %v1966_v57 }
0x1f3a   :  { %1984 = vmatmul.f32.vlgmr.msrb.gmra.mxu1 %v1967_v62 }
0x1fb7   :  { %v1985_v52 = vpop.f32.mrf.mxu1 }
0x1fb8   :  { %v1988_v23 = vadd.f32 %v1985_v52, %v1003_v21 }
0x1fba   :  { %2470 = vtanh.f32 %v1988_v23  ;;  %v2354_v54 = vmul.f32 -1.442695, %v1988_v23 }
0x1fbc   :  { %2472 = vpow2.f32 %v2354_v54 }
0x1fc0   :  { %v2471_v2 = vpop.eup %2470 }
0x1fc1   :  { %2011 = vrot.lane.b32.xlu1 %v2471_v2, %s2568_s10 }
0x1fc2   :  { %v2473_v39 = vpop.eup %2472 }
0x1fc3   :  { %v1992_v63 = vadd.f32 1.0, %v2473_v39 }
0x1fc5   :  { %2474 = vrcp.f32 %v1992_v63  ;;  %v2004_v36 = vand.u32 2147483648, %v1992_v63  ;;  %vm1998_vm7 = vweird.f32 %v1992_v63  ;;  %v2002_v43 = vand.u32 2147483647, %v1992_v63 }
0x1fc7   :  { %v2005_v24 = vor.u32 1.1754944e-38, %v2004_v36  ;;  %vm2003_vm9 = vcmp.eq.f32.partialorder %v2002_v43, 8.507059e+37 }
0x1fcb   :  { %v2475_v7 = vpop.eup %2474 }
0x1fcc   :  { %v1994_v50 = vmul.f32 %v2475_v7, %v1992_v63  ;;  %vm1999_vm6 = vweird.f32 %v2475_v7 }
0x1fcd   :  { %vm2000_vm8 = vmor %vm1998_vm7, %vm1999_vm6 }
0x1fce   :  { %v1995_v53 = vsub.f32 1.0, %v1994_v50 }
0x1fd0   :  { %v1996_v45 = vmul.f32 %v2475_v7, %v1995_v53 }
0x1fd2   :  { %v1997_v22 = vadd.f32 %v2475_v7, %v1996_v45 }
0x1fd4   :  { %v2001_v60 = vsel %vm2000_vm8, %v2475_v7, %v1997_v22 }
0x1fd5   :  { %v2006_v55 = vsel %vm2003_vm9, %v2005_v24, %v2001_v60 }
0x1fd6   :  { %v2009_v14 = vmul.f32 %v2006_v55, %v1947_v40 }
0x2033   :  { %v2012_v41 = vpop.permute.xlu1 %2011 }
0x2034   :  { %v2014_v10 = vmul.f32 %v2012_v41, %v2006_v55 }
0x2036   :  { %2016 = vrot.lane.b32.xlu2 %v2014_v10, %s2568_s10 }
0x2090   :  { %v2017_v9 = vpop.permute.xlu2 %2016 }
0x2091   :  { %v2019_v1 = vadd.f32 %v2017_v9, %v2009_v14 }
0x2093   :  { %2476 = vtanh.f32 %v2019_v1 }
0x2099   :  { %v2477_v42 = vpop.eup %2476 }
0x209a   :  { %2022 = vrot.lane.b32.xlu0 %v2477_v42, %s2568_s10 }
0x210c   :  { %v2023_v20 = vpop.permute.xlu0 %2022 }
0x210d   :  { %v2025_v18 = vmul.f32 %v2023_v20, %v2006_v55 }
0x210f   :  { %2033 = vrot.lane.b32.xlu0 %v2025_v18, %s2568_s10  ;;  %2030 = vrot.lane.b32.xlu2 %v2025_v18, %s2569_s26 }
0x2110   :  { %2027 = vrot.lane.b32.xlu1 %v2025_v18, %s2570_s27 }
0x2169   :  { %v2031_v3 = vpop.permute.xlu2 %2030 }
0x2181   :  { %v2034_v56 = vpop.permute.xlu0 %2033 }
0x2182   :  { %v2028_v37 = vpop.permute.xlu1 %2027 }
0x2183   :  { %v2036_v25 = vsel %vm47_vm0, %v2028_v37, %v2031_v3 }
0x2184   :  { %v2037_v44 = vsel %vm1099_vm11, %v2036_v25, %v2025_v18 }
0x2185   :  { %v2038_v21 = vsel %vm1101_vm12, %v2037_v44, %v2034_v56 }
0x2186   :  { %v2039_v29 = vmul.f32 %v3841_v32, %v2038_v21 }
0x2188   :  { %2056 = vmatmul.f32.vlgmr.msrb.gmra.mxu2 %v2039_v29 }
0x220b   :  { %v2057_v34 = vpop.f32.mrf.mxu2 }
0x220c   :  { %v2060_v27 = vadd.f32 %v2057_v34, %v3844_v16 }
0x220e   :  { %2478 = vtanh.f32 %v2060_v27  ;;  %v2355_v48 = vmul.f32 -1.442695, %v2060_v27 }
0x2210   :  { %2480 = vpow2.f32 %v2355_v48 }
0x2214   :  { %v2479_v19 = vpop.eup %2478 }
0x2215   :  { %2083 = vrot.lane.b32.xlu1 %v2479_v19, %s2568_s10 }
0x2216   :  { %v2481_v38 = vpop.eup %2480 }
0x2217   :  { %v2064_v51 = vadd.f32 1.0, %v2481_v38 }
0x2219   :  { %2482 = vrcp.f32 %v2064_v51  ;;  %v2076_v30 = vand.u32 2147483648, %v2064_v51  ;;  %vm2070_vm13 = vweird.f32 %v2064_v51  ;;  %v2074_v12 = vand.u32 2147483647, %v2064_v51 }
0x221b   :  { %v2077_v58 = vor.u32 1.1754944e-38, %v2076_v30  ;;  %vm2075_vm15 = vcmp.eq.f32.partialorder %v2074_v12, 8.507059e+37 }
0x221f   :  { %v2483_v61 = vpop.eup %2482 }
0x2220   :  { %v2066_v4 = vmul.f32 %v2483_v61, %v2064_v51  ;;  %vm2071_vm10 = vweird.f32 %v2483_v61 }
0x2221   :  { %vm2072_vm14 = vmor %vm2070_vm13, %vm2071_vm10 }
0x2222   :  { %v2067_v59 = vsub.f32 1.0, %v2066_v4 }
0x2224   :  { %v2068_v15 = vmul.f32 %v2483_v61, %v2067_v59 }
0x2226   :  { %v2069_v47 = vadd.f32 %v2483_v61, %v2068_v15 }
0x2228   :  { %v2073_v16 = vsel %vm2072_vm14, %v2483_v61, %v2069_v47 }
0x2229   :  { %v2078_v17 = vsel %vm2075_vm15, %v2077_v58, %v2073_v16 }
0x222a   :  { %v2081_v13 = vmul.f32 %v2078_v17, %v2019_v1 }
0x2287   :  { %v2084_v35 = vpop.permute.xlu1 %2083 }
0x2288   :  { %v2086_v5 = vmul.f32 %v2084_v35, %v2078_v17 }
0x228a   :  { %2088 = vrot.lane.b32.xlu2 %v2086_v5, %s2568_s10 }
0x22e4   :  { %v2089_v31 = vpop.permute.xlu2 %2088 }
0x22e5   :  { %v2091_v40 = vadd.f32 %v2089_v31, %v2081_v13 }
0x22e7   :  { %2484 = vtanh.f32 %v2091_v40 }
0x22ed   :  { %v2485_v46 = vpop.eup %2484 }
0x22ee   :  { %2094 = vrot.lane.b32.xlu0 %v2485_v46, %s2568_s10 }
0x2360   :  { %v2095_v49 = vpop.permute.xlu0 %2094 }
0x2361   :  { %v2097_v0 = vmul.f32 %v2095_v49, %v2078_v17 }
0x2363   :  { %2105 = vrot.lane.b32.xlu0 %v2097_v0, %s2568_s10  ;;  %2102 = vrot.lane.b32.xlu2 %v2097_v0, %s2569_s26 }
0x2364   :  { %2099 = vrot.lane.b32.xlu1 %v2097_v0, %s2570_s27 }
0x23bd   :  { %v2103_v6 = vpop.permute.xlu2 %2102 }
0x23d5   :  { %v2106_v11 = vpop.permute.xlu0 %2105 }
0x23d6   :  { %v2100_v28 = vpop.permute.xlu1 %2099 }
0x23d7   :  { %v2108_v33 = vsel %vm47_vm0, %v2100_v28, %v2103_v6 }
0x23d8   :  { %v2109_v26 = vsel %vm1099_vm11, %v2108_v33, %v2097_v0 }
0x23d9   :  { %v2110_v57 = vsel %vm1101_vm12, %v2109_v26, %v2106_v11 }
0x23da   :  { %v2111_v62 = vmul.f32 %v3841_v32, %v2110_v57 }
0x23dc   :  { %2128 = vmatmul.f32.vlgmr.msrb.gmra.mxu3 %v2111_v62 }
0x245f   :  { %v2129_v52 = vpop.f32.mrf.mxu3 }
0x2460   :  { %v2132_v23 = vadd.f32 %v2129_v52, %v3846_v8 }
0x2462   :  { %2486 = vtanh.f32 %v2132_v23  ;;  %v2356_v54 = vmul.f32 -1.442695, %v2132_v23 }
0x2464   :  { %2488 = vpow2.f32 %v2356_v54 }
0x2468   :  { %v2487_v2 = vpop.eup %2486 }
0x2469   :  { %2155 = vrot.lane.b32.xlu1 %v2487_v2, %s2568_s10 }
0x246a   :  { %v2489_v39 = vpop.eup %2488 }
0x246b   :  { %v2136_v63 = vadd.f32 1.0, %v2489_v39 }
0x246d   :  { %2490 = vrcp.f32 %v2136_v63  ;;  %v2148_v32 = vand.u32 2147483648, %v2136_v63  ;;  %vm2142_vm12 = vweird.f32 %v2136_v63  ;;  %v2146_v36 = vand.u32 2147483647, %v2136_v63 }
0x246f   :  { %v2149_v43 = vor.u32 1.1754944e-38, %v2148_v32  ;;  %vm2147_vm2 = vcmp.eq.f32.partialorder %v2146_v36, 8.507059e+37 }
0x2473   :  { %v2491_v7 = vpop.eup %2490 }
0x2474   :  { %v2138_v50 = vmul.f32 %v2491_v7, %v2136_v63  ;;  %vm2143_vm11 = vweird.f32 %v2491_v7 }
0x2475   :  { %vm2144_vm1 = vmor %vm2142_vm12, %vm2143_vm11 }
0x2476   :  { %v2139_v53 = vsub.f32 1.0, %v2138_v50 }
0x2478   :  { %v2140_v45 = vmul.f32 %v2491_v7, %v2139_v53 }
0x247a   :  { %v2141_v22 = vadd.f32 %v2491_v7, %v2140_v45 }
0x247c   :  { %v2145_v8 = vsel %vm2144_vm1, %v2491_v7, %v2141_v22 }
0x247d   :  { %v2150_v24 = vsel %vm2147_vm2, %v2149_v43, %v2145_v8 }
0x247e   :  { %v2153_v55 = vmul.f32 %v2150_v24, %v2091_v40 }
0x24db   :  { %v2156_v60 = vpop.permute.xlu1 %2155 }
0x24dc   :  { %v2158_v41 = vmul.f32 %v2156_v60, %v2150_v24 }
0x24de   :  { %2160 = vrot.lane.b32.xlu2 %v2158_v41, %s2568_s10 }
0x2538   :  { %v2161_v10 = vpop.permute.xlu2 %2160 }
0x2539   :  { %v2163_v14 = vadd.f32 %v2161_v10, %v2153_v55 }
0x253b   :  { %2492 = vtanh.f32 %v2163_v14  ;;  %2176 = vrot.lane.b32.xlu2 %v2163_v14, %s2569_s26  ;;  %s2572_s26 = smov [#allocation2]  }
0x253c   :  { %s2185_s23 = sshll.u32 %s2572_s26, 4  ;;  %s2186_s23 = int_to_ptr.vmem [resolvable:$true] %s2185_s23 }
0x2541   :  { %v2493_v9 = vpop.eup %2492 }
0x2542   :  { %2166 = vrot.lane.b32.xlu0 %v2493_v9, %s2568_s10 }
0x2595   :  { %v2177_v1 = vpop.permute.xlu2 %2176 }
0x2596   :  { %2179 = vst.msk [vmem:[#allocation4] sm:$0xff] %vm47_vm0, %v2177_v1 }
0x2597   :  { %2201 = dma.vmem_to_hbm [thread:$0]  %s2197_s8, 128, %s2199_s22, [#allocation5]  }
0x25b4   :  { %v2167_v42 = vpop.permute.xlu0 %2166 }
0x25b5   :  { %v2169_v20 = vmul.f32 %v2167_v42, %v2150_v24 }
0x25b7   :  { %2171 = vrot.lane.b32.xlu1 %v2169_v20, %s2570_s27 }
0x2629   :  { %v2172_v18 = vpop.permute.xlu1 %2171 }
0x262a   :  { %2174 = vst.msk [vmem:[#allocation2] sm:$0xff] %vm47_vm0, %v2172_v18 }
0x262b   :  { %2190 = dma.vmem_to_hbm [thread:$0]  %s2186_s23, 128, %s2188_s25, [#allocation3]  }
0x262c   :  { %2560 = dma.done.wait [#allocation3], 128  }
0x262d   :  { %2561 = vsyncadd [#allocation3], 4294967168 }
0x262e   :  { %2562 = dma.done.wait [#allocation5], 128  }
0x262f   :  { %2563 = vsyncadd [#allocation5], 4294967168 }
0x2630   :  { %2210 = vsyncpa [#allocation3], 1 }
0x2631   :  { %2211 = vsyncpa [#allocation5], 1 }

</bundles_post_ra>
